<compile_context>
chip_gen: v6e
topology: v6e:2x2x1
jax: 0.10.0
libtpu: 0.0.40
codegen_flags: <defaults>
</compile_context>

<pallas_src>
import jax
import jax.numpy as jnp
from jax.experimental import pallas as pl
from jax.experimental.pallas import tpu as pltpu


def _round_up(x, m):
    return ((x + m - 1) // m) * m


def solution_u_kernel(x_ref,                 # (6, tile)    input rows, feature-major
                      w1_ref, b1_ref,        # (60, 6), (60, 1)
                      w2_ref, b2_ref,        # (60, 60), (60, 1)
                      w34_ref, b34_ref,      # (32, 60), (32, 1)   folded 60->32->32
                      w5_ref, b5_ref,        # (32, 1), (1, 1)
                      o_ref):                # (1, tile)    lane-dense output
    """Full Solution_u forward for one (6, tile) feature-major row-tile.

    encoder:  sin(W1 @ x + b1) -> sin(W2 @ h + b2)
    folded:   sin(W34 @ h + b34)          (encoder 60->32 composed with 32->32)
    head:     sum(h * w5, axis=0) + b5    (VPU multiply + sublane reduce)
    """
    def mm(w_ref, h):
        w = w_ref[...]
        # Cast activations to the weight dtype at the MXU input only; f32 accumulate.
        return jnp.dot(w, h.astype(w.dtype), preferred_element_type=jnp.float32)

    h = jnp.sin(mm(w1_ref, x_ref[...]) + b1_ref[...])
    h = jnp.sin(mm(w2_ref, h) + b2_ref[...])
    # TODO(synk): nn.Dropout(p=0.2) layers are identity at inference (eval mode); not modelled.
    h = jnp.sin(mm(w34_ref, h) + b34_ref[...])

    # Final 32->1: broadcast-multiply by the w5 column and reduce over the
    # (sublane) feature axis -> already lane-dense (1, tile).
    out = jnp.sum(h * w5_ref[...], axis=0, keepdims=True) + b5_ref[...]
    o_ref[...] = out.astype(o_ref.dtype)


def solution_u_forward(x, params, *, tile_rows=2048, mxu_dtype=None):
    """x: (batch, small_batch, 6) float32 -> (batch, small_batch, 1) float32."""
    batch, small_batch, input_dim = x.shape
    n = batch * small_batch
    x2d = x.reshape(n, input_dim)

    (w1, b1), (w2, b2), (w3, b3), (w4, b4), (w5, b5) = params

    # Fold encoder 60->32 linear with predictor 32->32 linear (exact compose:
    # no nonlinearity between them, dropout is identity at inference).
    w34 = w3 @ w4                         # (60, 32)
    b34 = b3 @ w4 + b4                    # (1, 32)

    # Feature-major parameter layout: weights (out, in), biases (out, 1).
    mm_dtype = jnp.float32 if mxu_dtype is None else mxu_dtype
    w1_m = w1.T.astype(mm_dtype)          # (60, 6)
    w2_m = w2.T.astype(mm_dtype)          # (60, 60)
    w34_m = w34.T.astype(mm_dtype)        # (32, 60)
    b1_c = b1.reshape(-1, 1)              # (60, 1)  f32
    b2_c = b2.reshape(-1, 1)              # (60, 1)  f32
    b34_c = b34.reshape(-1, 1)            # (32, 1)  f32
    w5_c = w5.reshape(-1, 1)              # (32, 1)  f32 (head runs on VPU)
    b5_s = b5.reshape(1, 1)               # (1, 1)   f32

    # Row tile = lane axis of the feature-major layout: multiple of 128, big
    # enough to amortize the ~0.35us per-grid-step overhead (VMEM use is tiny
    # even at 2048+ rows). Small n collapses to a single grid step.
    tile = max(128, min(_round_up(tile_rows, 128), _round_up(n, 128)))
    n_pad = _round_up(n, tile)
    num_tiles = n_pad // tile

    # Feature-major input: (6, n_pad); lane axis = rows, tiny sublane padding 6->8.
    x_t = x2d.T
    if n_pad != n:
        x_t = jnp.pad(x_t, ((0, 0), (0, n_pad - n)))

    def resident(arr):
        # Constant index_map => weight/bias tiles stay resident across grid steps.
        return pl.BlockSpec(arr.shape, lambda i: (0, 0))

    flat_params = [w1_m, b1_c, w2_m, b2_c, w34_m, b34_c, w5_c, b5_s]
    in_specs = [pl.BlockSpec((input_dim, tile), lambda i: (0, i))]
    in_specs += [resident(p) for p in flat_params]

    out = pl.pallas_call(
        solution_u_kernel,
        out_shape=jax.ShapeDtypeStruct((1, n_pad), jnp.float32),
        grid_spec=pltpu.PrefetchScalarGridSpec(
            num_scalar_prefetch=0,
            grid=(num_tiles,),
            in_specs=in_specs,
            out_specs=pl.BlockSpec((1, tile), lambda i: (0, i)),
        ),
        compiler_params=pltpu.CompilerParams(
            dimension_semantics=("parallel",)),
    )(x_t, *flat_params)

    return out[0, :n].reshape(batch, small_batch, 1)


def xavier_normal(key, fan_in, fan_out):
    # nn.init.xavier_normal_: std = sqrt(2 / (fan_in + fan_out)); stored (in, out).
    std = (2.0 / (fan_in + fan_out)) ** 0.5
    return jax.random.normal(key, (fan_in, fan_out), dtype=jnp.float32) * std


def make_params(key):
    dims = [(6, 60), (60, 60), (60, 32), (32, 32), (32, 1)]
    keys = jax.random.split(key, len(dims))
    params = []
    for k, (fi, fo) in zip(keys, dims):
        w = xavier_normal(k, fi, fo)
        b = jnp.zeros((1, fo), dtype=jnp.float32)   # nn.init.constant_(bias, 0)
        params.append((w, b))
    return params


def reference_forward(x, params):
    """Pure-JAX reference of Solution_u.forward (dropout = identity, unfolded)."""
    b_, s_, d = x.shape
    h = x.reshape(-1, d)
    (w1, b1), (w2, b2), (w3, b3), (w4, b4), (w5, b5) = params
    h = jnp.sin(h @ w1 + b1)
    h = jnp.sin(h @ w2 + b2)
    h = h @ w3 + b3
    h = jnp.sin(h @ w4 + b4)
    h = h @ w5 + b5
    return h.reshape(b_, s_, 1)


if __name__ == "__main__":
    key = jax.random.PRNGKey(0)
    k_params, k_x, k_x2 = jax.random.split(key, 3)

    params = make_params(k_params)

    # Small shape consistent with the module: (batch=2, small_batch=8, input_dim=6).
    # Exercises the small-n fast path: single 128-row tile, row padding.
    x_small = jax.random.normal(k_x, (2, 8, 6), dtype=jnp.float32)
    out_small = jax.block_until_ready(solution_u_forward(x_small, params))
    ref_small = reference_forward(x_small, params)
    assert out_small.shape == (2, 8, 1)
    assert jnp.allclose(out_small, ref_small, atol=1e-4, rtol=1e-4), "mismatch (small)"

    # Larger shape with a forced small tile: multi-step "parallel" grid + padding.
    x_big = jax.random.normal(k_x2, (4, 300, 6), dtype=jnp.float32)
    out_big = jax.block_until_ready(
        solution_u_forward(x_big, params, tile_rows=512))
    ref_big = reference_forward(x_big, params)
    assert out_big.shape == (4, 300, 1)
    assert jnp.allclose(out_big, ref_big, atol=1e-4, rtol=1e-4), "mismatch (big)"

    # Default large-tile path (single step at this n).
    out_big2 = jax.block_until_ready(solution_u_forward(x_big, params))
    assert jnp.allclose(out_big2, ref_big, atol=1e-4, rtol=1e-4), "mismatch (big, default tile)"

    print("KERNEL_OK")
</pallas_src>

<mosaic_0001>
module attributes {stable_mosaic.version = 11 : i64} {
  func.func @solution_u_kernel(%arg0: i32, %arg1: memref<6x128xf32, #tpu.memory_space<vmem>>, %arg2: memref<60x6xf32, #tpu.memory_space<vmem>>, %arg3: memref<60x1xf32, #tpu.memory_space<vmem>>, %arg4: memref<60x60xf32, #tpu.memory_space<vmem>>, %arg5: memref<60x1xf32, #tpu.memory_space<vmem>>, %arg6: memref<32x60xf32, #tpu.memory_space<vmem>>, %arg7: memref<32x1xf32, #tpu.memory_space<vmem>>, %arg8: memref<32x1xf32, #tpu.memory_space<vmem>>, %arg9: memref<1x1xf32, #tpu.memory_space<vmem>>, %arg10: memref<1x128xf32, #tpu.memory_space<vmem>>) attributes {dimension_semantics = [#tpu.dimension_semantics<parallel>], iteration_bounds = array<i64: 1>, scalar_prefetch = 0 : i64, scratch_operands = 0 : i64, tpu.core_type = #tpu.core_type<tc>, window_params = [{transform_indices = @transform_0, window_bounds = array<i64: 6, 128>}, {pipeline_mode = #tpu.pipeline_mode<synchronous>, transform_indices = @transform_1, window_bounds = array<i64: 60, 6>}, {pipeline_mode = #tpu.pipeline_mode<synchronous>, transform_indices = @transform_2, window_bounds = array<i64: 60, 1>}, {pipeline_mode = #tpu.pipeline_mode<synchronous>, transform_indices = @transform_3, window_bounds = array<i64: 60, 60>}, {pipeline_mode = #tpu.pipeline_mode<synchronous>, transform_indices = @transform_4, window_bounds = array<i64: 60, 1>}, {pipeline_mode = #tpu.pipeline_mode<synchronous>, transform_indices = @transform_5, window_bounds = array<i64: 32, 60>}, {pipeline_mode = #tpu.pipeline_mode<synchronous>, transform_indices = @transform_6, window_bounds = array<i64: 32, 1>}, {pipeline_mode = #tpu.pipeline_mode<synchronous>, transform_indices = @transform_7, window_bounds = array<i64: 32, 1>}, {pipeline_mode = #tpu.pipeline_mode<synchronous>, transform_indices = @transform_8, window_bounds = array<i64: 1, 1>}, {transform_indices = @transform_9, window_bounds = array<i64: 1, 128>}]} {
    %c0 = arith.constant 0 : index
    %c0_0 = arith.constant 0 : index
    %0 = vector.load %arg1[%c0, %c0_0] : memref<6x128xf32, #tpu.memory_space<vmem>>, vector<6x128xf32>
    %c0_1 = arith.constant 0 : index
    %c0_2 = arith.constant 0 : index
    %1 = vector.load %arg2[%c0_1, %c0_2] : memref<60x6xf32, #tpu.memory_space<vmem>>, vector<60x6xf32>
    %cst = arith.constant dense<0.000000e+00> : vector<60x128xf32>
    %2 = tpu.matmul %1, %0, %cst {dimension_numbers = #tpu.dot_dimension_numbers<[1], [0], [0], [1], [0, 0, 1, 1], [], []>} : vector<60x6xf32>, vector<6x128xf32>, vector<60x128xf32> -> vector<60x128xf32>
    %c0_3 = arith.constant 0 : index
    %c0_4 = arith.constant 0 : index
    %3 = vector.load %arg3[%c0_3, %c0_4] : memref<60x1xf32, #tpu.memory_space<vmem>>, vector<60x1xf32>
    %4 = vector.broadcast %3 : vector<60x1xf32> to vector<60x128xf32>
    %5 = arith.addf %2, %4 : vector<60x128xf32>
    %6 = math.sin %5 : vector<60x128xf32>
    %c0_5 = arith.constant 0 : index
    %c0_6 = arith.constant 0 : index
    %7 = vector.load %arg4[%c0_5, %c0_6] : memref<60x60xf32, #tpu.memory_space<vmem>>, vector<60x60xf32>
    %cst_7 = arith.constant dense<0.000000e+00> : vector<60x128xf32>
    %8 = tpu.matmul %7, %6, %cst_7 {dimension_numbers = #tpu.dot_dimension_numbers<[1], [0], [0], [1], [0, 0, 1, 1], [], []>} : vector<60x60xf32>, vector<60x128xf32>, vector<60x128xf32> -> vector<60x128xf32>
    %c0_8 = arith.constant 0 : index
    %c0_9 = arith.constant 0 : index
    %9 = vector.load %arg5[%c0_8, %c0_9] : memref<60x1xf32, #tpu.memory_space<vmem>>, vector<60x1xf32>
    %10 = vector.broadcast %9 : vector<60x1xf32> to vector<60x128xf32>
    %11 = arith.addf %8, %10 : vector<60x128xf32>
    %12 = math.sin %11 : vector<60x128xf32>
    %c0_10 = arith.constant 0 : index
    %c0_11 = arith.constant 0 : index
    %13 = vector.load %arg6[%c0_10, %c0_11] : memref<32x60xf32, #tpu.memory_space<vmem>>, vector<32x60xf32>
    %cst_12 = arith.constant dense<0.000000e+00> : vector<32x128xf32>
    %14 = tpu.matmul %13, %12, %cst_12 {dimension_numbers = #tpu.dot_dimension_numbers<[1], [0], [0], [1], [0, 0, 1, 1], [], []>} : vector<32x60xf32>, vector<60x128xf32>, vector<32x128xf32> -> vector<32x128xf32>
    %c0_13 = arith.constant 0 : index
    %c0_14 = arith.constant 0 : index
    %15 = vector.load %arg7[%c0_13, %c0_14] : memref<32x1xf32, #tpu.memory_space<vmem>>, vector<32x1xf32>
    %16 = vector.broadcast %15 : vector<32x1xf32> to vector<32x128xf32>
    %17 = arith.addf %14, %16 : vector<32x128xf32>
    %18 = math.sin %17 : vector<32x128xf32>
    %c0_15 = arith.constant 0 : index
    %c0_16 = arith.constant 0 : index
    %19 = vector.load %arg8[%c0_15, %c0_16] : memref<32x1xf32, #tpu.memory_space<vmem>>, vector<32x1xf32>
    %20 = vector.broadcast %19 : vector<32x1xf32> to vector<32x128xf32>
    %21 = arith.mulf %18, %20 : vector<32x128xf32>
    %cst_17 = arith.constant dense<0.000000e+00> : vector<128xf32>
    %22 = vector.multi_reduction <add>, %21, %cst_17 [0] : vector<32x128xf32> to vector<128xf32>
    %23 = vector.shape_cast %22 : vector<128xf32> to vector<1x128xf32>
    %c0_18 = arith.constant 0 : index
    %c0_19 = arith.constant 0 : index
    %24 = vector.load %arg9[%c0_18, %c0_19] : memref<1x1xf32, #tpu.memory_space<vmem>>, vector<1x1xf32>
    %25 = vector.broadcast %24 : vector<1x1xf32> to vector<1x128xf32>
    %26 = arith.addf %23, %25 : vector<1x128xf32>
    %c0_20 = arith.constant 0 : index
    %c0_21 = arith.constant 0 : index
    %27 = vector.load %arg10[%c0_20, %c0_21] : memref<1x128xf32, #tpu.memory_space<vmem>>, vector<1x128xf32>
    tpu.vector_store %arg10[%c0_20, %c0_21], %26 {strides = array<i32>} : memref<1x128xf32, #tpu.memory_space<vmem>>, vector<1x128xf32>,
    return
  }
  func.func @transform_0(%arg0: i32) -> (i32, i32) {
    %c0_i32 = arith.constant 0 : i32
    %c0_i32_0 = arith.constant 0 : i32
    return %c0_i32, %arg0 : i32, i32
  }
  func.func @transform_1(%arg0: i32) -> (i32, i32) {
    %c0_i32 = arith.constant 0 : i32
    %c0_i32_0 = arith.constant 0 : i32
    %c0_i32_1 = arith.constant 0 : i32
    return %c0_i32, %c0_i32_0 : i32, i32
  }
  func.func @transform_2(%arg0: i32) -> (i32, i32) {
    %c0_i32 = arith.constant 0 : i32
    %c0_i32_0 = arith.constant 0 : i32
    %c0_i32_1 = arith.constant 0 : i32
    return %c0_i32, %c0_i32_0 : i32, i32
  }
  func.func @transform_3(%arg0: i32) -> (i32, i32) {
    %c0_i32 = arith.constant 0 : i32
    %c0_i32_0 = arith.constant 0 : i32
    %c0_i32_1 = arith.constant 0 : i32
    return %c0_i32, %c0_i32_0 : i32, i32
  }
  func.func @transform_4(%arg0: i32) -> (i32, i32) {
    %c0_i32 = arith.constant 0 : i32
    %c0_i32_0 = arith.constant 0 : i32
    %c0_i32_1 = arith.constant 0 : i32
    return %c0_i32, %c0_i32_0 : i32, i32
  }
  func.func @transform_5(%arg0: i32) -> (i32, i32) {
    %c0_i32 = arith.constant 0 : i32
    %c0_i32_0 = arith.constant 0 : i32
    %c0_i32_1 = arith.constant 0 : i32
    return %c0_i32, %c0_i32_0 : i32, i32
  }
  func.func @transform_6(%arg0: i32) -> (i32, i32) {
    %c0_i32 = arith.constant 0 : i32
    %c0_i32_0 = arith.constant 0 : i32
    %c0_i32_1 = arith.constant 0 : i32
    return %c0_i32, %c0_i32_0 : i32, i32
  }
  func.func @transform_7(%arg0: i32) -> (i32, i32) {
    %c0_i32 = arith.constant 0 : i32
    %c0_i32_0 = arith.constant 0 : i32
    %c0_i32_1 = arith.constant 0 : i32
    return %c0_i32, %c0_i32_0 : i32, i32
  }
  func.func @transform_8(%arg0: i32) -> (i32, i32) {
    %c0_i32 = arith.constant 0 : i32
    %c0_i32_0 = arith.constant 0 : i32
    %c0_i32_1 = arith.constant 0 : i32
    return %c0_i32, %c0_i32_0 : i32, i32
  }
  func.func @transform_9(%arg0: i32) -> (i32, i32) {
    %c0_i32 = arith.constant 0 : i32
    %c0_i32_0 = arith.constant 0 : i32
    return %c0_i32, %arg0 : i32, i32
  }
}

</mosaic_0001>

<bundles_post_ra>
// kernel: tpu_custom_call.1
= control target key start
LH: loop header
LB: loop body
LE: loop exit
PB: predicated region body
PF: predicated region fallthrough
CT: control target
= control target key end

     0   :  { %s5141_s0 = inlined_call_operand.vmem [shape: f32[6,128], index: 0, kind: input, shape index: {}]   ;;  %s5142_s1 = inlined_call_operand.vmem [shape: f32[60,6], index: 1, kind: input, shape index: {}]   ;;  %s5143_s2 = inlined_call_operand.vmem [shape: f32[60,1], index: 2, kind: input, shape index: {}]   ;;  %s5144_s3 = inlined_call_operand.vmem [shape: f32[60,60], index: 3, kind: input, shape index: {}]   ;;  %s5145_s4 = inlined_call_operand.vmem [shape: f32[60,1], index: 4, kind: input, shape index: {}]   ;;  %s5146_s5 = inlined_call_operand.vmem [shape: f32[32,60], index: 5, kind: input, shape index: {}]   ;;  %s5147_s6 = inlined_call_operand.vmem [shape: f32[32,1], index: 6, kind: input, shape index: {}]   ;;  %s5148_s7 = inlined_call_operand.vmem [shape: f32[32,1], index: 7, kind: input, shape index: {}]   ;;  %s5149_s8 = inlined_call_operand.<no memory space> [shape: f32[1,1], index: 8, kind: input, shape index: {}]   ;;  %s5150_s9 = inlined_call_operand.hbm [shape: f32[1,128], index: 9, kind: output, shape index: {}]  }
   0x1   :  { %v14_v0 = vstv %s5149_s8 }
   0x2   :  { %15 = vst [vmem:[#allocation2] sm:$0x1] %v14_v0 }
   0x3   :  { %v35_v1 = vld [vmem:[%s5141_s0] sm:$0x3f]  ;;  %vm117_vm0 = vcmask 1045504   ;;  %vm92_vm1 = vcmask 48128   ;;  %v37_v3 = vld [vmem:[%s5142_s1 + $0x8] sm:$0xff]  ;;  %v38_v4 = vld [vmem:[%s5142_s1 + $0x10] sm:$0xff] }
   0x4   :  { %v36_v2 = vld [vmem:[%s5142_s1] sm:$0xff]  ;;  %2827 = vmatprep.subr.msk.mxu0 %vm117_vm0, %v35_v1  ;;  %v3083_v5 = vmov 0   ;;  %v51_v6 = vld [vmem:[%s5143_s2 + $0x38] sm:$0xf]  ;;  %v49_v7 = vld [vmem:[%s5143_s2 + $0x28] sm:$0xff] }
   0x5   :  { %2829 = vmatprep.mubr.msk.f32.mxu0 %vm92_vm1, %v36_v2  ;;  %2828 = vmatpush3.msk.msra.mxu0 %vm117_vm0, %v35_v1  ;;  %v39_v8 = vld [vmem:[%s5142_s1 + $0x18] sm:$0xff]  ;;  %v40_v9 = vld [vmem:[%s5142_s1 + $0x20] sm:$0xff]  ;;  %v50_v10 = vld [vmem:[%s5143_s2 + $0x30] sm:$0xff] }
   0x6   :  { %2979 = vset.pattern.permute.xlu0 %v3083_v5  ;;  %2830 = vmatmul.mubr.msk.f32.vlgmr.msra.gmra.mxu0 %vm92_vm1, %v37_v3  ;;  %v48_v11 = vld [vmem:[%s5143_s2 + $0x20] sm:$0xff]  ;;  %v41_v12 = vld [vmem:[%s5142_s1 + $0x28] sm:$0xff]  ;;  %v42_v13 = vld [vmem:[%s5142_s1 + $0x30] sm:$0xff] }
   0x7   :  { %2980 = vset.pattern.permute.xlu1 %v3083_v5  ;;  %2832 = vmatprep.mubr.msk.f32.mxu0 %vm92_vm1, %v38_v4  ;;  %v47_v14 = vld [vmem:[%s5143_s2 + $0x18] sm:$0xff]  ;;  %v46_v15 = vld [vmem:[%s5143_s2 + $0x10] sm:$0xff] }
   0x8   :  { %89 = vperm.xlu0 %2979, %v51_v6   ;;  %79 = vperm.xlu1 %2980, %v49_v7  }
   0xa   :  { %2833 = vmatmul.mubr.msk.f32.gmra.mxu0 %vm92_vm1, %v39_v8 }
   0xb   :  { %2835 = vmatprep.mubr.msk.f32.mxu0 %vm92_vm1, %v40_v9 }
   0xc   :  { %84 = vperm.xlu0 %2979, %v50_v10   ;;  %74 = vperm.xlu1 %2980, %v48_v11  }
   0xe   :  { %2836 = vmatmul.mubr.msk.f32.gmra.mxu0 %vm92_vm1, %v41_v12 }
   0xf   :  { %16 = vsyncpa [#allocation4], 0  ;;  %2838 = vmatprep.mubr.msk.f32.mxu0 %vm92_vm1, %v42_v13  ;;  %v43_v16 = vld [vmem:[%s5142_s1 + $0x38] sm:$0xf]  ;;  %v45_v17 = vld [vmem:[%s5143_s2 + $0x8] sm:$0xff] }
  0x10   :  { %69 = vperm.xlu0 %2979, %v47_v14   ;;  %64 = vperm.xlu1 %2980, %v46_v15   ;;  %v44_v18 = vld [vmem:[%s5143_s2] sm:$0xff]  ;;  %v1073_v19 = vld [vmem:[%s5145_s4 + $0x38] sm:$0xf]  ;;  %v1072_v20 = vld [vmem:[%s5145_s4 + $0x30] sm:$0xff]  ;;  %v5185_v59 = vmov 920167782  }
  0x11   :  { %v1071_v21 = vld [vmem:[%s5145_s4 + $0x28] sm:$0xff]  ;;  %v1070_v22 = vld [vmem:[%s5145_s4 + $0x20] sm:$0xff]  ;;  %v1069_v23 = vld [vmem:[%s5145_s4 + $0x18] sm:$0xff]  ;;  %v5189_v62 = vmov 1326507024  }
  0x12   :  { %2839 = vmatmul.mubr.msk.f32.gmra.mxu0 %vm92_vm1, %v43_v16  ;;  %v1068_v24 = vld [vmem:[%s5145_s4 + $0x10] sm:$0xff]  ;;  %v1067_v25 = vld [vmem:[%s5145_s4 + $0x8] sm:$0xff]  ;;  %v1066_v26 = vld [vmem:[%s5145_s4] sm:$0xff]  ;;  %v5173_v2 = vmov 2102212464  }
  0x13   :  { %v2084_v27 = vld [vmem:[%s5147_s6] sm:$0xff]  ;;  %v2085_v28 = vld [vmem:[%s5147_s6 + $0x8] sm:$0xff]  ;;  %v2086_v29 = vld [vmem:[%s5147_s6 + $0x10] sm:$0xff]  ;;  %v5165_v5 = vmov 2475754826  }
  0x14   :  { %59 = vperm.xlu0 %2979, %v45_v17   ;;  %54 = vperm.xlu1 %2980, %v44_v18   ;;  %v2087_v30 = vld [vmem:[%s5147_s6 + $0x18] sm:$0xff]  ;;  %v2624_v31 = vld [vmem:[%s5148_s7] sm:$0xff]  ;;  %v2625_v32 = vld [vmem:[%s5148_s7 + $0x8] sm:$0xff]  ;;  %v5157_v7 = vmov 2131351028  }
  0x15   :  { %v2626_v33 = vld [vmem:[%s5148_s7 + $0x10] sm:$0xff]  ;;  %v2627_v34 = vld [vmem:[%s5148_s7 + $0x18] sm:$0xff]  ;;  %v2661_v35 = vld [vmem:[#allocation2] sm:$0x1]  ;;  %v5161_v13 = vmov 683565275  }
  0x18   :  { %1111 = vperm.xlu0 %2979, %v1073_v19   ;;  %1106 = vperm.xlu1 %2980, %v1072_v20  }
  0x1c   :  { %1101 = vperm.xlu0 %2979, %v1071_v21   ;;  %1096 = vperm.xlu1 %2980, %v1070_v22  }
  0x20   :  { %1091 = vperm.xlu0 %2979, %v1069_v23   ;;  %1086 = vperm.xlu1 %2980, %v1068_v24  }
  0x24   :  { %1081 = vperm.xlu0 %2979, %v1067_v25   ;;  %1076 = vperm.xlu1 %2980, %v1066_v26  }
  0x28   :  { %2090 = vperm.xlu0 %2979, %v2084_v27   ;;  %2095 = vperm.xlu1 %2980, %v2085_v28  }
  0x2c   :  { %2100 = vperm.xlu0 %2979, %v2086_v29   ;;  %2105 = vperm.xlu1 %2980, %v2087_v30  }
  0x30   :  { %2630 = vperm.xlu0 %2979, %v2624_v31   ;;  %2635 = vperm.xlu1 %2980, %v2625_v32  }
  0x34   :  { %2640 = vperm.xlu0 %2979, %v2626_v33   ;;  %2645 = vperm.xlu1 %2980, %v2627_v34  }
  0x38   :  { %2664 = vperm.xlu0 %2979, %v2661_v35  }
  0x83   :  { %v3251_v36 = vpop.permute.xlu0 %89  ;;  %v3253_v37 = vpop.permute.xlu1 %79 }
  0x87   :  { %v3255_v38 = vpop.permute.xlu0 %84  ;;  %v3257_v39 = vpop.permute.xlu1 %74 }
  0x8b   :  { %v70_v40 = vpop.permute.xlu0 %69  ;;  %v3259_v41 = vpop.permute.xlu1 %64 }
  0x8f   :  { %v60_v42 = vpop.permute.xlu0 %59  ;;  %v55_v48 = vpop.permute.xlu1 %54 }
  0xc6   :  { %v2831_v43 = vpop.f32.mrf.mxu0 }
  0xc7   :  { %v3261_v44 = vadd.f32 %v2831_v43, %v60_v42 }
  0xc8   :  { %v187_v46 = vpop.f32.mrf.mxu0 }
  0xc9   :  { %v333_v45 = vand.u32 2139095040, %v3261_v44  ;;  %v3264_v50 = vadd.f32 %v187_v46, %v55_v48  ;;  %v5152_v0 = vand.u32 2147483647, %v3261_v44 }
  0xca   :  { %v2834_v55 = vpop.f32.mrf.mxu0 }
  0xcb   :  { %v334_v47 = vshrl.u32 %v333_v45, 23  ;;  %5208 = vst [vmem:[#allocation6_spill] sm:$0xff] %v3264_v50  ;;  %v229_v52 = vand.u32 2139095040, %v3264_v50  ;;  %v3267_v58 = vadd.f32 %v2834_v55, %v70_v40  ;;  %v337_v18 = vand.u32 8388607, %v5152_v0 }
  0xcc   :  { %v197_v32 = vpop.f32.mrf.mxu0  ;;  %v5151_v33 = vand.u32 2147483647, %v3264_v50 }
  0xcd   :  { %v2700_v49 = vadd.s32 4294967169, %v334_v47  ;;  %v230_v57 = vshrl.u32 %v229_v52, 23  ;;  %v541_v4 = vand.u32 2139095040, %v3267_v58  ;;  %v338_v26 = vor.u32 8388608, %v337_v18 }
  0xce   :  { %v3307_v45 = vadd.f32 %v197_v32, %v3259_v41  ;;  %v233_v48 = vand.u32 8388607, %v5151_v33 }
  0xcf   :  { %v340_v51 = vadd.s32 1, %v2700_v49  ;;  %v2696_v61 = vadd.s32 4294967169, %v230_v57  ;;  %v542_v19 = vshrl.u32 %v541_v4, 23  ;;  %v378_v43 = vshll.u32 %v338_v26, 8 }
  0xd0   :  { %5209 = vst [vmem:[#allocation7_spill] sm:$0xff] %v3307_v45  ;;  %v5154_v49 = vand.u32 2147483647, %v3267_v58 }
  0xd1   :  { %vm341_vm2 = vcmp.gt.s32.totalorder %v340_v51, 0  ;;  %v236_v12 = vadd.s32 1, %v2696_v61  ;;  %v2708_v25 = vadd.s32 4294967169, %v542_v19 }
  0xd2   :  { %v342_v53 = vsel %vm341_vm2, %v340_v51, 0 }
  0xd3   :  { %v344_v54 = vand.u32 31, %v342_v53  ;;  %v3272_v1 = vshrl.u32 %v342_v53, 5  ;;  %vm237_vm4 = vcmp.gt.s32.totalorder %v236_v12, 0  ;;  %v548_v40 = vadd.s32 1, %v2708_v25 }
  0xd4   :  { %v238_v29 = vsel %vm237_vm4, %v236_v12, 0 }
  0xd5   :  { %v345_v56 = vsub.s32 32, %v344_v54  ;;  %v356_v3 = vshll.u32 %v5173_v2, %v344_v54  ;;  %v359_v10 = vshll.u32 %v5185_v59, %v344_v54  ;;  %v347_v14 = vshll.u32 %v5161_v13, %v344_v54 }
  0xd6   :  { %v350_v15 = vshll.u32 %v5165_v5, %v344_v54  ;;  %v353_v16 = vshll.u32 %v5157_v7, %v344_v54  ;;  %vm365_vm3 = vcmp.lt.s32.totalorder %v3272_v1, 4  ;;  %vm362_vm5 = vcmp.lt.s32.totalorder %v3272_v1, 1 }
  0xd7   :  { %v357_v60 = vshrl.u32 %v5185_v59, %v345_v56  ;;  %v360_v63 = vshrl.u32 %v5189_v62, %v345_v56  ;;  %v348_v6 = vshrl.u32 %v5165_v5, %v345_v56  ;;  %v351_v8 = vshrl.u32 %v5157_v7, %v345_v56 }
  0xd8   :  { %v354_v9 = vshrl.u32 %v5173_v2, %v345_v56  ;;  %vm364_vm6 = vcmp.lt.s32.totalorder %v3272_v1, 3  ;;  %vm363_vm7 = vcmp.lt.s32.totalorder %v3272_v1, 2  ;;  %v240_v35 = vand.u32 31, %v238_v29 }
  0xd9   :  { %v358_v11 = vor.u32 %v357_v60, %v356_v3  ;;  %v361_v17 = vor.u32 %v360_v63, %v359_v10  ;;  %v349_v20 = vor.u32 %v348_v6, %v347_v14  ;;  %v352_v21 = vor.u32 %v351_v8, %v350_v15 }
  0xda   :  { %v355_v22 = vor.u32 %v354_v9, %v353_v16  ;;  %v3319_v53 = vsub.s32 32, %v240_v35  ;;  %vm549_vm8 = vcmp.gt.s32.totalorder %v548_v40, 0  ;;  %v5153_v54 = vand.u32 2147483647, %v3307_v45 }
  0xdb   :  { %v371_v23 = vsel %vm365_vm3, %v358_v11, 920167782  ;;  %v375_v24 = vsel %vm365_vm3, %v361_v17, 1326507024  ;;  %v370_v27 = vsel %vm362_vm5, %v349_v20, %v352_v21  ;;  %v346_v41 = vshrl.u32 %v5161_v13, %v345_v56 }
  0xdc   :  { %v372_v28 = vsel %vm364_vm6, %v355_v22, %v371_v23  ;;  %v374_v30 = vsel %vm362_vm5, %v352_v21, %v355_v22  ;;  %v376_v31 = vsel %vm364_vm6, %v358_v11, %v375_v24  ;;  %v367_v55 = vsel %vm365_vm3, %v355_v22, 2102212464 }
  0xdd   :  { %v373_v34 = vsel %vm363_vm7, %v370_v27, %v372_v28  ;;  %v377_v42 = vsel %vm363_vm7, %v374_v30, %v376_v31  ;;  %v550_v57 = vsel %vm549_vm8, %v548_v40, 0  ;;  %v234_v60 = vor.u32 8388608, %v233_v48 }
  0xde   :  { %v3309_v46 = vmul.u32.u64.low %v378_v43, %v373_v34  ;;  %v3310_v47 = vmul.u32.u64.high %v378_v43, %v373_v34, %v3309_v46  ;;  %v3316_v51 = vmul.u32.u64.low %v378_v43, %v377_v42  ;;  %v3317_v52 = vmul.u32.u64.high %v378_v43, %v377_v42, %v3316_v51 }
  0xdf   :  { %v253_v61 = vshrl.u32 %v5185_v59, %v3319_v53  ;;  %v3329_v63 = vand.u32 8388607, %v5154_v49  ;;  %v437_v3 = vand.u32 2139095040, %v3307_v45  ;;  %v366_v4 = vsel %vm362_vm5, %v346_v41, %v349_v20 }
  0xe0   :  { %v3334_v6 = vshrl.u32 %v238_v29, 5  ;;  %v256_v56 = vshrl.u32 %v5189_v62, %v3319_v53  ;;  %v3340_v8 = vand.u32 8388607, %v5153_v54  ;;  %v368_v9 = vsel %vm364_vm6, %v352_v21, %v367_v55 }
  0xe1   :  { %v244_v10 = vshrl.u32 %v5165_v5, %v3319_v53  ;;  %v252_v11 = vshll.u32 %v5173_v2, %v240_v35  ;;  %v552_v12 = vand.u32 31, %v550_v57  ;;  %v388_v14 = vadd.s32 1, %v3310_v47 }
  0xe2   :  { %v247_v15 = vshrl.u32 %v5157_v7, %v3319_v53  ;;  %v250_v16 = vshrl.u32 %v5173_v2, %v3319_v53  ;;  %v255_v17 = vshll.u32 %v5185_v59, %v240_v35  ;;  %vm387_vm9 = vc.u32 %v3317_v52, %v3309_v46 }
  0xe3   :  { %v243_v18 = vshll.u32 %v5161_v13, %v240_v35  ;;  %v254_v19 = vor.u32 %v253_v61, %v252_v11  ;;  %v438_v20 = vshrl.u32 %v437_v3, 23  ;;  %v369_v21 = vsel %vm363_vm7, %v366_v4, %v368_v9 }
  0xe4   :  { %v246_v22 = vshll.u32 %v5165_v5, %v240_v35  ;;  %v249_v23 = vshll.u32 %v5157_v7, %v240_v35  ;;  %v257_v24 = vor.u32 %v256_v56, %v255_v17  ;;  %v3360_v26 = vsub.s32 32, %v552_v12 }
  0xe5   :  { %v245_v25 = vor.u32 %v244_v10, %v243_v18  ;;  %v389_v27 = vsel %vm387_vm9, %v388_v14, %v3310_v47  ;;  %vm261_vm10 = vcmp.lt.s32.totalorder %v3334_v6, 4  ;;  %v385_v30 = vmul.u32 %v378_v43, %v369_v21  ;;  %v2837_v10 = vpop.f32.mrf.mxu0 }
  0xe6   :  { %v3363_v28 = vor.u32 %v247_v15, %v246_v22  ;;  %v251_v29 = vor.u32 %v250_v16, %v249_v23  ;;  %v267_v1 = vsel %vm261_vm10, %v254_v19, 920167782  ;;  %v3368_v31 = vshll.u32 %v234_v60, 8 }
  0xe7   :  { %v2704_v32 = vadd.s32 4294967169, %v438_v20  ;;  %vm258_vm11 = vcmp.lt.s32.totalorder %v3334_v6, 1  ;;  %v271_v34 = vsel %vm261_vm10, %v257_v24, 1326507024  ;;  %v546_v35 = vor.u32 8388608, %v3329_v63 }
  0xe8   :  { %v442_v40 = vor.u32 8388608, %v3340_v8  ;;  %v3375_v42 = vadd.s32 %v389_v27, %v385_v30  ;;  %vm259_vm12 = vcmp.lt.s32.totalorder %v3334_v6, 2  ;;  %vm260_vm13 = vcmp.lt.s32.totalorder %v3334_v6, 3 }
  0xe9   :  { %v565_v43 = vshrl.u32 %v5185_v59, %v3360_v26  ;;  %v266_v47 = vsel %vm258_vm11, %v245_v25, %v3363_v28  ;;  %v268_v48 = vsel %vm260_vm13, %v251_v29, %v267_v1  ;;  %v270_v51 = vsel %vm258_vm11, %v3363_v28, %v251_v29 }
  0xea   :  { %v568_v41 = vshrl.u32 %v5189_v62, %v3360_v26  ;;  %v272_v55 = vsel %vm260_vm13, %v254_v19, %v271_v34  ;;  %v3393_v60 = vshrl.u32 %v550_v57, 5  ;;  %v564_v61 = vshll.u32 %v5173_v2, %v552_v12 }
  0xeb   :  { %v444_v63 = vadd.s32 1, %v2704_v32  ;;  %v556_v3 = vshrl.u32 %v5165_v5, %v3360_v26  ;;  %v559_v4 = vshrl.u32 %v5157_v7, %v3360_v26  ;;  %v562_v56 = vshrl.u32 %v5173_v2, %v3360_v26 }
  0xec   :  { %v567_v9 = vshll.u32 %v5185_v59, %v552_v12  ;;  %v391_v11 = vadd.s32 536870912, %v3375_v42  ;;  %v555_v57 = vshll.u32 %v5161_v13, %v552_v12  ;;  %v566_v14 = vor.u32 %v565_v43, %v564_v61 }
  0xed   :  { %vm445_vm14 = vcmp.gt.s32.totalorder %v444_v63, 0  ;;  %v558_v15 = vshll.u32 %v5165_v5, %v552_v12  ;;  %v561_v16 = vshll.u32 %v5157_v7, %v552_v12  ;;  %v269_v19 = vsel %vm259_vm12, %v266_v47, %v268_v48 }
  0xee   :  { %v569_v17 = vor.u32 %v568_v41, %v567_v9  ;;  %v446_v18 = vsel %vm445_vm14, %v444_v63, 0  ;;  %v273_v20 = vsel %vm259_vm12, %v270_v51, %v272_v55  ;;  %v3412_v22 = vadd.f32 %v2837_v10, %v3253_v37 }
  0xef   :  { %v448_v21 = vand.u32 31, %v446_v18  ;;  %v3414_v23 = vor.u32 %v556_v3, %v555_v57  ;;  %v3416_v24 = vor.u32 %v559_v4, %v558_v15  ;;  %v563_v27 = vor.u32 %v562_v56, %v561_v16 }
  0xf0   :  { %vm573_vm15 = vcmp.lt.s32.totalorder %v3393_v60, 4  ;;  %v3419_v12 = vshrl.u32 %v391_v11, 30  ;;  %v242_v30 = vshrl.u32 %v5161_v13, %v3319_v53  ;;  %v3425_v32 = vshll.u32 %v546_v35, 8 }
  0xf1   :  { %v579_v1 = vsel %vm573_vm15, %v566_v14, 920167782  ;;  %v3428_v37 = vmul.u32.u64.low %v3368_v31, %v269_v19  ;;  %v3429_v34 = vmul.u32.u64.high %v3368_v31, %v269_v19, %v3428_v37  ;;  %v583_v43 = vsel %vm573_vm15, %v569_v17, 1326507024 }
  0xf2   :  { %5210 = vst [vmem:[#allocation8_spill] sm:$0xff] %v3419_v12  ;;  %v3434_v47 = vsub.s32 32, %v448_v21  ;;  %v3437_v48 = vmul.u32.u64.low %v3368_v31, %v273_v20  ;;  %v3438_v51 = vmul.u32.u64.high %v3368_v31, %v273_v20, %v3437_v48  ;;  %vm570_vm0 = vcmp.lt.s32.totalorder %v3393_v60, 1 }
  0xf3   :  { %vm572_vm1 = vcmp.lt.s32.totalorder %v3393_v60, 3  ;;  %v262_v53 = vsel %vm258_vm11, %v242_v30, %v245_v25  ;;  %v578_v35 = vsel %vm570_vm0, %v3414_v23, %v3416_v24  ;;  %v749_v55 = vand.u32 2139095040, %v3412_v22 }
  0xf4   :  { %v580_v41 = vsel %vm572_vm1, %v563_v27, %v579_v1  ;;  %v393_v61 = vshll.u32 %v3419_v12, 30  ;;  %v263_v63 = vsel %vm261_vm10, %v251_v29, 2102212464  ;;  %v582_v3 = vsel %vm570_vm0, %v3416_v24, %v563_v27 }
  0xf5   :  { %v584_v25 = vsel %vm572_vm1, %v566_v14, %v583_v43  ;;  %vm571_vm2 = vcmp.lt.s32.totalorder %v3393_v60, 2  ;;  %v452_v4 = vshrl.u32 %v5165_v5, %v3434_v47  ;;  %v460_v56 = vshll.u32 %v5173_v2, %v448_v21 }
  0xf6   :  { %v461_v9 = vshrl.u32 %v5185_v59, %v3434_v47  ;;  %v581_v29 = vsel %vm571_vm2, %v578_v35, %v580_v41  ;;  %v3467_v10 = vshrl.u32 %v446_v18, 5  ;;  %v455_v11 = vshrl.u32 %v5157_v7, %v3434_v47 }
  0xf7   :  { %v458_v57 = vshrl.u32 %v5173_v2, %v3434_v47  ;;  %v585_v14 = vsel %vm571_vm2, %v582_v3, %v584_v25  ;;  %v451_v15 = vshll.u32 %v5161_v13, %v448_v21  ;;  %v750_v17 = vshrl.u32 %v749_v55, 23 }
  0xf8   :  { %v462_v16 = vor.u32 %v461_v9, %v460_v56  ;;  %v454_v19 = vshll.u32 %v5165_v5, %v448_v21  ;;  %v457_v20 = vshll.u32 %v5157_v7, %v448_v21  ;;  %v463_v18 = vshll.u32 %v5185_v59, %v448_v21 }
  0xf9   :  { %v464_v30 = vshrl.u32 %v5189_v62, %v3434_v47  ;;  %v264_v1 = vsel %vm260_vm13, %v3363_v28, %v263_v63  ;;  %v3485_v43 = vmul.u32.u64.low %v3425_v32, %v581_v29  ;;  %v3486_v48 = vmul.u32.u64.high %v3425_v32, %v581_v29, %v3485_v43 }
  0xfa   :  { %v453_v35 = vor.u32 %v452_v4, %v451_v15  ;;  %v456_v41 = vor.u32 %v455_v11, %v454_v19  ;;  %v459_v55 = vor.u32 %v458_v57, %v457_v20  ;;  %vm469_vm3 = vcmp.lt.s32.totalorder %v3467_v10, 4 }
  0xfb   :  { %v465_v3 = vor.u32 %v464_v30, %v463_v18  ;;  %v3491_v21 = vmul.u32.u64.low %v3425_v32, %v585_v14  ;;  %v3492_v25 = vmul.u32.u64.high %v3425_v32, %v585_v14, %v3491_v21  ;;  %v475_v56 = vsel %vm469_vm3, %v462_v16, 920167782 }
  0xfc   :  { %v2716_v9 = vadd.s32 4294967169, %v750_v17  ;;  %v3497_v28 = vsub.s32 %v3375_v42, %v393_v61  ;;  %v265_v63 = vsel %vm259_vm12, %v262_v53, %v264_v1  ;;  %v284_v4 = vadd.s32 1, %v3429_v34 }
  0xfd   :  { %v554_v29 = vshrl.u32 %v5161_v13, %v3360_v26  ;;  %v575_v11 = vsel %vm573_vm15, %v563_v27, 2102212464  ;;  %vm466_vm4 = vcmp.lt.s32.totalorder %v3467_v10, 1  ;;  %vm468_vm5 = vcmp.lt.s32.totalorder %v3467_v10, 3 }
  0xfe   :  { %v479_v57 = vsel %vm469_vm3, %v465_v3, 1326507024  ;;  %v474_v42 = vsel %vm466_vm4, %v453_v35, %v456_v41  ;;  %v476_v6 = vsel %vm468_vm5, %v459_v55, %v475_v56  ;;  %v478_v53 = vsel %vm466_vm4, %v456_v41, %v459_v55  ;;  %v207_v3 = vpop.f32.mrf.mxu0 }
  0xff   :  { %v480_v26 = vsel %vm468_vm5, %v462_v16, %v479_v57  ;;  %vm283_vm6 = vc.u32 %v3438_v51, %v3428_v37  ;;  %v756_v27 = vadd.s32 1, %v2716_v9  ;;  %v281_v61 = vmul.u32 %v3368_v31, %v265_v63 }
 0x100   :  { %v574_v14 = vsel %vm570_vm0, %v554_v29, %v3414_v23  ;;  %v576_v15 = vsel %vm572_vm1, %v3416_v24, %v575_v11  ;;  %vm467_vm7 = vcmp.lt.s32.totalorder %v3467_v10, 2  ;;  %v396_v17 = vsub.s32 0, %v3497_v28 }
 0x101   :  { %v477_v16 = vsel %vm467_vm7, %v474_v42, %v476_v6  ;;  %v481_v19 = vsel %vm467_vm7, %v478_v53, %v480_v26  ;;  %vm757_vm8 = vcmp.gt.s32.totalorder %v756_v27, 0  ;;  %v285_v31 = vsel %vm283_vm6, %v284_v4, %v3429_v34 }
 0x102   :  { %v3536_v23 = vshll.u32 %v442_v40, 8  ;;  %v5156_v20 = vand.u32 2147483647, %v3412_v22  ;;  %v758_v24 = vsel %vm757_vm8, %v756_v27, 0  ;;  %v577_v18 = vsel %vm571_vm2, %v574_v14, %v576_v15 }
 0x103   :  { %vm595_vm9 = vc.u32 %v3492_v25, %v3485_v43  ;;  %v596_v30 = vadd.s32 1, %v3486_v48  ;;  %v760_v1 = vand.u32 31, %v758_v24  ;;  %v3554_v56 = vmin.u32 %v396_v17, %v3497_v28 }
 0x104   :  { %v3545_v21 = vmul.u32.u64.low %v3536_v23, %v481_v19  ;;  %v3546_v34 = vmul.u32.u64.high %v3536_v23, %v481_v19, %v3545_v21  ;;  %v3549_v8 = vmul.u32.u64.low %v3536_v23, %v477_v16  ;;  %v3550_v40 = vmul.u32.u64.high %v3536_v23, %v477_v16, %v3549_v8 }
 0x105   :  { %v3556_v60 = vadd.s32 %v285_v31, %v281_v61  ;;  %v450_v9 = vshrl.u32 %v5161_v13, %v3434_v47  ;;  %v761_v63 = vsub.s32 32, %v760_v1  ;;  %v593_v4 = vmul.u32 %v3425_v32, %v577_v18 }
 0x106   :  { %v471_v29 = vsel %vm469_vm3, %v459_v55, 2102212464  ;;  %v753_v11 = vand.u32 8388607, %v5156_v20  ;;  %v3566_v57 = vadd.f32 %v207_v3, %v3257_v39  ;;  %v597_v42 = vsel %vm595_vm9, %v596_v30, %v3486_v48 }
 0x107   :  { %v470_v6 = vsel %vm466_vm4, %v450_v9, %v453_v35  ;;  %v764_v53 = vshrl.u32 %v5165_v5, %v761_v63  ;;  %v767_v47 = vshrl.u32 %v5157_v7, %v761_v63  ;;  %v763_v32 = vshll.u32 %v5161_v13, %v760_v1 }
 0x108   :  { %5211 = vst [vmem:[#allocation9_spill] sm:$0xff] %v3566_v57  ;;  %v766_v26 = vshll.u32 %v5165_v5, %v760_v1  ;;  %v769_v55 = vshll.u32 %v5157_v7, %v760_v1  ;;  %v770_v27 = vshrl.u32 %v5173_v2, %v761_v63  ;;  %v472_v39 = vsel %vm468_vm5, %v456_v41, %v471_v29 }
 0x109   :  { %v759_v61 = vshrl.u32 %v758_v24, 5  ;;  %v772_v48 = vshll.u32 %v5173_v2, %v760_v1  ;;  %v773_v35 = vshrl.u32 %v5185_v59, %v761_v63  ;;  %v3581_v14 = vadd.s32 %v597_v42, %v593_v4 }
 0x10a   :  { %v765_v15 = vor.u32 %v764_v53, %v763_v32  ;;  %v768_v17 = vor.u32 %v767_v47, %v766_v26  ;;  %v771_v16 = vor.u32 %v770_v27, %v769_v55  ;;  %v754_v19 = vor.u32 8388608, %v753_v11 }
 0x10b   :  { %v774_v31 = vor.u32 %v773_v35, %v772_v48  ;;  %v775_v18 = vshll.u32 %v5185_v59, %v760_v1  ;;  %v776_v30 = vshrl.u32 %v5189_v62, %v761_v63  ;;  %v473_v3 = vsel %vm467_vm7, %v470_v6, %v472_v39  ;;  %v2840_v39 = vpop.f32.mrf.mxu0 }
 0x10c   :  { %vm491_vm10 = vc.u32 %v3546_v34, %v3549_v8  ;;  %v492_v41 = vadd.s32 1, %v3550_v40  ;;  %v645_v24 = vand.u32 2139095040, %v3566_v57  ;;  %v762_v21 = vshrl.u32 %v5161_v13, %v761_v63 }
 0x10d   :  { %v777_v9 = vor.u32 %v776_v30, %v775_v18  ;;  %vm778_vm11 = vcmp.lt.s32.totalorder %v759_v61, 1  ;;  %vm781_vm12 = vcmp.lt.s32.totalorder %v759_v61, 4  ;;  %vm780_vm13 = vcmp.lt.s32.totalorder %v759_v61, 3 }
 0x10e   :  { %v783_v4 = vsel %vm781_vm12, %v771_v16, 2102212464  ;;  %v786_v1 = vsel %vm778_vm11, %v765_v15, %v768_v17  ;;  %v787_v29 = vsel %vm781_vm12, %v774_v31, 920167782  ;;  %vm779_vm14 = vcmp.lt.s32.totalorder %v759_v61, 2 }
 0x10f   :  { %v788_v11 = vsel %vm780_vm13, %v771_v16, %v787_v29  ;;  %v790_v10 = vsel %vm778_vm11, %v768_v17, %v771_v16  ;;  %v794_v42 = vshll.u32 %v754_v19, 8  ;;  %v493_v6 = vsel %vm491_vm10, %v492_v41, %v3550_v40 }
 0x110   :  { %v782_v53 = vsel %vm778_vm11, %v762_v21, %v765_v15  ;;  %v789_v47 = vsel %vm779_vm14, %v786_v1, %v788_v11  ;;  %v791_v32 = vsel %vm781_vm12, %v777_v9, 1326507024  ;;  %v784_v26 = vsel %vm780_vm13, %v768_v17, %v783_v4  ;;  %v217_v9 = vpop.f32.mrf.mxu0 }
 0x111   :  { %v792_v55 = vsel %vm780_vm13, %v774_v31, %v791_v32  ;;  %v3594_v63 = vmul.u32.u64.low %v794_v42, %v789_v47  ;;  %v3595_v27 = vmul.u32.u64.high %v794_v42, %v789_v47, %v3594_v63  ;;  %v287_v48 = vadd.s32 536870912, %v3556_v60 }
 0x112   :  { %v489_v35 = vmul.u32 %v3536_v23, %v473_v3  ;;  %v793_v16 = vsel %vm779_vm14, %v790_v10, %v792_v55  ;;  %v646_v19 = vshrl.u32 %v645_v24, 23  ;;  %v599_v40 = vadd.s32 536870912, %v3581_v14 }
 0x113   :  { %v3602_v15 = vmul.u32.u64.low %v794_v42, %v793_v16  ;;  %v3603_v18 = vmul.u32.u64.high %v794_v42, %v793_v16, %v3602_v15  ;;  %v785_v17 = vsel %vm779_vm14, %v782_v53, %v784_v26  ;;  %v804_v41 = vadd.s32 1, %v3595_v27 }
 0x114   :  { %v3605_v30 = vadd.s32 %v493_v6, %v489_v35  ;;  %v2712_v31 = vadd.s32 4294967169, %v646_v19  ;;  %v3610_v21 = vadd.f32 %v2840_v39, %v3251_v36  ;;  %v398_v23 = vclz %v3554_v56 }
 0x115   :  { %v3613_v3 = vshrl.u32 %v287_v48, 30  ;;  %v3615_v4 = vshrl.u32 %v599_v40, 30  ;;  %v801_v1 = vmul.u32 %v794_v42, %v785_v17  ;;  %vm803_vm15 = vc.u32 %v3603_v18, %v3594_v63 }
 0x116   :  { %5212 = vst [vmem:[#allocation10_spill] sm:$0xff] %v3610_v21  ;;  %v652_v24 = vadd.s32 1, %v2712_v31  ;;  %v5155_v61 = vand.u32 2147483647, %v3566_v57  ;;  %v495_v29 = vadd.s32 536870912, %v3605_v30  ;;  %v805_v11 = vsel %vm803_vm15, %v804_v41, %v3595_v27 }
 0x117   :  { %5213 = vst [vmem:[#allocation11_spill] sm:$0xff] %v3613_v3  ;;  %5214 = vst [vmem:[#allocation12_spill] sm:$0xff] %v3615_v4  ;;  %v3623_v36 = vadd.f32 %v217_v9, %v3255_v38  ;;  %v806_v56 = vadd.s32 %v805_v11, %v801_v1  ;;  %v957_v6 = vand.u32 2139095040, %v3610_v21  ;;  %v2702_v47 = vadd.s32 4294967294, %v398_v23 }
 0x118   :  { %vm653_vm0 = vcmp.gt.s32.totalorder %v652_v24, 0  ;;  %v289_v42 = vshll.u32 %v3613_v3, 30  ;;  %v601_v32 = vshll.u32 %v3615_v4, 30  ;;  %v3628_v55 = vshrl.u32 %v495_v29, 30 }
 0x119   :  { %v654_v10 = vsel %vm653_vm0, %v652_v24, 0  ;;  %v807_v26 = vadd.s32 536870912, %v806_v56  ;;  %v649_v27 = vand.u32 8388607, %v5155_v61  ;;  %v853_v38 = vand.u32 2139095040, %v3623_v36 }
 0x11a   :  { %v656_v53 = vand.u32 31, %v654_v10  ;;  %5215 = vst [vmem:[#allocation13_spill] sm:$0xff] %v3628_v55  ;;  %v958_v19 = vshrl.u32 %v957_v6, 23  ;;  %vm2703_vm1 = vcmp.lt.s32.totalorder %v2702_v47, 0  ;;  %v655_v9 = vshrl.u32 %v654_v10, 5 }
 0x11b   :  { %v3633_v48 = vshrl.u32 %v807_v26, 30  ;;  %v3645_v1 = vsub.s32 %v3556_v60, %v289_v42  ;;  %v3648_v26 = vsub.s32 %v3581_v14, %v601_v32  ;;  %v497_v33 = vshll.u32 %v3628_v55, 30 }
 0x11c   :  { %v657_v39 = vsub.s32 32, %v656_v53  ;;  %v659_v35 = vshll.u32 %v5161_v13, %v656_v53  ;;  %v662_v16 = vshll.u32 %v5165_v5, %v656_v53  ;;  %v665_v17 = vshll.u32 %v5157_v7, %v656_v53 }
 0x11d   :  { %5216 = vst [vmem:[#allocation14_spill] sm:$0xff] %v3633_v48  ;;  %v809_v41 = vshll.u32 %v3633_v48, 30  ;;  %v668_v23 = vshll.u32 %v5173_v2, %v656_v53  ;;  %v650_v0 = vor.u32 8388608, %v649_v27  ;;  %v671_v49 = vshll.u32 %v5185_v59, %v656_v53 }
 0x11e   :  { %v660_v40 = vshrl.u32 %v5165_v5, %v657_v39  ;;  %v663_v15 = vshrl.u32 %v5157_v7, %v657_v39  ;;  %v666_v31 = vshrl.u32 %v5173_v2, %v657_v39  ;;  %v669_v24 = vshrl.u32 %v5185_v59, %v657_v39 }
 0x11f   :  { %v672_v10 = vshrl.u32 %v5189_v62, %v657_v39  ;;  %v2724_v61 = vadd.s32 4294967169, %v958_v19  ;;  %v854_v20 = vshrl.u32 %v853_v38, 23  ;;  %v3653_v7 = vsub.s32 %v806_v56, %v809_v41 }
 0x120   :  { %v661_v29 = vor.u32 %v660_v40, %v659_v35  ;;  %v664_v11 = vor.u32 %v663_v15, %v662_v16  ;;  %v667_v6 = vor.u32 %v666_v31, %v665_v17  ;;  %v670_v54 = vor.u32 %v669_v24, %v668_v23 }
 0x121   :  { %vm674_vm2 = vcmp.lt.s32.totalorder %v655_v9, 1  ;;  %vm676_vm3 = vcmp.lt.s32.totalorder %v655_v9, 3  ;;  %vm677_vm4 = vcmp.lt.s32.totalorder %v655_v9, 4  ;;  %v673_v60 = vor.u32 %v672_v10, %v671_v49 }
 0x122   :  { %v679_v42 = vsel %vm677_vm4, %v667_v6, 2102212464  ;;  %v682_v14 = vsel %vm674_vm2, %v661_v29, %v664_v11  ;;  %v683_v32 = vsel %vm677_vm4, %v670_v54, 920167782  ;;  %v658_v35 = vshrl.u32 %v5161_v13, %v657_v39 }
 0x123   :  { %vm675_vm5 = vcmp.lt.s32.totalorder %v655_v9, 2  ;;  %v684_v27 = vsel %vm676_vm3, %v667_v6, %v683_v32  ;;  %v690_v53 = vshll.u32 %v650_v0, 8  ;;  %v686_v38 = vsel %vm674_vm2, %v664_v11, %v667_v6 }
 0x124   :  { %v685_v16 = vsel %vm675_vm5, %v682_v14, %v684_v27  ;;  %v687_v56 = vsel %vm677_vm4, %v673_v60, 1326507024  ;;  %v2720_v19 = vadd.s32 4294967169, %v854_v20  ;;  %v812_v40 = vsub.s32 0, %v3653_v7 }
 0x125   :  { %v678_v49 = vsel %vm674_vm2, %v658_v35, %v661_v29  ;;  %v680_v15 = vsel %vm676_vm3, %v664_v11, %v679_v42  ;;  %v688_v17 = vsel %vm676_vm3, %v670_v54, %v687_v56  ;;  %v964_v0 = vadd.s32 1, %v2724_v61 }
 0x126   :  { %v689_v39 = vsel %vm675_vm5, %v686_v38, %v688_v17  ;;  %v3665_v31 = vmul.u32.u64.low %v690_v53, %v685_v16  ;;  %v3666_v41 = vmul.u32.u64.high %v690_v53, %v685_v16, %v3665_v31  ;;  %v3673_v20 = vsel %vm2703_vm1, 0, %v2702_v47 }
 0x127   :  { %v3669_v23 = vmul.u32.u64.low %v690_v53, %v689_v39  ;;  %v3670_v24 = vmul.u32.u64.high %v690_v53, %v689_v39, %v3669_v23  ;;  %v292_v6 = vsub.s32 0, %v3645_v1  ;;  %v604_v29 = vsub.s32 0, %v3648_v26 }
 0x128   :  { %vm965_vm6 = vcmp.gt.s32.totalorder %v964_v0, 0  ;;  %v3678_v54 = vsub.s32 %v3605_v30, %v497_v33  ;;  %v2717_v11 = vmin.u32 %v812_v40, %v3653_v7  ;;  %v681_v10 = vsel %vm675_vm5, %v678_v49, %v680_v15 }
 0x129   :  { %v5160_v61 = vand.u32 2147483647, %v3623_v36  ;;  %v700_v60 = vadd.s32 1, %v3666_v41  ;;  %v860_v42 = vadd.s32 1, %v2720_v19  ;;  %v386_v47 = vadd.s32 %v3309_v46, %v3317_v52 }
 0x12a   :  { %v402_v14 = vsub.s32 32, %v3673_v20  ;;  %v406_v32 = vsub.s32 4294967266, %v3673_v20  ;;  %v966_v35 = vsel %vm965_vm6, %v964_v0, 0  ;;  %v3689_v33 = vmin.u32 %v292_v6, %v3645_v1 }
 0x12b   :  { %v3692_v30 = vmin.u32 %v604_v29, %v3648_v26  ;;  %v697_v9 = vmul.u32 %v690_v53, %v681_v10  ;;  %vm699_vm7 = vc.u32 %v3670_v24, %v3665_v31  ;;  %v500_v27 = vsub.s32 0, %v3678_v54 }
 0x12c   :  { %v814_v16 = vclz %v2717_v11  ;;  %v701_v46 = vsel %vm699_vm7, %v700_v60, %v3666_v41  ;;  %v857_v52 = vand.u32 8388607, %v5160_v61  ;;  %v3700_v56 = vand.u32 31, %v966_v35 }
 0x12d   :  { %v702_v38 = vadd.s32 %v701_v46, %v697_v9  ;;  %vm861_vm8 = vcmp.gt.s32.totalorder %v860_v42, 0  ;;  %v5159_v19 = vand.u32 2147483647, %v3610_v21  ;;  %v3705_v40 = vshrl.u32 %v386_v47, %v402_v14 }
 0x12e   :  { %v862_v49 = vsel %vm861_vm8, %v860_v42, 0  ;;  %v3707_v15 = vadd.s32 127, %v406_v32  ;;  %v3712_v0 = vmin.u32 %v500_v27, %v3678_v54  ;;  %v3714_v23 = vadd.s32 4294967294, %v814_v16 }
 0x12f   :  { %v703_v41 = vadd.s32 536870912, %v702_v38  ;;  %v858_v6 = vor.u32 8388608, %v857_v52  ;;  %v864_v29 = vand.u32 31, %v862_v49  ;;  %v3718_v10 = vshrl.u32 %v966_v35, 5 }
 0x130   :  { %v3721_v60 = vsub.s32 32, %v3700_v56  ;;  %v3725_v42 = vand.u32 8388607, %v5159_v19  ;;  %v980_v47 = vshll.u32 %v5173_v2, %v3700_v56  ;;  %v3731_v14 = vshll.u32 %v5185_v59, %v3700_v56 }
 0x131   :  { %v3716_v11 = vshrl.u32 %v703_v41, 30  ;;  %v863_v32 = vshrl.u32 %v862_v49, 5  ;;  %v865_v9 = vsub.s32 32, %v864_v29  ;;  %v867_v35 = vshll.u32 %v5161_v13, %v864_v29 }
 0x132   :  { %v870_v16 = vshll.u32 %v5165_v5, %v864_v29  ;;  %v5218_v46 = vmov 2131351028   ;;  %v876_v61 = vshll.u32 %v5173_v2, %v864_v29  ;;  %v879_v53 = vshll.u32 %v5185_v59, %v864_v29 }
 0x133   :  { %5217 = vst [vmem:[#allocation15_spill] sm:$0xff] %v3716_v11  ;;  %v705_v27 = vshll.u32 %v3716_v11, 30  ;;  %v873_v52 = vshll.u32 %v5218_v46, %v864_v29  ;;  %v868_v41 = vshrl.u32 %v5165_v5, %v865_v9  ;;  %v871_v19 = vshrl.u32 %v5218_v46, %v865_v9 }
 0x134   :  { %v874_v49 = vshrl.u32 %v5173_v2, %v865_v9  ;;  %v877_v39 = vshrl.u32 %v5185_v59, %v865_v9  ;;  %v880_v13 = vshrl.u32 %v5189_v62, %v865_v9  ;;  %vm2719_vm9 = vcmp.lt.s32.totalorder %v3714_v23, 0 }
 0x135   :  { %v3741_v17 = vsub.s32 %v702_v38, %v705_v27  ;;  %v981_v3 = vshrl.u32 %v5185_v59, %v3721_v60  ;;  %v984_v5 = vshrl.u32 %v5189_v62, %v3721_v60  ;;  %v869_v12 = vor.u32 %v868_v41, %v867_v35 }
 0x136   :  { %v872_v55 = vor.u32 %v871_v19, %v870_v16  ;;  %v875_v38 = vor.u32 %v874_v49, %v873_v52  ;;  %v878_v27 = vor.u32 %v877_v39, %v876_v61  ;;  %v881_v4 = vor.u32 %v880_v13, %v879_v53 }
 0x137   :  { %v708_v29 = vsub.s32 0, %v3741_v17  ;;  %v5219_v2 = vmov 683565275   ;;  %vm882_vm10 = vcmp.lt.s32.totalorder %v863_v32, 1  ;;  %vm885_vm11 = vcmp.lt.s32.totalorder %v863_v32, 4 }
 0x138   :  { %v866_v21 = vshrl.u32 %v5219_v2, %v865_v9  ;;  %v898_v11 = vshll.u32 %v858_v6, 8  ;;  %vm884_vm12 = vcmp.lt.s32.totalorder %v863_v32, 3  ;;  %v887_v50 = vsel %vm885_vm11, %v875_v38, 2102212464 }
 0x139   :  { %v890_v45 = vsel %vm882_vm10, %v869_v12, %v872_v55  ;;  %v891_v48 = vsel %vm885_vm11, %v878_v27, 920167782  ;;  %vm883_vm13 = vcmp.lt.s32.totalorder %v863_v32, 2  ;;  %v894_v57 = vsel %vm882_vm10, %v872_v55, %v875_v38 }
 0x13a   :  { %v892_v59 = vsel %vm884_vm12, %v875_v38, %v891_v48  ;;  %v895_v62 = vsel %vm885_vm11, %v881_v4, 1326507024  ;;  %v2713_v19 = vmin.u32 %v708_v29, %v3741_v17  ;;  %v886_v35 = vsel %vm882_vm10, %v866_v21, %v869_v12 }
 0x13b   :  { %v893_v16 = vsel %vm883_vm13, %v890_v45, %v892_v59  ;;  %v896_v61 = vsel %vm884_vm12, %v878_v27, %v895_v62  ;;  %v888_v13 = vsel %vm884_vm12, %v872_v55, %v887_v50  ;;  %v982_v6 = vor.u32 %v981_v3, %v980_v47 }
 0x13c   :  { %v897_v53 = vsel %vm883_vm13, %v894_v57, %v896_v61  ;;  %v3756_v39 = vmul.u32.u64.low %v898_v11, %v893_v16  ;;  %v3757_v9 = vmul.u32.u64.high %v898_v11, %v893_v16, %v3756_v39  ;;  %vm989_vm14 = vcmp.lt.s32.totalorder %v3718_v10, 4 }
 0x13d   :  { %v3761_v52 = vmul.u32.u64.low %v898_v11, %v897_v53  ;;  %v3762_v48 = vmul.u32.u64.high %v898_v11, %v897_v53, %v3761_v52  ;;  %v971_v4 = vshll.u32 %v5219_v2, %v3700_v56  ;;  %v5220_v12 = vmov 2475754826  }
 0x13e   :  { %v972_v59 = vshrl.u32 %v5220_v12, %v3721_v60  ;;  %v974_v50 = vshll.u32 %v5220_v12, %v3700_v56  ;;  %v975_v62 = vshrl.u32 %v5218_v46, %v3721_v60  ;;  %v710_v45 = vclz %v2713_v19 }
 0x13f   :  { %v985_v57 = vor.u32 %v984_v5, %v3731_v14  ;;  %v889_v21 = vsel %vm883_vm13, %v886_v35, %v888_v13  ;;  %v5221_v3 = vmov 2102212464   ;;  %v908_v47 = vadd.s32 1, %v3757_v9 }
 0x140   :  { %v978_v55 = vshrl.u32 %v5221_v3, %v3721_v60  ;;  %v973_v41 = vor.u32 %v972_v59, %v971_v4  ;;  %v976_v49 = vor.u32 %v975_v62, %v974_v50  ;;  %v977_v29 = vshll.u32 %v5218_v46, %v3700_v56 }
 0x141   :  { %v5222_v38 = vclz %v3692_v30  ;;  %v502_v16 = vclz %v3712_v0  ;;  %v3785_v5 = vsel %vm2719_vm9, 0, %v3714_v23  ;;  %v995_v14 = vsel %vm989_vm14, %v982_v6, 920167782 }
 0x142   :  { %v905_v32 = vmul.u32 %v898_v11, %v889_v21  ;;  %vm907_vm15 = vc.u32 %v3762_v48, %v3756_v39  ;;  %v962_v19 = vor.u32 8388608, %v3725_v42  ;;  %v979_v56 = vor.u32 %v978_v55, %v977_v29 }
 0x143   :  { %v2710_v27 = vadd.s32 4294967294, %v5222_v38  ;;  %v999_v30 = vsel %vm989_vm14, %v985_v57, 1326507024  ;;  %v909_v0 = vsel %vm907_vm15, %v908_v47, %v3757_v9  ;;  %vm986_vm0 = vcmp.lt.s32.totalorder %v3718_v10, 1 }
 0x144   :  { %vm988_vm1 = vcmp.lt.s32.totalorder %v3718_v10, 3  ;;  %v2714_v23 = vadd.s32 4294967294, %v710_v45  ;;  %v910_v35 = vadd.s32 %v909_v0, %v905_v32  ;;  %v994_v11 = vsel %vm986_vm0, %v973_v41, %v976_v49 }
 0x145   :  { %v996_v61 = vsel %vm988_vm1, %v979_v56, %v995_v14  ;;  %v408_v42 = vshll.u32 %v3707_v15, 23  ;;  %v5223_v13 = vclz %v3689_v33  ;;  %v822_v52 = vsub.s32 4294967266, %v3785_v5 }
 0x146   :  { %vm987_vm2 = vcmp.lt.s32.totalorder %v3718_v10, 2  ;;  %v911_v9 = vadd.s32 536870912, %v910_v35  ;;  %v991_v4 = vsel %vm989_vm14, %v979_v56, 2102212464  ;;  %v998_v59 = vsel %vm986_vm0, %v976_v49, %v979_v56 }
 0x147   :  { %v2698_v53 = vadd.s32 4294967294, %v5223_v13  ;;  %v1000_v50 = vsel %vm988_vm1, %v982_v6, %v999_v30  ;;  %v970_v15 = vshrl.u32 %v5219_v2, %v3721_v60  ;;  %v997_v33 = vsel %vm987_vm2, %v994_v11, %v996_v61 }
 0x148   :  { %v1001_v62 = vsel %vm987_vm2, %v998_v59, %v1000_v50  ;;  %v1002_v45 = vshll.u32 %v962_v19, 8  ;;  %vm2711_vm3 = vcmp.lt.s32.totalorder %v2710_v27, 0  ;;  %v2706_v57 = vadd.s32 4294967294, %v502_v16 }
 0x149   :  { %vm2715_vm4 = vcmp.lt.s32.totalorder %v2714_v23, 0  ;;  %v3818_v21 = vshrl.u32 %v911_v9, 30  ;;  %v990_v55 = vsel %vm986_vm0, %v970_v15, %v973_v41  ;;  %v992_v6 = vsel %vm988_vm1, %v976_v49, %v991_v4 }
 0x14a   :  { %v3824_v47 = vmul.u32.u64.low %v1002_v45, %v1001_v62  ;;  %v3825_v60 = vmul.u32.u64.high %v1002_v45, %v1001_v62, %v3824_v47  ;;  %vm2699_vm5 = vcmp.lt.s32.totalorder %v2698_v53, 0  ;;  %v3834_v16 = vadd.s32 %v3428_v37, %v3438_v51 }
 0x14b   :  { %v913_v29 = vshll.u32 %v3818_v21, 30  ;;  %v3828_v38 = vmul.u32.u64.low %v1002_v45, %v997_v33  ;;  %v3829_v14 = vmul.u32.u64.high %v1002_v45, %v997_v33, %v3828_v38  ;;  %v3836_v32 = vsel %vm2711_vm3, 0, %v2710_v27 }
 0x14c   :  { %v823_v41 = vadd.s32 127, %v822_v52  ;;  %v3838_v19 = vsel %vm2715_vm4, 0, %v2714_v23  ;;  %v5224_v49 = vshll.u32 %v3497_v28, %v3673_v20  ;;  %v3846_v30 = vor.u32 4788187, %v408_v42 }
 0x14d   :  { %v3848_v0 = vsub.s32 %v910_v35, %v913_v29  ;;  %v993_v11 = vsel %vm987_vm2, %v990_v55, %v992_v6  ;;  %v3852_v37 = vsel %vm2699_vm5, 0, %v2698_v53  ;;  %vm2707_vm6 = vcmp.lt.s32.totalorder %v2706_v57, 0 }
 0x14e   :  { %v3844_v56 = vor.u32 %v3705_v40, %v5224_v49  ;;  %v818_v51 = vsub.s32 32, %v3785_v5  ;;  %vm1011_vm7 = vc.u32 %v3825_v60, %v3828_v38  ;;  %v614_v28 = vsub.s32 4294967266, %v3836_v32 }
 0x14f   :  { %v718_v20 = vsub.s32 4294967266, %v3838_v19  ;;  %v916_v40 = vsub.s32 0, %v3848_v0  ;;  %v1012_v27 = vadd.s32 1, %v3829_v14  ;;  %v594_v10 = vadd.s32 %v3485_v43, %v3492_v25 }
 0x150   :  { %v802_v23 = vadd.s32 %v3594_v63, %v3603_v18  ;;  %v824_v35 = vshll.u32 %v823_v41, 23  ;;  %v1009_v61 = vmul.u32 %v1002_v45, %v993_v11  ;;  %v302_v42 = vsub.s32 4294967266, %v3852_v37 }
 0x151   :  { %v3866_v13 = vsel %vm2707_vm6, 0, %v2706_v57  ;;  %v2721_v53 = vmin.u32 %v916_v40, %v3848_v0  ;;  %v1013_v52 = vsel %vm1011_vm7, %v1012_v27, %v3829_v14  ;;  %v412_v9 = vcvt.s32.f32 %v3844_v56 }
 0x152   :  { %v610_v4 = vsub.s32 32, %v3836_v32  ;;  %v820_v59 = vshrl.u32 %v802_v23, %v818_v51  ;;  %v1014_v50 = vadd.s32 %v1013_v52, %v1009_v61  ;;  %v410_v43 = vand.u32 2147483647, %v3846_v30 }
 0x153   :  { %v615_v25 = vadd.s32 127, %v614_v28  ;;  %v719_v63 = vadd.s32 127, %v718_v20  ;;  %v918_v18 = vclz %v2721_v53  ;;  %v510_v15 = vsub.s32 4294967266, %v3866_v13 }
 0x154   :  { %v819_v33 = vshll.u32 %v3653_v7, %v3785_v5  ;;  %v825_v62 = vor.u32 4788187, %v824_v35  ;;  %v1015_v45 = vadd.s32 536870912, %v1014_v50  ;;  %v298_v57 = vsub.s32 32, %v3852_v37 }
 0x155   :  { %v303_v55 = vadd.s32 127, %v302_v42  ;;  %v714_v6 = vsub.s32 32, %v3838_v19  ;;  %v2722_v47 = vadd.s32 4294967294, %v918_v18  ;;  %v611_v29 = vshll.u32 %v3648_v26, %v3836_v32 }
 0x156   :  { %v612_v14 = vshrl.u32 %v594_v10, %v610_v4  ;;  %v821_v41 = vor.u32 %v820_v59, %v819_v33  ;;  %v3880_v49 = vshrl.u32 %v1015_v45, 30  ;;  %v616_v56 = vshll.u32 %v615_v25, 23 }
 0x157   :  { %v698_v30 = vadd.s32 %v3665_v31, %v3670_v24  ;;  %v720_v7 = vshll.u32 %v719_v63, 23  ;;  %vm2723_vm8 = vcmp.lt.s32.totalorder %v2722_v47, 0  ;;  %v511_v5 = vadd.s32 127, %v510_v15 }
 0x158   :  { %v826_v11 = vand.u32 2147483647, %v825_v62  ;;  %v921_v51 = vsel %vm2723_vm8, 0, %v2722_v47  ;;  %v1017_v28 = vshll.u32 %v3880_v49, 30  ;;  %v906_v40 = vadd.s32 %v3756_v39, %v3762_v48 }
 0x159   :  { %v716_v20 = vshrl.u32 %v698_v30, %v714_v6  ;;  %v922_v26 = vsub.s32 32, %v921_v51  ;;  %v926_v32 = vsub.s32 4294967266, %v921_v51  ;;  %v506_v27 = vsub.s32 32, %v3866_v13 }
 0x15a   :  { %v828_v10 = vcvt.s32.f32 %v821_v41  ;;  %v715_v23 = vshll.u32 %v3741_v17, %v3838_v19  ;;  %v3890_v31 = vsub.s32 %v1014_v50, %v1017_v28  ;;  %v721_v24 = vor.u32 4788187, %v720_v7 }
 0x15b   :  { %v923_v35 = vshll.u32 %v3848_v0, %v921_v51  ;;  %v924_v61 = vshrl.u32 %v906_v40, %v922_v26  ;;  %v927_v42 = vadd.s32 127, %v926_v32  ;;  %v617_v53 = vor.u32 4788187, %v616_v56 }
 0x15c   :  { %v490_v52 = vadd.s32 %v3549_v8, %v3546_v34  ;;  %v829_v39 = vmul.f32 %v828_v10, %v826_v11  ;;  %v1020_v48 = vsub.s32 0, %v3890_v31  ;;  %v512_v4 = vshll.u32 %v511_v5, 23 }
 0x15d   :  { %v717_v59 = vor.u32 %v716_v20, %v715_v23  ;;  %v925_v25 = vor.u32 %v924_v61, %v923_v35  ;;  %v928_v63 = vshll.u32 %v927_v42, 23  ;;  %v3896_v18 = vmul.f32 %v412_v9, %v410_v43 }
 0x15e   :  { %v300_v17 = vshrl.u32 %v3834_v16, %v298_v57  ;;  %v304_v19 = vshll.u32 %v303_v55, 23  ;;  %v2725_v0 = vmin.u32 %v1020_v48, %v3890_v31  ;;  %v613_v50 = vor.u32 %v612_v14, %v611_v29 }
 0x15f   :  { %v508_v15 = vshrl.u32 %v490_v52, %v506_v27  ;;  %v722_v33 = vand.u32 2147483647, %v721_v24  ;;  %v929_v62 = vor.u32 4788187, %v928_v63  ;;  %v618_v45 = vand.u32 2147483647, %v617_v53 }
 0x160   :  { %v507_v34 = vshll.u32 %v3678_v54, %v3866_v13  ;;  %v830_v8 = vxor.u32 2147483648, %v829_v39  ;;  %v1022_v6 = vclz %v2725_v0  ;;  %v513_v47 = vor.u32 4788187, %v512_v4 }
 0x161   :  { %v724_v41 = vcvt.s32.f32 %v717_v59  ;;  %v930_v56 = vand.u32 2147483647, %v929_v62  ;;  %v932_v9 = vcvt.s32.f32 %v925_v25  ;;  %v414_v43 = vxor.u32 2147483648, %v3896_v18  ;;  %v5231_v59 = vld [vmem:[#allocation9_spill] sm:$0xff]  ;;  %v5232_v25 = vld [vmem:[#allocation14_spill] sm:$0xff] }
 0x162   :  { %v299_v16 = vshll.u32 %v3645_v1, %v3852_v37  ;;  %vm748_vm9 = vcmp.lt.s32.totalorder %v3412_v22, 0  ;;  %v2726_v57 = vadd.s32 4294967294, %v1022_v6  ;;  %v620_v55 = vcvt.s32.f32 %v613_v50 }
 0x163   :  { %v509_v29 = vor.u32 %v508_v15, %v507_v34  ;;  %v725_v14 = vmul.f32 %v724_v41, %v722_v33  ;;  %v933_v30 = vmul.f32 %v932_v9, %v930_v56  ;;  %vm332_vm10 = vcmp.lt.s32.totalorder %v3261_v44, 0  ;;  %v5234_v33 = vld [vmem:[#allocation6_spill] sm:$0xff]  ;;  %v5238_v56 = vld [vmem:[#allocation15_spill] sm:$0xff]  ;;  %v5257_v41 = vld [vmem:[#allocation8_spill] sm:$0xff] }
 0x164   :  { %v301_v54 = vor.u32 %v300_v17, %v299_v16  ;;  %v305_v13 = vor.u32 4788187, %v304_v19  ;;  %vm540_vm11 = vcmp.lt.s32.totalorder %v3267_v58, 0  ;;  %v831_v7 = vsel %vm748_vm9, %v830_v8, %v829_v39  ;;  %v5233_v17 = vld [vmem:[#allocation7_spill] sm:$0xff]  ;;  %v1058_v16 = vld [vmem:[%s5144_s3] sm:$0xff] }
 0x165   :  { %vm2727_vm12 = vcmp.lt.s32.totalorder %v2726_v57, 0  ;;  %v621_v5 = vmul.f32 %v620_v55, %v618_v45  ;;  %v514_v11 = vand.u32 2147483647, %v513_v47  ;;  %v934_v1 = vxor.u32 2147483648, %v933_v30 }
 0x166   :  { %v1025_v37 = vsel %vm2727_vm12, 0, %v2726_v57  ;;  %v1010_v51 = vadd.s32 %v3828_v38, %v3825_v60  ;;  %v5225_v40 = vand.u32 2147483647, %v3412_v22  ;;  %v516_v32 = vcvt.s32.f32 %v509_v29 }
 0x167   :  { %v1026_v28 = vsub.s32 32, %v1025_v37  ;;  %v1030_v20 = vsub.s32 4294967266, %v1025_v37  ;;  %v726_v27 = vxor.u32 2147483648, %v725_v14  ;;  %vm852_vm14 = vcmp.lt.s32.totalorder %v3623_v36, 0 }
 0x168   :  { %vm3914_vm13 = vcmp.le.f32.partialorder %v5225_v40, 0.7853982  ;;  %v935_v23 = vsel %vm852_vm14, %v934_v1, %v933_v30  ;;  %v1027_v60 = vshll.u32 %v3890_v31, %v1025_v37  ;;  %v306_v35 = vand.u32 2147483647, %v305_v13 }
 0x169   :  { %v834_v10 = vsel %vm3914_vm13, %v3412_v22, %v831_v7  ;;  %v1028_v38 = vshrl.u32 %v1010_v51, %v1026_v28  ;;  %v1031_v24 = vadd.s32 127, %v1030_v20  ;;  %v308_v61 = vcvt.s32.f32 %v301_v54 }
 0x16a   :  { %v622_v42 = vxor.u32 2147483648, %v621_v5  ;;  %v517_v53 = vmul.f32 %v516_v32, %v514_v11  ;;  %v5228_v48 = vand.u32 2147483647, %v3623_v36  ;;  %2981 = vcosq.f32 %v834_v10 }
 0x16b   :  { %v1029_v52 = vor.u32 %v1028_v38, %v1027_v60  ;;  %v1032_v39 = vshll.u32 %v1031_v24, 23  ;;  %vm644_vm0 = vcmp.lt.s32.totalorder %v5231_v59, 0  ;;  %v832_v63 = vsub.s32 4, %v5232_v25 }
 0x16c   :  { %vm3927_vm15 = vcmp.le.f32.partialorder %v5228_v48, 0.7853982  ;;  %2983 = vsinq.f32 %v834_v10  ;;  %vm436_vm1 = vcmp.lt.s32.totalorder %v5233_v17, 0  ;;  %v727_v19 = vsel %vm644_vm0, %v726_v27, %v725_v14 }
 0x16d   :  { %v938_v31 = vsel %vm3927_vm15, %v3623_v36, %v935_v23  ;;  %v1033_v0 = vor.u32 4788187, %v1032_v39  ;;  %v936_v50 = vsub.s32 4, %v3818_v21  ;;  %v415_v15 = vsel %vm332_vm10, %v414_v43, %v3896_v18 }
 0x16e   :  { %vm228_vm2 = vcmp.lt.s32.totalorder %v5234_v33, 0  ;;  %v309_v62 = vmul.f32 %v308_v61, %v306_v35  ;;  %v623_v45 = vsel %vm540_vm11, %v622_v42, %v621_v5  ;;  %v518_v34 = vxor.u32 2147483648, %v517_v53  ;;  %v5242_v5 = vld [vmem:[#allocation10_spill] sm:$0xff]  ;;  %v5252_v42 = vld [vmem:[#allocation12_spill] sm:$0xff] }
 0x16f   :  { %v1034_v8 = vand.u32 2147483647, %v1033_v0  ;;  %v1036_v6 = vcvt.s32.f32 %v1029_v52  ;;  %2985 = vcosq.f32 %v938_v31  ;;  %v5235_v47 = vand.u32 2147483647, %v5231_v59 }
 0x170   :  { %2987 = vsinq.f32 %v938_v31  ;;  %v833_v18 = vsel %vm748_vm9, %v832_v63, %v5232_v25  ;;  %v728_v9 = vsub.s32 4, %v5238_v56  ;;  %v1040_v55 = vsub.s32 4, %v3880_v49 }
 0x171   :  { %vm3948_vm3 = vcmp.le.f32.partialorder %v5235_v47, 0.7853982  ;;  %v1037_v57 = vmul.f32 %v1036_v6, %v1034_v8  ;;  %v937_v29 = vsel %vm852_vm14, %v936_v50, %v3818_v21  ;;  %v5239_v14 = vand.u32 2147483647, %v3267_v58  ;;  %v5256_v50 = vld [vmem:[#allocation13_spill] sm:$0xff] }
 0x172   :  { %v730_v43 = vsel %vm3948_vm3, %v5231_v59, %v727_v19  ;;  %v310_v54 = vxor.u32 2147483648, %v309_v62  ;;  %v519_v13 = vsel %vm436_vm1, %v518_v34, %v517_v53  ;;  %vm5191_vm5 = vcmask 490496  }
 0x173   :  { %vm3968_vm4 = vcmp.le.f32.partialorder %v5239_v14, 0.7853982  ;;  %v5243_v11 = vand.u32 2147483647, %v5242_v5  ;;  %v1038_v21 = vxor.u32 2147483648, %v1037_v57  ;;  %v835_v37 = vsel %vm3914_vm13, 0, %v833_v18  ;;  %2857 = vmatprep.mubr.msk.f32.mxu1 %vm5191_vm5, %v1058_v16 }
 0x174   :  { %v626_v7 = vsel %vm3968_vm4, %v3267_v58, %v623_v45  ;;  %2989 = vcosq.f32 %v730_v43  ;;  %vm956_vm7 = vcmp.lt.s32.totalorder %v5242_v5, 0  ;;  %v939_v51 = vsel %vm3927_vm15, 0, %v937_v29 }
 0x175   :  { %vm3979_vm6 = vcmp.le.f32.partialorder %v5243_v11, 0.7853982  ;;  %v729_v28 = vsel %vm644_vm0, %v728_v9, %v5238_v56  ;;  %2991 = vsinq.f32 %v730_v43  ;;  %v1039_v20 = vsel %vm956_vm7, %v1038_v21, %v1037_v57  ;;  %v5258_v57 = vld [vmem:[#allocation11_spill] sm:$0xff] }
 0x176   :  { %v1041_v40 = vsel %vm956_vm7, %v1040_v55, %v3880_v49  ;;  %2993 = vcosq.f32 %v626_v7  ;;  %v5246_v26 = vand.u32 2147483647, %v5233_v17  ;;  %v1042_v27 = vsel %vm3979_vm6, %v5242_v5, %v1039_v20 }
 0x177   :  { %v839_v10 = vadd.s32 3, %v835_v37  ;;  %2995 = vsinq.f32 %v626_v7  ;;  %v311_v49 = vsel %vm228_vm2, %v310_v54, %v309_v62  ;;  %v731_v60 = vsel %vm3948_vm3, 0, %v729_v28  ;;  %v2982_v35 = vpop.eup %2981 }
 0x178   :  { %vm3995_vm8 = vcmp.le.f32.partialorder %v5246_v26, 0.7853982  ;;  %2997 = vcosq.f32 %v1042_v27  ;;  %v5249_v38 = vand.u32 2147483647, %v3261_v44  ;;  %v1043_v61 = vsel %vm3979_vm6, 0, %v1041_v40 }
 0x179   :  { %v522_v23 = vsel %vm3995_vm8, %v5233_v17, %v519_v13  ;;  %2999 = vsinq.f32 %v1042_v27  ;;  %v624_v53 = vsub.s32 4, %v5252_v42  ;;  %v2984_v39 = vpop.eup %2983  ;;  %v943_v48 = vadd.s32 3, %v939_v51 }
 0x17a   :  { %vm4011_vm9 = vcmp.le.f32.partialorder %v5249_v38, 0.7853982  ;;  %3001 = vcosq.f32 %v522_v23  ;;  %v5253_v4 = vand.u32 2147483647, %v5234_v33  ;;  %v840_v25 = vand.u32 3, %v839_v10 }
 0x17b   :  { %v418_v52 = vsel %vm4011_vm9, %v3261_v44, %v415_v15  ;;  %v735_v63 = vadd.s32 3, %v731_v60  ;;  %3003 = vsinq.f32 %v522_v23  ;;  %v1047_v0 = vadd.s32 3, %v1043_v61 }
 0x17c   :  { %vm4023_vm12 = vcmp.le.f32.partialorder %v5253_v4, 0.7853982  ;;  %v520_v62 = vsub.s32 4, %v5256_v50  ;;  %3005 = vcosq.f32 %v418_v52  ;;  %v2986_v15 = vpop.eup %2985  ;;  %v843_v45 = vxor.u32 2147483648, %v2984_v39 }
 0x17d   :  { %v314_v19 = vsel %vm4023_vm12, %v5234_v33, %v311_v49  ;;  %v846_v34 = vxor.u32 2147483648, %v2982_v35  ;;  %v625_v8 = vsel %vm540_vm11, %v624_v53, %v5252_v42  ;;  %3007 = vsinq.f32 %v418_v52  ;;  %v2988_v6 = vpop.eup %2987 }
 0x17e   :  { %v944_v47 = vand.u32 3, %v943_v48  ;;  %v416_v18 = vsub.s32 4, %v5257_v41  ;;  %3009 = vcosq.f32 %v314_v19  ;;  %vm838_vm13 = vweird.f32 %v3412_v22 }
 0x17f   :  { %vm842_vm14 = vcmp.eq.s32.totalorder %v840_v25, 0  ;;  %vm845_vm15 = vcmp.eq.s32.totalorder %v840_v25, 2  ;;  %v4036_v56 = vand.u32 3, %v735_v63  ;;  %3011 = vsinq.f32 %v314_v19 }
 0x180   :  { %v1048_v9 = vand.u32 3, %v1047_v0  ;;  %v627_v43 = vsel %vm3968_vm4, 0, %v625_v8  ;;  %v521_v16 = vsel %vm436_vm1, %v520_v62, %v5256_v50  ;;  %v312_v55 = vsub.s32 4, %v5258_v57 }
 0x181   :  { %v2990_v29 = vpop.eup %2989  ;;  %vm1139_vm11 = vcmask 1043456   ;;  %v947_v14 = vxor.u32 2147483648, %v2988_v6  ;;  %v950_v54 = vxor.u32 2147483648, %v2986_v15  ;;  %v844_v13 = vsel %vm842_vm14, %v2982_v35, %v843_v45 }
 0x182   :  { %v847_v7 = vsel %vm845_vm15, %v846_v34, %v2984_v39  ;;  %v2992_v11 = vpop.eup %2991  ;;  %vm1046_vm0 = vweird.f32 %v5242_v5  ;;  %vm942_vm3 = vweird.f32 %v3623_v36  ;;  %vm945_vm6 = vcmp.lt.s32.totalorder %v944_v47, 2 }
 0x183   :  { %vm946_vm7 = vcmp.eq.s32.totalorder %v944_v47, 0  ;;  %vm949_vm4 = vcmp.eq.s32.totalorder %v944_v47, 2  ;;  %v417_v30 = vsel %vm332_vm10, %v416_v18, %v5257_v41  ;;  %v2994_v1 = vpop.eup %2993  ;;  %vm841_vm1 = vcmp.lt.s32.totalorder %v840_v25, 2 }
 0x184   :  { %vm738_vm5 = vcmp.eq.s32.totalorder %v4036_v56, 0  ;;  %v631_v21 = vadd.s32 3, %v627_v43  ;;  %v523_v37 = vsel %vm3995_vm8, 0, %v521_v16  ;;  %v2996_v51 = vpop.eup %2995  ;;  %vm1049_vm14 = vcmp.lt.s32.totalorder %v1048_v9, 2 }
 0x185   :  { %v848_v28 = vsel %vm841_vm1, %v844_v13, %v847_v7  ;;  %vm741_vm15 = vcmp.eq.s32.totalorder %v4036_v56, 2  ;;  %v313_v20 = vsel %vm228_vm2, %v312_v55, %v5258_v57  ;;  %v2998_v40 = vpop.eup %2997  ;;  %v948_v26 = vsel %vm946_vm7, %v2986_v15, %v947_v14 }
 0x186   :  { %v951_v27 = vsel %vm949_vm4, %v950_v54, %v2988_v6  ;;  %vm737_vm10 = vcmp.lt.s32.totalorder %v4036_v56, 2  ;;  %v742_v10 = vxor.u32 2147483648, %v2990_v29  ;;  %v419_v23 = vsel %vm4011_vm9, 0, %v417_v30  ;;  %v3000_v32 = vpop.eup %2999 }
 0x187   :  { %vm1050_vm8 = vcmp.eq.s32.totalorder %v1048_v9, 0  ;;  %v1054_v49 = vxor.u32 2147483648, %v2998_v40  ;;  %v739_v60 = vxor.u32 2147483648, %v2992_v11  ;;  %v527_v38 = vadd.s32 3, %v523_v37  ;;  %v3002_v35 = vpop.eup %3001 }
 0x188   :  { %v1051_v61 = vxor.u32 2147483648, %v3000_v32  ;;  %vm1053_vm1 = vcmp.eq.s32.totalorder %v1048_v9, 2  ;;  %v632_v42 = vand.u32 3, %v631_v21  ;;  %v315_v53 = vsel %vm4023_vm12, 0, %v313_v20  ;;  %v3004_v52 = vpop.eup %3003 }
 0x189   :  { %v1055_v39 = vsel %vm1053_vm1, %v1054_v49, %v3000_v32  ;;  %v952_v48 = vsel %vm945_vm6, %v948_v26, %v951_v27  ;;  %v849_v24 = vsel %vm838_vm13, nan, %v848_v28  ;;  %v423_v4 = vadd.s32 3, %v419_v23  ;;  %v3006_v25 = vpop.eup %3005  ;;  %v1059_v26 = vld [vmem:[%s5144_s3 + $0x8] sm:$0xff]  ;;  %v1065_v23 = vld [vmem:[%s5144_s3 + $0x38] sm:$0xf]  ;;  %v4111_v32 = vpop.permute.xlu0 %1111 }
 0x18a   :  { %v1052_v63 = vsel %vm1050_vm8, %v2998_v40, %v1051_v61  ;;  %v743_v19 = vsel %vm741_vm15, %v742_v10, %v2992_v11  ;;  %v635_v0 = vxor.u32 2147483648, %v2996_v51  ;;  %v638_v50 = vxor.u32 2147483648, %v2994_v1  ;;  %v3008_v62 = vpop.eup %3007  ;;  %v1063_v27 = vld [vmem:[%s5144_s3 + $0x28] sm:$0xff]  ;;  %v1064_v10 = vld [vmem:[%s5144_s3 + $0x30] sm:$0xff]  ;;  %v4113_v49 = vpop.permute.xlu1 %1106 }
 0x18b   :  { %v1056_v15 = vsel %vm1049_vm14, %v1052_v63, %v1055_v39  ;;  %v740_v31 = vsel %vm738_vm5, %v2990_v29, %v739_v60  ;;  %v528_v45 = vand.u32 3, %v527_v38  ;;  %v319_v34 = vadd.s32 3, %v315_v53  ;;  %v3010_v8 = vpop.eup %3009 }
 0x18c   :  { %v1057_v22 = vsel %vm1046_vm0, nan, %v1056_v15  ;;  %v953_v6 = vsel %vm942_vm3, nan, %v952_v48  ;;  %v531_v47 = vxor.u32 2147483648, %v3004_v52  ;;  %v534_v41 = vxor.u32 2147483648, %v3002_v35  ;;  %v3012_v18 = vpop.eup %3011 }
 0x18d   :  { %2841 = vmatprep.subr.msk.mxu1 %vm1139_vm11, %v1057_v22  ;;  %vm633_vm2 = vcmp.lt.s32.totalorder %v632_v42, 2  ;;  %vm634_vm9 = vcmp.eq.s32.totalorder %v632_v42, 0  ;;  %vm637_vm12 = vcmp.eq.s32.totalorder %v632_v42, 2  ;;  %v424_v9 = vand.u32 3, %v423_v4  ;;  %v4115_v60 = vpop.permute.xlu0 %1101 }
 0x18e   :  { %2842 = vmatpush3.msk.msra.mxu1 %vm1139_vm11, %v1057_v22  ;;  %v636_v43 = vsel %vm634_vm9, %v2994_v1, %v635_v0  ;;  %v639_v16 = vsel %vm637_vm12, %v638_v50, %v2996_v51  ;;  %v427_v57 = vxor.u32 2147483648, %v3008_v62  ;;  %v430_v55 = vxor.u32 2147483648, %v3006_v25  ;;  %v4117_v38 = vpop.permute.xlu1 %1096 }
 0x18f   :  { %2843 = vmatprep.subr.mxu1 %v953_v6  ;;  %v744_v36 = vsel %vm737_vm10, %v740_v31, %v743_v19  ;;  %vm530_vm5 = vcmp.eq.s32.totalorder %v528_v45, 0  ;;  %vm533_vm13 = vcmp.eq.s32.totalorder %v528_v45, 2  ;;  %v320_v5 = vand.u32 3, %v319_v34 }
 0x190   :  { %2844 = vmatpush3.msra.mxu1 %v953_v6  ;;  %v532_v29 = vsel %vm530_vm5, %v3002_v35, %v531_v47  ;;  %v535_v14 = vsel %vm533_vm13, %v534_v41, %v3004_v52  ;;  %v323_v54 = vxor.u32 2147483648, %v3012_v18  ;;  %v326_v13 = vxor.u32 2147483648, %v3010_v8 }
 0x191   :  { %2845 = vmatprep.subr.mxu1 %v849_v24  ;;  %vm734_vm0 = vweird.f32 %v5231_v59  ;;  %v640_v7 = vsel %vm633_vm2, %v636_v43, %v639_v16  ;;  %vm426_vm3 = vcmp.eq.s32.totalorder %v424_v9, 0  ;;  %vm429_vm6 = vcmp.eq.s32.totalorder %v424_v9, 2  ;;  %v1092_v35 = vpop.permute.xlu0 %1091 }
 0x192   :  { %2846 = vmatpush3.msra.mxu1 %v849_v24  ;;  %v745_v11 = vsel %vm734_vm0, nan, %v744_v36  ;;  %vm529_vm7 = vcmp.lt.s32.totalorder %v528_v45, 2  ;;  %v428_v56 = vsel %vm426_vm3, %v3006_v25, %v427_v57  ;;  %v431_v30 = vsel %vm429_vm6, %v430_v55, %v3008_v62  ;;  %v4119_v61 = vpop.permute.xlu1 %1086 }
 0x193   :  { %2847 = vmatprep.subr.mxu1 %v745_v11  ;;  %vm630_vm4 = vweird.f32 %v3267_v58  ;;  %v536_v1 = vsel %vm529_vm7, %v532_v29, %v535_v14  ;;  %vm322_vm14 = vcmp.eq.s32.totalorder %v320_v5, 0  ;;  %vm325_vm15 = vcmp.eq.s32.totalorder %v320_v5, 2 }
 0x194   :  { %2848 = vmatpush3.msra.mxu1 %v745_v11  ;;  %v641_v21 = vsel %vm630_vm4, nan, %v640_v7  ;;  %vm425_vm10 = vcmp.lt.s32.totalorder %v424_v9, 2  ;;  %v324_v37 = vsel %vm322_vm14, %v3010_v8, %v323_v54  ;;  %v327_v59 = vsel %vm325_vm15, %v326_v13, %v3012_v18 }
 0x195   :  { %2849 = vmatprep.subr.mxu1 %v641_v21  ;;  %vm526_vm8 = vweird.f32 %v5233_v17  ;;  %v432_v51 = vsel %vm425_vm10, %v428_v56, %v431_v30  ;;  %vm321_vm1 = vcmp.lt.s32.totalorder %v320_v5, 2  ;;  %vm422_vm2 = vweird.f32 %v3261_v44  ;;  %v1060_v17 = vld [vmem:[%s5144_s3 + $0x10] sm:$0xff]  ;;  %v1061_v44 = vld [vmem:[%s5144_s3 + $0x18] sm:$0xff]  ;;  %v1082_v42 = vpop.permute.xlu0 %1081 }
 0x196   :  { %2850 = vmatpush3.msra.mxu1 %v641_v21  ;;  %v537_v28 = vsel %vm526_vm8, nan, %v536_v1  ;;  %v328_v20 = vsel %vm321_vm1, %v324_v37, %v327_v59  ;;  %v433_v58 = vsel %vm422_vm2, nan, %v432_v51  ;;  %vm318_vm9 = vweird.f32 %v5234_v33  ;;  %v1062_v33 = vld [vmem:[%s5144_s3 + $0x20] sm:$0xff]  ;;  %v1077_v39 = vpop.permute.xlu1 %1076 }
 0x197   :  { %2851 = vmatprep.subr.mxu1 %v537_v28  ;;  %v329_v40 = vsel %vm318_vm9, nan, %v328_v20  ;;  %vm5259_vm12 = vcmask 490496   ;;  %v5266_v57 = vmov 920167782   ;;  %v5267_v5 = vmov 1326507024  }
 0x198   :  { %2852 = vmatpush3.msra.mxu1 %v537_v28  ;;  %vm5260_vm5 = vmmov %vm5259_vm12 }
 0x199   :  { %2853 = vmatprep.subr.mxu1 %v433_v58  ;;  %vm5261_vm13 = vmmov %vm5260_vm5 }
 0x19a   :  { %2854 = vmatpush3.msra.mxu1 %v433_v58  ;;  %vm5262_vm0 = vmmov %vm5260_vm5 }
 0x19b   :  { %2855 = vmatprep.subr.mxu1 %v329_v40  ;;  %vm5263_vm3 = vmmov %vm5262_vm0 }
 0x19c   :  { %2856 = vmatpush3.msra.mxu1 %v329_v40  ;;  %vm5264_vm6 = vmmov %vm5262_vm0 }
 0x19d   :  { %2858 = vmatmul.mubr.msk.f32.vlgmr.msra.gmra.mxu1 %vm5259_vm12, %v1059_v26  ;;  %vm5265_vm7 = vmmov %vm5262_vm0 }
 0x19e   :  { %2860 = vmatprep.mubr.msk.f32.mxu1 %vm5260_vm5, %v1060_v17 }
 0x1a1   :  { %2861 = vmatmul.mubr.msk.f32.gmra.mxu1 %vm5261_vm13, %v1061_v44 }
 0x1a2   :  { %2863 = vmatprep.mubr.msk.f32.mxu1 %vm5262_vm0, %v1062_v33 }
 0x1a5   :  { %2864 = vmatmul.mubr.msk.f32.gmra.mxu1 %vm5263_vm3, %v1063_v27 }
 0x1a6   :  { %2866 = vmatprep.mubr.msk.f32.mxu1 %vm5264_vm6, %v1064_v10 }
 0x1a9   :  { %2867 = vmatmul.mubr.msk.f32.gmra.mxu1 %vm5265_vm7, %v1065_v23 }
 0x25d   :  { %v2859_v53 = vpop.f32.mrf.mxu1 }
 0x25e   :  { %v4121_v52 = vadd.f32 %v2859_v53, %v1082_v42 }
 0x25f   :  { %v1209_v48 = vpop.f32.mrf.mxu1 }
 0x260   :  { %v1355_v24 = vand.u32 2139095040, %v4121_v52  ;;  %v4124_v4 = vadd.f32 %v1209_v48, %v1077_v39  ;;  %v5193_v6 = vand.u32 2147483647, %v4121_v52 }
 0x261   :  { %v2862_v62 = vpop.f32.mrf.mxu1 }
 0x262   :  { %v1356_v25 = vshrl.u32 %v1355_v24, 23  ;;  %v1251_v63 = vand.u32 2139095040, %v4124_v4  ;;  %v4127_v34 = vadd.f32 %v2862_v62, %v1092_v35  ;;  %v1359_v11 = vand.u32 8388607, %v5193_v6 }
 0x263   :  { %v5192_v53 = vand.u32 2147483647, %v4124_v4 }
 0x264   :  { %v2741_v19 = vadd.s32 4294967169, %v1356_v25  ;;  %v1252_v0 = vshrl.u32 %v1251_v63, 23  ;;  %v1563_v47 = vand.u32 2139095040, %v4127_v34  ;;  %v1360_v58 = vor.u32 8388608, %v1359_v11 }
 0x266   :  { %v1362_v50 = vadd.s32 1, %v2741_v19  ;;  %v2737_v15 = vadd.s32 4294967169, %v1252_v0  ;;  %v1564_v1 = vshrl.u32 %v1563_v47, 23  ;;  %v1400_v35 = vshll.u32 %v1360_v58, 8 }
 0x268   :  { %vm1363_vm4 = vcmp.gt.s32.totalorder %v1362_v50, 0  ;;  %v1258_v45 = vadd.s32 1, %v2737_v15  ;;  %v2749_v17 = vadd.s32 4294967169, %v1564_v1 }
 0x269   :  { %v1364_v31 = vsel %vm1363_vm4, %v1362_v50, 0 }
 0x26a   :  { %v1366_v8 = vand.u32 31, %v1364_v31  ;;  %vm1259_vm14 = vcmp.gt.s32.totalorder %v1258_v45, 0  ;;  %v4131_v41 = vshrl.u32 %v1364_v31, 5  ;;  %v1570_v42 = vadd.s32 1, %v2749_v17  ;;  %v1219_v31 = vpop.f32.mrf.mxu1 }
 0x26b   :  { %v1260_v7 = vsel %vm1259_vm14, %v1258_v45, 0 }
 0x26c   :  { %v1367_v22 = vsub.s32 32, %v1366_v8  ;;  %v1378_v16 = vshll.u32 %v5221_v3, %v1366_v8  ;;  %v1381_v36 = vshll.u32 %v5266_v57, %v1366_v8  ;;  %v1369_v14 = vshll.u32 %v5219_v2, %v1366_v8 }
 0x26d   :  { %v1372_v54 = vshll.u32 %v5220_v12, %v1366_v8  ;;  %v1375_v13 = vshll.u32 %v5218_v46, %v1366_v8  ;;  %vm1387_vm15 = vcmp.lt.s32.totalorder %v4131_v41, 4  ;;  %v1262_v28 = vand.u32 31, %v1260_v7 }
 0x26e   :  { %v1370_v18 = vshrl.u32 %v5220_v12, %v1367_v22  ;;  %v1373_v9 = vshrl.u32 %v5218_v46, %v1367_v22  ;;  %v1376_v43 = vshrl.u32 %v5221_v3, %v1367_v22  ;;  %v1379_v55 = vshrl.u32 %v5266_v57, %v1367_v22 }
 0x26f   :  { %v1382_v29 = vshrl.u32 %v5267_v5, %v1367_v22  ;;  %vm1384_vm10 = vcmp.lt.s32.totalorder %v4131_v41, 1  ;;  %vm1386_vm8 = vcmp.lt.s32.totalorder %v4131_v41, 3  ;;  %v4160_v27 = vsub.s32 32, %v1262_v28 }
 0x270   :  { %v1380_v56 = vor.u32 %v1379_v55, %v1378_v16  ;;  %v1371_v21 = vor.u32 %v1370_v18, %v1369_v14  ;;  %v1374_v37 = vor.u32 %v1373_v9, %v1372_v54  ;;  %v1377_v59 = vor.u32 %v1376_v43, %v1375_v13 }
 0x271   :  { %v1383_v30 = vor.u32 %v1382_v29, %v1381_v36  ;;  %vm1385_vm1 = vcmp.lt.s32.totalorder %v4131_v41, 2  ;;  %v1275_v39 = vshrl.u32 %v5266_v57, %v4160_v27  ;;  %v1278_v48 = vshrl.u32 %v5267_v5, %v4160_v27 }
 0x272   :  { %v1393_v51 = vsel %vm1387_vm15, %v1380_v56, 920167782  ;;  %v1392_v40 = vsel %vm1384_vm10, %v1371_v21, %v1374_v37  ;;  %v1396_v44 = vsel %vm1384_vm10, %v1374_v37, %v1377_v59  ;;  %v1389_v24 = vsel %vm1387_vm15, %v1377_v59, 2102212464 }
 0x273   :  { %v1397_v20 = vsel %vm1387_vm15, %v1383_v30, 1326507024  ;;  %v1394_v26 = vsel %vm1386_vm8, %v1377_v59, %v1393_v51  ;;  %v4178_v19 = vshrl.u32 %v1260_v7, 5  ;;  %v1274_v62 = vshll.u32 %v5221_v3, %v1262_v28 }
 0x274   :  { %v1398_v33 = vsel %vm1386_vm8, %v1380_v56, %v1397_v20  ;;  %v1395_v10 = vsel %vm1385_vm1, %v1392_v40, %v1394_v26  ;;  %v1277_v15 = vshll.u32 %v5266_v57, %v1262_v28  ;;  %v1266_v45 = vshrl.u32 %v5220_v12, %v4160_v27 }
 0x275   :  { %v1399_v23 = vsel %vm1385_vm1, %v1396_v44, %v1398_v33  ;;  %v4174_v25 = vmul.u32.u64.low %v1400_v35, %v1395_v10  ;;  %v4175_v63 = vmul.u32.u64.high %v1400_v35, %v1395_v10, %v4174_v25  ;;  %v1269_v8 = vshrl.u32 %v5218_v46, %v4160_v27 }
 0x276   :  { %v4180_v0 = vmul.u32.u64.low %v1400_v35, %v1399_v23  ;;  %v4181_v50 = vmul.u32.u64.high %v1400_v35, %v1399_v23, %v4180_v0  ;;  %v1272_v47 = vshrl.u32 %v5221_v3, %v4160_v27  ;;  %vm1571_vm2 = vcmp.gt.s32.totalorder %v1570_v42, 0 }
 0x277   :  { %v1368_v18 = vshrl.u32 %v5219_v2, %v1367_v22  ;;  %v1255_v9 = vand.u32 8388607, %v5192_v53  ;;  %v1276_v43 = vor.u32 %v1275_v39, %v1274_v62  ;;  %v1279_v16 = vor.u32 %v1278_v48, %v1277_v15 }
 0x278   :  { %v1265_v55 = vshll.u32 %v5219_v2, %v1262_v28  ;;  %v1268_v36 = vshll.u32 %v5220_v12, %v1262_v28  ;;  %v1271_v29 = vshll.u32 %v5218_v46, %v1262_v28  ;;  %v4198_v14 = vadd.f32 %v1219_v31, %v4119_v61 }
 0x279   :  { %v1388_v54 = vsel %vm1384_vm10, %v1368_v18, %v1371_v21  ;;  %v1390_v22 = vsel %vm1386_vm8, %v1374_v37, %v1389_v24  ;;  %v1572_v13 = vsel %vm1571_vm2, %v1570_v42, 0  ;;  %vm1283_vm9 = vcmp.lt.s32.totalorder %v4178_v19, 4 }
 0x27a   :  { %v1267_v7 = vor.u32 %v1266_v45, %v1265_v55  ;;  %v1270_v11 = vor.u32 %v1269_v8, %v1268_v36  ;;  %v1273_v56 = vor.u32 %v1272_v47, %v1271_v29  ;;  %v1289_v30 = vsel %vm1283_vm9, %v1276_v43, 920167782 }
 0x27b   :  { %v1293_v1 = vsel %vm1283_vm9, %v1279_v16, 1326507024  ;;  %v1574_v61 = vand.u32 31, %v1572_v13  ;;  %v1410_v59 = vadd.s32 1, %v4175_v63  ;;  %v1256_v51 = vor.u32 8388608, %v1255_v9 }
 0x27c   :  { %v1459_v21 = vand.u32 2139095040, %v4198_v14  ;;  %v1391_v37 = vsel %vm1385_vm1, %v1388_v54, %v1390_v22  ;;  %vm1409_vm12 = vc.u32 %v4181_v50, %v4174_v25  ;;  %vm1280_vm5 = vcmp.lt.s32.totalorder %v4178_v19, 1 }
 0x27d   :  { %vm1282_vm13 = vcmp.lt.s32.totalorder %v4178_v19, 3  ;;  %v1288_v28 = vsel %vm1280_vm5, %v1267_v7, %v1270_v11  ;;  %v1292_v58 = vsel %vm1280_vm5, %v1270_v11, %v1273_v56  ;;  %v4225_v40 = vsub.s32 32, %v1574_v61 }
 0x27e   :  { %v1290_v20 = vsel %vm1282_vm13, %v1273_v56, %v1289_v30  ;;  %v1294_v41 = vsel %vm1282_vm13, %v1276_v43, %v1293_v1  ;;  %v1411_v26 = vsel %vm1409_vm12, %v1410_v59, %v4175_v63  ;;  %vm1281_vm0 = vcmp.lt.s32.totalorder %v4178_v19, 2 }
 0x27f   :  { %v1407_v17 = vmul.u32 %v1400_v35, %v1391_v37  ;;  %v1291_v44 = vsel %vm1281_vm0, %v1288_v28, %v1290_v20  ;;  %v1295_v33 = vsel %vm1281_vm0, %v1292_v58, %v1294_v41  ;;  %v4233_v10 = vshll.u32 %v1256_v51, 8  ;;  %v2865_v20 = vpop.f32.mrf.mxu1 }
 0x280   :  { %v1460_v23 = vshrl.u32 %v1459_v21, 23  ;;  %v5195_v39 = vand.u32 2147483647, %v4127_v34  ;;  %v1587_v48 = vshrl.u32 %v5266_v57, %v4225_v40  ;;  %v1578_v62 = vshrl.u32 %v5220_v12, %v4225_v40 }
 0x281   :  { %v1412_v42 = vadd.s32 %v1411_v26, %v1407_v17  ;;  %v4239_v24 = vmul.u32.u64.low %v4233_v10, %v1295_v33  ;;  %v4240_v63 = vmul.u32.u64.high %v4233_v10, %v1295_v33, %v4239_v24  ;;  %v1586_v15 = vshll.u32 %v5221_v3, %v1574_v61 }
 0x282   :  { %v4243_v35 = vmul.u32.u64.low %v4233_v10, %v1291_v44  ;;  %v4244_v0 = vmul.u32.u64.high %v4233_v10, %v1291_v44, %v4243_v35  ;;  %v1590_v31 = vshrl.u32 %v5267_v5, %v4225_v40  ;;  %v5194_v45 = vand.u32 2147483647, %v4198_v14 }
 0x283   :  { %v4253_v8 = vshrl.u32 %v1572_v13, 5  ;;  %v1581_v47 = vshrl.u32 %v5218_v46, %v4225_v40  ;;  %v1584_v18 = vshrl.u32 %v5221_v3, %v4225_v40  ;;  %v2745_v9 = vadd.s32 4294967169, %v1460_v23 }
 0x284   :  { %v1413_v43 = vadd.s32 536870912, %v1412_v42  ;;  %v1577_v16 = vshll.u32 %v5219_v2, %v1574_v61  ;;  %v1588_v55 = vor.u32 %v1587_v48, %v1586_v15  ;;  %v1589_v36 = vshll.u32 %v5266_v57, %v1574_v61 }
 0x285   :  { %v1567_v29 = vand.u32 8388607, %v5195_v39  ;;  %v1580_v54 = vshll.u32 %v5220_v12, %v1574_v61  ;;  %v1583_v22 = vshll.u32 %v5218_v46, %v1574_v61  ;;  %v1264_v13 = vshrl.u32 %v5219_v2, %v4160_v27 }
 0x286   :  { %v1285_v30 = vsel %vm1283_vm9, %v1273_v56, 2102212464  ;;  %v4269_v1 = vor.u32 %v1578_v62, %v1577_v16  ;;  %v1591_v59 = vor.u32 %v1590_v31, %v1589_v36  ;;  %vm1595_vm3 = vcmp.lt.s32.totalorder %v4253_v8, 4 }
 0x287   :  { %v4271_v51 = vor.u32 %v1581_v47, %v1580_v54  ;;  %v1585_v21 = vor.u32 %v1584_v18, %v1583_v22  ;;  %v1466_v37 = vadd.s32 1, %v2745_v9  ;;  %v4274_v28 = vshrl.u32 %v1413_v43, 30 }
 0x288   :  { %v1601_v61 = vsel %vm1595_vm3, %v1588_v55, 920167782  ;;  %v1463_v27 = vand.u32 8388607, %v5194_v45  ;;  %v1284_v56 = vsel %vm1280_vm5, %v1264_v13, %v1267_v7  ;;  %v1286_v58 = vsel %vm1282_vm13, %v1270_v11, %v1285_v30 }
 0x289   :  { %5268 = vst [vmem:[#allocation9_spill] sm:$0xff] %v4274_v28  ;;  %v1568_v41 = vor.u32 8388608, %v1567_v29  ;;  %vm1467_vm6 = vcmp.gt.s32.totalorder %v1466_v37, 0  ;;  %vm1592_vm7 = vcmp.lt.s32.totalorder %v4253_v8, 1  ;;  %vm1594_vm4 = vcmp.lt.s32.totalorder %v4253_v8, 3 }
 0x28a   :  { %v1605_v26 = vsel %vm1595_vm3, %v1591_v59, 1326507024  ;;  %v1468_v17 = vsel %vm1467_vm6, %v1466_v37, 0  ;;  %v1600_v44 = vsel %vm1592_vm7, %v4269_v1, %v4271_v51  ;;  %v1602_v7 = vsel %vm1594_vm4, %v1585_v21, %v1601_v61 }
 0x28b   :  { %v1470_v33 = vand.u32 31, %v1468_v17  ;;  %v4295_v11 = vadd.f32 %v2865_v20, %v4115_v60  ;;  %v1415_v23 = vshll.u32 %v4274_v28, 30  ;;  %v1287_v48 = vsel %vm1281_vm0, %v1284_v56, %v1286_v58 }
 0x28c   :  { %vm1305_vm14 = vc.u32 %v4240_v63, %v4243_v35  ;;  %v1306_v24 = vadd.s32 1, %v4244_v0  ;;  %vm1593_vm15 = vcmp.lt.s32.totalorder %v4253_v8, 2  ;;  %v1604_v62 = vsel %vm1592_vm7, %v4271_v51, %v1585_v21 }
 0x28d   :  { %v1606_v60 = vsel %vm1594_vm4, %v1588_v55, %v1605_v26  ;;  %v1471_v15 = vsub.s32 32, %v1470_v33  ;;  %v1603_v31 = vsel %vm1593_vm15, %v1600_v44, %v1602_v7  ;;  %v1303_v19 = vmul.u32 %v4233_v10, %v1287_v48 }
 0x28e   :  { %v4312_v47 = vshll.u32 %v1568_v41, 8  ;;  %v1464_v18 = vor.u32 8388608, %v1463_v27  ;;  %v1771_v9 = vand.u32 2139095040, %v4295_v11  ;;  %v4315_v43 = vsub.s32 %v1412_v42, %v1415_v23 }
 0x28f   :  { %v1307_v16 = vsel %vm1305_vm14, %v1306_v24, %v4244_v0  ;;  %v1607_v36 = vsel %vm1593_vm15, %v1604_v62, %v1606_v60  ;;  %v1474_v55 = vshrl.u32 %v5220_v12, %v1471_v15  ;;  %v1477_v10 = vshrl.u32 %v5218_v46, %v1471_v15 }
 0x290   :  { %v4322_v29 = vmul.u32.u64.low %v4312_v47, %v1603_v31  ;;  %v4323_v54 = vmul.u32.u64.high %v4312_v47, %v1603_v31, %v4322_v29  ;;  %v1480_v22 = vshrl.u32 %v5221_v3, %v1471_v15  ;;  %v1473_v13 = vshll.u32 %v5219_v2, %v1470_v33 }
 0x291   :  { %v1476_v42 = vshll.u32 %v5220_v12, %v1470_v33  ;;  %v1482_v0 = vshll.u32 %v5221_v3, %v1470_v33  ;;  %v1483_v30 = vshrl.u32 %v5266_v57, %v1471_v15  ;;  %v4336_v61 = vshrl.u32 %v1468_v17, 5 }
 0x292   :  { %v4333_v59 = vmul.u32.u64.low %v4312_v47, %v1607_v36  ;;  %v4334_v37 = vmul.u32.u64.high %v4312_v47, %v1607_v36, %v4333_v59  ;;  %v1479_v27 = vshll.u32 %v5218_v46, %v1470_v33  ;;  %v1475_v20 = vor.u32 %v1474_v55, %v1473_v13 }
 0x293   :  { %v1478_v56 = vor.u32 %v1477_v10, %v1476_v42  ;;  %v1484_v58 = vor.u32 %v1483_v30, %v1482_v0  ;;  %v1772_v41 = vshrl.u32 %v1771_v9, 23  ;;  %v1418_v26 = vsub.s32 0, %v4315_v43 }
 0x294   :  { %v1481_v44 = vor.u32 %v1480_v22, %v1479_v27  ;;  %v1485_v7 = vshll.u32 %v5266_v57, %v1470_v33  ;;  %v1486_v23 = vshrl.u32 %v5267_v5, %v1471_v15  ;;  %v4342_v48 = vadd.s32 %v1307_v16, %v1303_v19 }
 0x295   :  { %v1576_v24 = vshrl.u32 %v5219_v2, %v4225_v40  ;;  %v4346_v17 = vshll.u32 %v1464_v18, 8  ;;  %v1597_v62 = vsel %vm1595_vm3, %v1585_v21, 2102212464  ;;  %vm1488_vm10 = vcmp.lt.s32.totalorder %v4336_v61, 1 }
 0x296   :  { %v1487_v60 = vor.u32 %v1486_v23, %v1485_v7  ;;  %vm1491_vm8 = vcmp.lt.s32.totalorder %v4336_v61, 4  ;;  %vm1490_vm1 = vcmp.lt.s32.totalorder %v4336_v61, 3  ;;  %v1496_v33 = vsel %vm1488_vm10, %v1475_v20, %v1478_v56 }
 0x297   :  { %v1497_v31 = vsel %vm1491_vm8, %v1484_v58, 920167782  ;;  %v2757_v19 = vadd.s32 4294967169, %v1772_v41  ;;  %v2742_v40 = vmin.u32 %v1418_v26, %v4315_v43  ;;  %vm1489_vm2 = vcmp.lt.s32.totalorder %v4336_v61, 2 }
 0x298   :  { %v1498_v21 = vsel %vm1490_vm1, %v1481_v44, %v1497_v31  ;;  %v1500_v18 = vsel %vm1488_vm10, %v1478_v56, %v1481_v44  ;;  %v1596_v9 = vsel %vm1592_vm7, %v1576_v24, %v4269_v1  ;;  %v1598_v16 = vsel %vm1594_vm4, %v4271_v51, %v1597_v62 }
 0x299   :  { %v1499_v36 = vsel %vm1489_vm2, %v1496_v33, %v1498_v21  ;;  %v1501_v55 = vsel %vm1491_vm8, %v1487_v60, 1326507024  ;;  %v1309_v10 = vadd.s32 536870912, %v4342_v48  ;;  %v1618_v22 = vadd.s32 1, %v4323_v54  ;;  %v1229_v60 = vpop.f32.mrf.mxu1 }
 0x29a   :  { %v1502_v13 = vsel %vm1490_vm1, %v1484_v58, %v1501_v55  ;;  %v4380_v42 = vmul.u32.u64.low %v4346_v17, %v1499_v36  ;;  %v4381_v0 = vmul.u32.u64.high %v4346_v17, %v1499_v36, %v4380_v42  ;;  %v1778_v51 = vadd.s32 1, %v2757_v19 }
 0x29b   :  { %v1503_v1 = vsel %vm1489_vm2, %v1500_v18, %v1502_v13  ;;  %v1420_v30 = vclz %v2742_v40  ;;  %v1599_v59 = vsel %vm1593_vm15, %v1596_v9, %v1598_v16  ;;  %vm1617_vm9 = vc.u32 %v4334_v37, %v4322_v29 }
 0x29c   :  { %v1493_v27 = vsel %vm1491_vm8, %v1481_v44, 2102212464  ;;  %v4391_v58 = vmul.u32.u64.low %v4346_v17, %v1503_v1  ;;  %v4392_v41 = vmul.u32.u64.high %v4346_v17, %v1503_v1, %v4391_v58  ;;  %vm1779_vm12 = vcmp.gt.s32.totalorder %v1778_v51, 0 }
 0x29d   :  { %v4394_v26 = vshrl.u32 %v1309_v10, 30  ;;  %v1472_v7 = vshrl.u32 %v5219_v2, %v1471_v15  ;;  %v5197_v23 = vand.u32 2147483647, %v4295_v11  ;;  %v1780_v24 = vsel %vm1779_vm12, %v1778_v51, 0 }
 0x29e   :  { %v1619_v8 = vsel %vm1617_vm9, %v1618_v22, %v4323_v54  ;;  %v1782_v62 = vand.u32 31, %v1780_v24  ;;  %v1615_v33 = vmul.u32 %v4312_v47, %v1599_v59  ;;  %v1494_v31 = vsel %vm1490_vm1, %v1478_v56, %v1493_v27 }
 0x29f   :  { %5269 = vst [vmem:[#allocation14_spill] sm:$0xff] %v4394_v26  ;;  %v1492_v44 = vsel %vm1488_vm10, %v1472_v7, %v1475_v20  ;;  %v4404_v19 = vadd.s32 4294967294, %v1420_v30  ;;  %v1311_v15 = vshll.u32 %v4394_v26, 30  ;;  %v1775_v54 = vand.u32 8388607, %v5197_v23 }
 0x2a0   :  { %v1783_v40 = vsub.s32 32, %v1782_v62  ;;  %v4407_v21 = vadd.s32 %v1619_v8, %v1615_v33  ;;  %v4412_v18 = vadd.f32 %v1229_v60, %v4117_v38  ;;  %v1495_v47 = vsel %vm1489_vm2, %v1492_v44, %v1494_v31 }
 0x2a1   :  { %v1514_v20 = vadd.s32 1, %v4381_v0  ;;  %v1785_v16 = vshll.u32 %v5219_v2, %v1782_v62  ;;  %v1788_v36 = vshll.u32 %v5220_v12, %v1782_v62  ;;  %v1791_v55 = vshll.u32 %v5218_v46, %v1782_v62 }
 0x2a2   :  { %v1786_v56 = vshrl.u32 %v5220_v12, %v1783_v40  ;;  %v1789_v9 = vshrl.u32 %v5218_v46, %v1783_v40  ;;  %v1792_v10 = vshrl.u32 %v5221_v3, %v1783_v40  ;;  %vm1513_vm5 = vc.u32 %v4392_v41, %v4380_v42 }
 0x2a3   :  { %v1781_v38 = vshrl.u32 %v1780_v24, 5  ;;  %v1794_v61 = vshll.u32 %v5221_v3, %v1782_v62  ;;  %v1795_v22 = vshrl.u32 %v5266_v57, %v1783_v40  ;;  %v4428_v13 = vsub.s32 %v4342_v48, %v1311_v15 }
 0x2a4   :  { %v1787_v1 = vor.u32 %v1786_v56, %v1785_v16  ;;  %v1790_v51 = vor.u32 %v1789_v9, %v1788_v36  ;;  %v1793_v30 = vor.u32 %v1792_v10, %v1791_v55  ;;  %v1776_v59 = vor.u32 8388608, %v1775_v54 }
 0x2a5   :  { %v1796_v27 = vor.u32 %v1795_v22, %v1794_v61  ;;  %v1797_v58 = vshll.u32 %v5266_v57, %v1782_v62  ;;  %v1798_v7 = vshrl.u32 %v5267_v5, %v1783_v40  ;;  %v1621_v8 = vadd.s32 536870912, %v4407_v21 }
 0x2a6   :  { %v1511_v24 = vmul.u32 %v4346_v17, %v1495_v47  ;;  %v1515_v60 = vsel %vm1513_vm5, %v1514_v20, %v4381_v0  ;;  %v1667_v33 = vand.u32 2139095040, %v4412_v18  ;;  %v1784_v48 = vshrl.u32 %v5219_v2, %v1783_v40 }
 0x2a7   :  { %v1799_v44 = vor.u32 %v1798_v7, %v1797_v58  ;;  %vm1800_vm13 = vcmp.lt.s32.totalorder %v1781_v38, 1  ;;  %vm1803_vm0 = vcmp.lt.s32.totalorder %v1781_v38, 4  ;;  %vm1802_vm3 = vcmp.lt.s32.totalorder %v1781_v38, 3 }
 0x2a8   :  { %v1805_v31 = vsel %vm1803_vm0, %v1793_v30, 2102212464  ;;  %v1808_v15 = vsel %vm1800_vm13, %v1787_v1, %v1790_v51  ;;  %v1809_v54 = vsel %vm1803_vm0, %v1796_v27, 920167782  ;;  %vm1801_vm6 = vcmp.lt.s32.totalorder %v1781_v38, 2 }
 0x2a9   :  { %v1810_v62 = vsel %vm1802_vm3, %v1793_v30, %v1809_v54  ;;  %v1812_v56 = vsel %vm1800_vm13, %v1790_v51, %v1793_v30  ;;  %v1816_v9 = vshll.u32 %v1776_v59, 8  ;;  %v1516_v16 = vadd.s32 %v1515_v60, %v1511_v24 }
 0x2aa   :  { %v1804_v36 = vsel %vm1800_vm13, %v1784_v48, %v1787_v1  ;;  %v1811_v17 = vsel %vm1801_vm6, %v1808_v15, %v1810_v62  ;;  %v1813_v0 = vsel %vm1803_vm0, %v1799_v44, 1326507024  ;;  %v1806_v47 = vsel %vm1802_vm3, %v1790_v51, %v1805_v31 }
 0x2ab   :  { %v1814_v20 = vsel %vm1802_vm3, %v1796_v27, %v1813_v0  ;;  %v4438_v55 = vmul.u32.u64.low %v1816_v9, %v1811_v17  ;;  %v4439_v40 = vmul.u32.u64.high %v1816_v9, %v1811_v17, %v4438_v55  ;;  %vm2744_vm7 = vcmp.lt.s32.totalorder %v4404_v19, 0 }
 0x2ac   :  { %v1815_v10 = vsel %vm1801_vm6, %v1812_v56, %v1814_v20  ;;  %v1668_v61 = vshrl.u32 %v1667_v33, 23  ;;  %v1314_v22 = vsub.s32 0, %v4428_v13  ;;  %v4445_v30 = vshrl.u32 %v1621_v8, 30  ;;  %v2868_v33 = vpop.f32.mrf.mxu1  ;;  %v2080_v20 = vld [vmem:[%s5146_s5] sm:$0xff] }
 0x2ad   :  { %v4447_v59 = vmul.u32.u64.low %v1816_v9, %v1815_v10  ;;  %v4448_v1 = vmul.u32.u64.high %v1816_v9, %v1815_v10, %v4447_v59  ;;  %v1517_v58 = vadd.s32 536870912, %v1516_v16  ;;  %v1807_v51 = vsel %vm1801_vm6, %v1804_v36, %v1806_v47 }
 0x2ae   :  { %v5196_v27 = vand.u32 2147483647, %v4412_v18  ;;  %v2753_v7 = vadd.s32 4294967169, %v1668_v61  ;;  %v1826_v24 = vadd.s32 1, %v4439_v40  ;;  %v4454_v60 = vsel %vm2744_vm7, 0, %v4404_v19 }
 0x2af   :  { %v4457_v44 = vmin.u32 %v1314_v22, %v4428_v13  ;;  %v1623_v8 = vshll.u32 %v4445_v30, 30  ;;  %v1823_v31 = vmul.u32 %v1816_v9, %v1807_v51  ;;  %vm1825_vm4 = vc.u32 %v4448_v1, %v4438_v55 }
 0x2b0   :  { %v1674_v48 = vadd.s32 1, %v2753_v7  ;;  %v4462_v38 = vshrl.u32 %v1517_v58, 30  ;;  %v1827_v15 = vsel %vm1825_vm4, %v1826_v24, %v4439_v40  ;;  %v1671_v54 = vand.u32 8388607, %v5196_v27 }
 0x2b1   :  { %v1828_v19 = vadd.s32 %v1827_v15, %v1823_v31  ;;  %v4468_v56 = vadd.f32 %v2868_v33, %v4111_v32  ;;  %v4477_v40 = vsub.s32 %v4407_v21, %v1623_v8  ;;  %vm5271_vm15 = vcmask 490496  }
 0x2b2   :  { %5270 = vst [vmem:[#allocation7_spill] sm:$0xff] %v4462_v38  ;;  %vm1675_vm14 = vcmp.gt.s32.totalorder %v1674_v48, 0  ;;  %v1519_v10 = vshll.u32 %v4462_v38, 30  ;;  %v1672_v61 = vor.u32 8388608, %v1671_v54  ;;  %2885 = vmatprep.mubr.msk.f32.mxu0 %vm5271_vm15, %v2080_v20  ;;  %v1239_v54 = vpop.f32.mrf.mxu1 }
 0x2b3   :  { %v1676_v62 = vsel %vm1675_vm14, %v1674_v48, 0  ;;  %v1829_v47 = vadd.s32 536870912, %v1828_v19  ;;  %v1979_v51 = vand.u32 2139095040, %v4468_v56  ;;  %v4501_v17 = vadd.f32 %v1239_v54, %v4113_v49 }
 0x2b4   :  { %v1678_v36 = vand.u32 31, %v1676_v62  ;;  %v1677_v59 = vshrl.u32 %v1676_v62, 5  ;;  %v1626_v62 = vsub.s32 0, %v4477_v40  ;;  %v1712_v27 = vshll.u32 %v1672_v61, 8 }
 0x2b5   :  { %v4481_v22 = vshrl.u32 %v1829_v47, 30  ;;  %v4494_v47 = vsub.s32 %v1516_v16, %v1519_v10  ;;  %v1980_v9 = vshrl.u32 %v1979_v51, 23  ;;  %v5200_v16 = vand.u32 2147483647, %v4468_v56 }
 0x2b6   :  { %v1679_v32 = vsub.s32 32, %v1678_v36  ;;  %v1681_v58 = vshll.u32 %v5219_v2, %v1678_v36  ;;  %v1684_v24 = vshll.u32 %v5220_v12, %v1678_v36  ;;  %v1687_v8 = vshll.u32 %v5218_v46, %v1678_v36 }
 0x2b7   :  { %v1831_v33 = vshll.u32 %v4481_v22, 30  ;;  %v1690_v31 = vshll.u32 %v5221_v3, %v1678_v36  ;;  %v1693_v23 = vshll.u32 %v5266_v57, %v1678_v36  ;;  %vm1696_vm10 = vcmp.lt.s32.totalorder %v1677_v59, 1 }
 0x2b8   :  { %v1682_v7 = vshrl.u32 %v5220_v12, %v1679_v32  ;;  %v1685_v21 = vshrl.u32 %v5218_v46, %v1679_v32  ;;  %v1688_v48 = vshrl.u32 %v5221_v3, %v1679_v32  ;;  %v1691_v15 = vshrl.u32 %v5266_v57, %v1679_v32 }
 0x2b9   :  { %v4496_v6 = vsub.s32 %v1828_v19, %v1831_v33  ;;  %v1694_v0 = vshrl.u32 %v5267_v5, %v1679_v32  ;;  %vm1699_vm8 = vcmp.lt.s32.totalorder %v1677_v59, 4  ;;  %vm1698_vm1 = vcmp.lt.s32.totalorder %v1677_v59, 3 }
 0x2ba   :  { %v1683_v20 = vor.u32 %v1682_v7, %v1681_v58  ;;  %v1686_v53 = vor.u32 %v1685_v21, %v1684_v24  ;;  %v1689_v45 = vor.u32 %v1688_v48, %v1687_v8  ;;  %v1692_v39 = vor.u32 %v1691_v15, %v1690_v31 }
 0x2bb   :  { %v1834_v26 = vsub.s32 0, %v4496_v6  ;;  %v1695_v10 = vor.u32 %v1694_v0, %v1693_v23  ;;  %v1680_v61 = vshrl.u32 %v5219_v2, %v1679_v32  ;;  %vm1697_vm2 = vcmp.lt.s32.totalorder %v1677_v59, 2 }
 0x2bc   :  { %v1704_v19 = vsel %vm1696_vm10, %v1683_v20, %v1686_v53  ;;  %v1705_v58 = vsel %vm1699_vm8, %v1692_v39, 920167782  ;;  %v1701_v36 = vsel %vm1699_vm8, %v1689_v45, 2102212464  ;;  %v1708_v49 = vsel %vm1696_vm10, %v1686_v53, %v1689_v45 }
 0x2bd   :  { %v1706_v7 = vsel %vm1698_vm1, %v1689_v45, %v1705_v58  ;;  %v1709_v24 = vsel %vm1699_vm8, %v1695_v10, 1326507024  ;;  %v2765_v21 = vadd.s32 4294967169, %v1980_v9  ;;  %v2758_v48 = vmin.u32 %v1834_v26, %v4496_v6 }
 0x2be   :  { %v1707_v51 = vsel %vm1697_vm2, %v1704_v19, %v1706_v7  ;;  %v1700_v33 = vsel %vm1696_vm10, %v1680_v61, %v1683_v20  ;;  %v1710_v23 = vsel %vm1698_vm1, %v1692_v39, %v1709_v24  ;;  %v1875_v0 = vand.u32 2139095040, %v4501_v17 }
 0x2bf   :  { %v1702_v8 = vsel %vm1698_vm1, %v1686_v53, %v1701_v36  ;;  %v1711_v31 = vsel %vm1697_vm2, %v1708_v49, %v1710_v23  ;;  %v4513_v32 = vmul.u32.u64.low %v1712_v27, %v1707_v51  ;;  %v4514_v15 = vmul.u32.u64.high %v1712_v27, %v1707_v51, %v4513_v32 }
 0x2c0   :  { %v2750_v54 = vmin.u32 %v1626_v62, %v4477_v40  ;;  %v1522_v45 = vsub.s32 0, %v4494_v47  ;;  %v4519_v10 = vmul.u32.u64.low %v1712_v27, %v1711_v31  ;;  %v4520_v9 = vmul.u32.u64.high %v1712_v27, %v1711_v31, %v4519_v10 }
 0x2c1   :  { %v1408_v26 = vadd.s32 %v4174_v25, %v4181_v50  ;;  %v1983_v39 = vand.u32 8388607, %v5200_v16  ;;  %v1986_v53 = vadd.s32 1, %v2765_v21  ;;  %v1703_v20 = vsel %vm1697_vm2, %v1700_v33, %v1702_v8 }
 0x2c2   :  { %v1876_v19 = vshrl.u32 %v1875_v0, 23  ;;  %v5272_v58 = vsub.s32 32, %v4454_v60  ;;  %v1836_v36 = vclz %v2758_v48  ;;  %v1722_v62 = vadd.s32 1, %v4514_v15 }
 0x2c3   :  { %vm1987_vm9 = vcmp.gt.s32.totalorder %v1986_v53, 0  ;;  %v5273_v7 = vsub.s32 4294967266, %v4454_v60  ;;  %v5274_v25 = vclz %v4457_v44  ;;  %v1628_v49 = vclz %v2750_v54 }
 0x2c4   :  { %v1426_v61 = vshrl.u32 %v1408_v26, %v5272_v58  ;;  %v2746_v59 = vmin.u32 %v1522_v45, %v4494_v47  ;;  %v1719_v24 = vmul.u32 %v1712_v27, %v1703_v20  ;;  %vm1721_vm12 = vc.u32 %v4520_v9, %v4513_v32 }
 0x2c5   :  { %v4532_v51 = vadd.s32 127, %v5273_v7  ;;  %v4536_v50 = vadd.s32 4294967294, %v5274_v25  ;;  %v1984_v21 = vor.u32 8388608, %v1983_v39  ;;  %v1988_v48 = vsel %vm1987_vm9, %v1986_v53, 0 }
 0x2c6   :  { %v1425_v33 = vshll.u32 %v4315_v43, %v4454_v60  ;;  %v1723_v23 = vsel %vm1721_vm12, %v1722_v62, %v4514_v15  ;;  %v2761_v0 = vadd.s32 4294967169, %v1876_v19  ;;  %v4546_v44 = vadd.s32 %v4243_v35, %v4240_v63 }
 0x2c7   :  { %v2759_v8 = vadd.s32 4294967294, %v1836_v36  ;;  %v1724_v31 = vadd.s32 %v1723_v23, %v1719_v24  ;;  %v1990_v54 = vand.u32 31, %v1988_v48  ;;  %v1430_v27 = vshll.u32 %v4532_v51, 23 }
 0x2c8   :  { %v4548_v45 = vor.u32 %v1426_v61, %v1425_v33  ;;  %v4551_v10 = vadd.s32 4294967294, %v1628_v49  ;;  %v1524_v26 = vclz %v2746_v59  ;;  %vm2740_vm5 = vcmp.lt.s32.totalorder %v4536_v50, 0 }
 0x2c9   :  { %v1725_v43 = vadd.s32 536870912, %v1724_v31  ;;  %v1991_v60 = vsub.s32 32, %v1990_v54  ;;  %v4554_v15 = vshll.u32 %v1984_v21, 8  ;;  %v1989_v63 = vshrl.u32 %v1988_v48, 5 }
 0x2ca   :  { %v1993_v35 = vshll.u32 %v5219_v2, %v1990_v54  ;;  %v1996_v53 = vshll.u32 %v5220_v12, %v1990_v54  ;;  %v1882_v20 = vadd.s32 1, %v2761_v0  ;;  %vm2760_vm13 = vcmp.lt.s32.totalorder %v2759_v8, 0 }
 0x2cb   :  { %v4559_v19 = vshrl.u32 %v1725_v43, 30  ;;  %v1994_v58 = vshrl.u32 %v5220_v12, %v1991_v60  ;;  %v1997_v61 = vshrl.u32 %v5218_v46, %v1991_v60  ;;  %v1999_v36 = vshll.u32 %v5218_v46, %v1990_v54 }
 0x2cc   :  { %v2000_v62 = vshrl.u32 %v5221_v3, %v1991_v60  ;;  %v2002_v7 = vshll.u32 %v5221_v3, %v1990_v54  ;;  %v2003_v51 = vshrl.u32 %v5266_v57, %v1991_v60  ;;  %v2005_v25 = vshll.u32 %v5266_v57, %v1990_v54 }
 0x2cd   :  { %v1727_v49 = vshll.u32 %v4559_v19, 30  ;;  %v1995_v59 = vor.u32 %v1994_v58, %v1993_v35  ;;  %v1998_v24 = vor.u32 %v1997_v61, %v1996_v53  ;;  %v2006_v21 = vshrl.u32 %v5267_v5, %v1991_v60 }
 0x2ce   :  { %v2001_v48 = vor.u32 %v2000_v62, %v1999_v36  ;;  %v2004_v33 = vor.u32 %v2003_v51, %v2002_v7  ;;  %vm2008_vm0 = vcmp.lt.s32.totalorder %v1989_v63, 1  ;;  %vm1883_vm3 = vcmp.gt.s32.totalorder %v1882_v20, 0 }
 0x2cf   :  { %v4570_v23 = vsub.s32 %v1724_v31, %v1727_v49  ;;  %v1992_v0 = vshrl.u32 %v5219_v2, %v1991_v60  ;;  %v2007_v43 = vor.u32 %v2006_v21, %v2005_v25  ;;  %vm2011_vm6 = vcmp.lt.s32.totalorder %v1989_v63, 4 }
 0x2d0   :  { %vm2010_vm7 = vcmp.lt.s32.totalorder %v1989_v63, 3  ;;  %v2013_v16 = vsel %vm2011_vm6, %v2001_v48, 2102212464  ;;  %v2016_v39 = vsel %vm2008_vm0, %v1995_v59, %v1998_v24  ;;  %v2017_v54 = vsel %vm2011_vm6, %v2004_v33, 920167782 }
 0x2d1   :  { %v1730_v28 = vsub.s32 0, %v4570_v23  ;;  %vm2009_vm4 = vcmp.lt.s32.totalorder %v1989_v63, 2  ;;  %v2018_v35 = vsel %vm2010_vm7, %v2001_v48, %v2017_v54  ;;  %v2020_v53 = vsel %vm2008_vm0, %v1998_v24, %v2001_v48 }
 0x2d2   :  { %v2012_v58 = vsel %vm2008_vm0, %v1992_v0, %v1995_v59  ;;  %v2014_v61 = vsel %vm2010_vm7, %v1998_v24, %v2013_v16  ;;  %v2019_v36 = vsel %vm2009_vm4, %v2016_v39, %v2018_v35  ;;  %v2021_v62 = vsel %vm2011_vm6, %v2007_v43, 1326507024 }
 0x2d3   :  { %v2754_v31 = vmin.u32 %v1730_v28, %v4570_v23  ;;  %v2022_v7 = vsel %vm2010_vm7, %v2004_v33, %v2021_v62  ;;  %v4577_v60 = vmul.u32.u64.low %v4554_v15, %v2019_v36  ;;  %v4578_v51 = vmul.u32.u64.high %v4554_v15, %v2019_v36, %v4577_v60 }
 0x2d4   :  { %v4584_v25 = vsel %vm2740_vm5, 0, %v4536_v50  ;;  %v2747_v49 = vadd.s32 4294967294, %v1524_v26  ;;  %v2023_v59 = vsel %vm2009_vm4, %v2020_v53, %v2022_v7  ;;  %v1884_v16 = vsel %vm1883_vm3, %v1882_v20, 0 }
 0x2d5   :  { %vm2752_vm14 = vcmp.lt.s32.totalorder %v4551_v10, 0  ;;  %v4590_v28 = vmul.u32.u64.low %v4554_v15, %v2023_v59  ;;  %v4591_v39 = vmul.u32.u64.high %v4554_v15, %v2023_v59, %v4590_v28  ;;  %v5275_v24 = vand.u32 2147483647, %v4501_v17 }
 0x2d6   :  { %v4596_v48 = vsel %vm2760_vm13, 0, %v2759_v8  ;;  %v1732_v33 = vclz %v2754_v31  ;;  %v2015_v50 = vsel %vm2009_vm4, %v2012_v58, %v2014_v61  ;;  %v1886_v26 = vand.u32 31, %v1884_v16 }
 0x2d7   :  { %v1879_v21 = vand.u32 8388607, %v5275_v24  ;;  %v4599_v0 = vor.u32 4788187, %v1430_v27  ;;  %v4604_v43 = vadd.s32 %v4322_v29, %v4334_v37  ;;  %v2034_v54 = vadd.s32 1, %v4578_v51 }
 0x2d8   :  { %v1324_v35 = vsub.s32 4294967266, %v4584_v25  ;;  %v4609_v53 = vsel %vm2752_vm14, 0, %v4551_v10  ;;  %vm2748_vm15 = vcmp.lt.s32.totalorder %v2747_v49, 0  ;;  %v1887_v8 = vsub.s32 32, %v1886_v26 }
 0x2d9   :  { %v1844_v63 = vsub.s32 4294967266, %v4596_v48  ;;  %v2031_v27 = vmul.u32 %v4554_v15, %v2015_v50  ;;  %vm2033_vm10 = vc.u32 %v4591_v39, %v4577_v60  ;;  %v1880_v58 = vor.u32 8388608, %v1879_v21 }
 0x2da   :  { %v2755_v61 = vadd.s32 4294967294, %v1732_v33  ;;  %v2035_v29 = vsel %vm2033_vm10, %v2034_v54, %v4578_v51  ;;  %v1885_v37 = vshrl.u32 %v1884_v16, 5  ;;  %v1890_v36 = vshrl.u32 %v5220_v12, %v1887_v8 }
 0x2db   :  { %v2036_v62 = vadd.s32 %v2035_v29, %v2031_v27  ;;  %v1889_v10 = vshll.u32 %v5219_v2, %v1886_v26  ;;  %v1892_v31 = vshll.u32 %v5220_v12, %v1886_v26  ;;  %v1895_v7 = vshll.u32 %v5218_v46, %v1886_v26 }
 0x2dc   :  { %v1893_v59 = vshrl.u32 %v5218_v46, %v1887_v8  ;;  %v1896_v15 = vshrl.u32 %v5221_v3, %v1887_v8  ;;  %v1898_v28 = vshll.u32 %v5221_v3, %v1886_v26  ;;  %v1899_v24 = vshrl.u32 %v5266_v57, %v1887_v8 }
 0x2dd   :  { %v1824_v51 = vadd.s32 %v4438_v55, %v4448_v1  ;;  %v2037_v16 = vadd.s32 536870912, %v2036_v62  ;;  %v1891_v21 = vor.u32 %v1890_v36, %v1889_v10  ;;  %v1901_v33 = vshll.u32 %v5266_v57, %v1886_v26 }
 0x2de   :  { %v1894_v50 = vor.u32 %v1893_v59, %v1892_v31  ;;  %v1897_v54 = vor.u32 %v1896_v15, %v1895_v7  ;;  %v1900_v27 = vor.u32 %v1899_v24, %v1898_v28  ;;  %v1902_v29 = vshrl.u32 %v5267_v5, %v1887_v8 }
 0x2df   :  { %v4629_v20 = vsel %vm2748_vm15, 0, %v2747_v49  ;;  %v1840_v46 = vsub.s32 32, %v4596_v48  ;;  %v1845_v3 = vadd.s32 127, %v1844_v63  ;;  %v4632_v12 = vshrl.u32 %v2037_v16, 30 }
 0x2e0   :  { %vm2756_vm8 = vcmp.lt.s32.totalorder %v2755_v61, 0  ;;  %v1903_v38 = vor.u32 %v1902_v29, %v1901_v33  ;;  %vm1904_vm1 = vcmp.lt.s32.totalorder %v1885_v37, 1  ;;  %v1920_v55 = vshll.u32 %v1880_v58, 8 }
 0x2e1   :  { %v2039_v1 = vshll.u32 %v4632_v12, 30  ;;  %vm1906_vm2 = vcmp.lt.s32.totalorder %v1885_v37, 3  ;;  %vm1907_vm9 = vcmp.lt.s32.totalorder %v1885_v37, 4  ;;  %v1912_v26 = vsel %vm1904_vm1, %v1891_v21, %v1894_v50 }
 0x2e2   :  { %v1909_v36 = vsel %vm1907_vm9, %v1897_v54, 2102212464  ;;  %v1913_v10 = vsel %vm1907_vm9, %v1900_v27, 920167782  ;;  %v1916_v49 = vsel %vm1904_vm1, %v1894_v50, %v1897_v54  ;;  %v1917_v31 = vsel %vm1907_vm9, %v1903_v38, 1326507024 }
 0x2e3   :  { %v4637_v7 = vsub.s32 %v2036_v62, %v2039_v1  ;;  %v1888_v63 = vshrl.u32 %v5219_v2, %v1887_v8  ;;  %vm1905_vm12 = vcmp.lt.s32.totalorder %v1885_v37, 2  ;;  %v1914_v59 = vsel %vm1906_vm2, %v1897_v54, %v1913_v10 }
 0x2e4   :  { %v1846_v15 = vshll.u32 %v1845_v3, 23  ;;  %v4642_v58 = vsel %vm2756_vm8, 0, %v2755_v61  ;;  %v1915_v28 = vsel %vm1905_vm12, %v1912_v26, %v1914_v59  ;;  %v1918_v24 = vsel %vm1906_vm2, %v1900_v27, %v1917_v31 }
 0x2e5   :  { %v2042_v16 = vsub.s32 0, %v4637_v7  ;;  %v1908_v33 = vsel %vm1904_vm1, %v1888_v63, %v1891_v21  ;;  %v1910_v38 = vsel %vm1906_vm2, %v1894_v50, %v1909_v36  ;;  %v1919_v62 = vsel %vm1905_vm12, %v1916_v49, %v1918_v24 }
 0x2e6   :  { %v4650_v8 = vmul.u32.u64.low %v1920_v55, %v1919_v62  ;;  %v4651_v29 = vmul.u32.u64.high %v1920_v55, %v1919_v62, %v4650_v8  ;;  %v4653_v54 = vmul.u32.u64.low %v1920_v55, %v1915_v28  ;;  %v4654_v3 = vmul.u32.u64.high %v1920_v55, %v1915_v28, %v4653_v54 }
 0x2e7   :  { %v1432_v61 = vand.u32 2147483647, %v4599_v0  ;;  %v1320_v1 = vsub.s32 32, %v4584_v25  ;;  %v1325_v27 = vadd.s32 127, %v1324_v35  ;;  %v2766_v26 = vmin.u32 %v2042_v16, %v4637_v7 }
 0x2e8   :  { %v1321_v21 = vshll.u32 %v4428_v13, %v4584_v25  ;;  %v1842_v50 = vshrl.u32 %v1824_v51, %v1840_v46  ;;  %v1740_v36 = vsub.s32 4294967266, %v4642_v58  ;;  %v1911_v10 = vsel %vm1905_vm12, %v1908_v33, %v1910_v38 }
 0x2e9   :  { %v1632_v49 = vsub.s32 32, %v4609_v53  ;;  %v1636_v31 = vsub.s32 4294967266, %v4609_v53  ;;  %v1532_v63 = vsub.s32 4294967266, %v4629_v20  ;;  %v2044_v59 = vclz %v2766_v26 }
 0x2ea   :  { %v1841_v35 = vshll.u32 %v4496_v6, %v4596_v48  ;;  %v1847_v28 = vor.u32 4788187, %v1846_v15  ;;  %vm1929_vm5 = vc.u32 %v4651_v29, %v4653_v54  ;;  %v1930_v46 = vadd.s32 1, %v4654_v3 }
 0x2eb   :  { %v1322_v13 = vshrl.u32 %v4546_v44, %v1320_v1  ;;  %v1326_v25 = vshll.u32 %v1325_v27, 23  ;;  %v2767_v37 = vadd.s32 4294967294, %v2044_v59  ;;  %v1927_v51 = vmul.u32 %v1920_v55, %v1911_v10 }
 0x2ec   :  { %v1633_v24 = vshll.u32 %v4477_v40, %v4609_v53  ;;  %v1843_v16 = vor.u32 %v1842_v50, %v1841_v35  ;;  %v1741_v33 = vadd.s32 127, %v1740_v36  ;;  %v1931_v38 = vsel %vm1929_vm5, %v1930_v46, %v4654_v3 }
 0x2ed   :  { %v1634_v6 = vshrl.u32 %v4604_v43, %v1632_v49  ;;  %v1637_v48 = vadd.s32 127, %v1636_v31  ;;  %vm2768_vm13 = vcmp.lt.s32.totalorder %v2767_v37, 0  ;;  %v1932_v15 = vadd.s32 %v1931_v38, %v1927_v51 }
 0x2ee   :  { %v1533_v62 = vadd.s32 127, %v1532_v63  ;;  %v1848_v8 = vand.u32 2147483647, %v1847_v28  ;;  %v1736_v26 = vsub.s32 32, %v4642_v58  ;;  %v2047_v44 = vsel %vm2768_vm13, 0, %v2767_v37 }
 0x2ef   :  { %v2032_v55 = vadd.s32 %v4577_v60, %v4591_v39  ;;  %v2048_v1 = vsub.s32 32, %v2047_v44  ;;  %v2052_v27 = vsub.s32 4294967266, %v2047_v44  ;;  %v1933_v40 = vadd.s32 536870912, %v1932_v15 }
 0x2f0   :  { %v1528_v53 = vsub.s32 32, %v4629_v20  ;;  %v1850_v50 = vcvt.s32.f32 %v1843_v16  ;;  %v1720_v43 = vadd.s32 %v4513_v32, %v4520_v9  ;;  %v1742_v3 = vshll.u32 %v1741_v33, 23 }
 0x2f1   :  { %v2049_v36 = vshll.u32 %v4637_v7, %v2047_v44  ;;  %v2050_v10 = vshrl.u32 %v2032_v55, %v2048_v1  ;;  %v2053_v49 = vadd.s32 127, %v2052_v27  ;;  %v4684_v31 = vshrl.u32 %v1933_v40, 30 }
 0x2f2   :  { %v1638_v63 = vshll.u32 %v1637_v48, 23  ;;  %v1512_v60 = vadd.s32 %v4380_v42, %v4392_v41  ;;  %v1534_v39 = vshll.u32 %v1533_v62, 23  ;;  %vm1770_vm0 = vcmp.lt.s32.totalorder %v4295_v11, 0 }
 0x2f3   :  { %v1738_v59 = vshrl.u32 %v1720_v43, %v1736_v26  ;;  %v1851_v35 = vmul.f32 %v1850_v50, %v1848_v8  ;;  %v2051_v28 = vor.u32 %v2050_v10, %v2049_v36  ;;  %v2054_v46 = vshll.u32 %v2053_v49, 23 }
 0x2f4   :  { %v1935_v32 = vshll.u32 %v4684_v31, 30  ;;  %v1323_v9 = vor.u32 %v1322_v13, %v1321_v21  ;;  %v1327_v37 = vor.u32 4788187, %v1326_v25  ;;  %v1737_v7 = vshll.u32 %v4570_v23, %v4642_v58 }
 0x2f5   :  { %v1743_v51 = vor.u32 4788187, %v1742_v3  ;;  %v1635_v16 = vor.u32 %v1634_v6, %v1633_v24  ;;  %v1530_v33 = vshrl.u32 %v1512_v60, %v1528_v53  ;;  %v2055_v38 = vor.u32 4788187, %v2054_v46 }
 0x2f6   :  { %v4692_v48 = vsub.s32 %v1932_v15, %v1935_v32  ;;  %v1639_v42 = vor.u32 4788187, %v1638_v63  ;;  %v1529_v41 = vshll.u32 %v4494_v47, %v4629_v20  ;;  %v1535_v62 = vor.u32 4788187, %v1534_v39 }
 0x2f7   :  { %v1739_v8 = vor.u32 %v1738_v59, %v1737_v7  ;;  %v1852_v26 = vxor.u32 2147483648, %v1851_v35  ;;  %v2056_v44 = vand.u32 2147483647, %v2055_v38  ;;  %v2058_v55 = vcvt.s32.f32 %v2051_v28 }
 0x2f8   :  { %v1938_v21 = vsub.s32 0, %v4692_v48  ;;  %v5276_v23 = vcvt.s32.f32 %v4548_v45  ;;  %v1328_v13 = vand.u32 2147483647, %v1327_v37  ;;  %v1330_v25 = vcvt.s32.f32 %v1323_v9 }
 0x2f9   :  { %v1744_v24 = vand.u32 2147483647, %v1743_v51  ;;  %v1531_v6 = vor.u32 %v1530_v33, %v1529_v41  ;;  %v2059_v15 = vmul.f32 %v2058_v55, %v2056_v44  ;;  %v2062_v47 = vsub.s32 4, %v4632_v12 }
 0x2fa   :  { %v1435_v58 = vmul.f32 %v5276_v23, %v1432_v61  ;;  %v2762_v1 = vmin.u32 %v1938_v21, %v4692_v48  ;;  %v1640_v20 = vand.u32 2147483647, %v1639_v42  ;;  %v1642_v27 = vcvt.s32.f32 %v1635_v16 }
 0x2fb   :  { %v1536_v40 = vand.u32 2147483647, %v1535_v62  ;;  %v1746_v53 = vcvt.s32.f32 %v1739_v8  ;;  %v1853_v50 = vsel %vm1770_vm0, %v1852_v26, %v1851_v35  ;;  %v2060_v0 = vxor.u32 2147483648, %v2059_v15 }
 0x2fc   :  { %v1940_v43 = vclz %v2762_v1  ;;  %v1854_v45 = vsub.s32 4, %v4481_v22  ;;  %v5277_v3 = vand.u32 2147483647, %v4468_v56  ;;  %vm1978_vm6 = vcmp.lt.s32.totalorder %v4468_v56, 0 }
 0x2fd   :  { %v1747_v61 = vmul.f32 %v1746_v53, %v1744_v24  ;;  %v5280_v10 = vand.u32 2147483647, %v4295_v11  ;;  %vm1354_vm4 = vcmp.lt.s32.totalorder %v4121_v52, 0  ;;  %v1538_v63 = vcvt.s32.f32 %v1531_v6 }
 0x2fe   :  { %vm4708_vm3 = vcmp.le.f32.partialorder %v5277_v3, 0.7853982  ;;  %v2061_v60 = vsel %vm1978_vm6, %v2060_v0, %v2059_v15  ;;  %v2763_v39 = vadd.s32 4294967294, %v1940_v43  ;;  %v2063_v59 = vsel %vm1978_vm6, %v2062_v47, %v4632_v12  ;;  %v5303_v47 = vld [vmem:[#allocation14_spill] sm:$0xff] }
 0x2ff   :  { %vm4715_vm7 = vcmp.le.f32.partialorder %v5280_v10, 0.7853982  ;;  %v1331_v35 = vmul.f32 %v1330_v25, %v1328_v13  ;;  %v1643_v28 = vmul.f32 %v1642_v27, %v1640_v20  ;;  %v2064_v46 = vsel %vm4708_vm3, %v4468_v56, %v2061_v60 }
 0x300   :  { %v1856_v32 = vsel %vm4715_vm7, %v4295_v11, %v1853_v50  ;;  %v1539_v9 = vmul.f32 %v1538_v63, %v1536_v40  ;;  %3013 = vcosq.f32 %v2064_v46  ;;  %vm2764_vm14 = vcmp.lt.s32.totalorder %v2763_v39, 0 }
 0x301   :  { %v1855_v37 = vsel %vm1770_vm0, %v1854_v45, %v4481_v22  ;;  %v1748_v7 = vxor.u32 2147483648, %v1747_v61  ;;  %3015 = vsinq.f32 %v2064_v46  ;;  %v1943_v12 = vsel %vm2764_vm14, 0, %v2763_v39 }
 0x302   :  { %v2065_v51 = vsel %vm4708_vm3, 0, %v2063_v59  ;;  %v1928_v16 = vadd.s32 %v4653_v54, %v4651_v29  ;;  %v1944_v33 = vsub.s32 32, %v1943_v12  ;;  %v1948_v38 = vsub.s32 4294967266, %v1943_v12 }
 0x303   :  { %3017 = vcosq.f32 %v1856_v32  ;;  %v1436_v42 = vxor.u32 2147483648, %v1435_v58  ;;  %v1644_v41 = vxor.u32 2147483648, %v1643_v28  ;;  %v1857_v62 = vsel %vm4715_vm7, 0, %v1855_v37 }
 0x304   :  { %3019 = vsinq.f32 %v1856_v32  ;;  %v1945_v22 = vshll.u32 %v4692_v48, %v1943_v12  ;;  %v1946_v8 = vshrl.u32 %v1928_v16, %v1944_v33  ;;  %v1949_v26 = vadd.s32 127, %v1948_v38 }
 0x305   :  { %v2069_v44 = vadd.s32 3, %v2065_v51  ;;  %vm1250_vm15 = vcmp.lt.s32.totalorder %v4124_v4, 0  ;;  %v1332_v55 = vxor.u32 2147483648, %v1331_v35  ;;  %v1540_v21 = vxor.u32 2147483648, %v1539_v9 }
 0x306   :  { %vm1666_vm10 = vcmp.lt.s32.totalorder %v4412_v18, 0  ;;  %vm1562_vm8 = vcmp.lt.s32.totalorder %v4127_v34, 0  ;;  %v1947_v54 = vor.u32 %v1946_v8, %v1945_v22  ;;  %v1950_v23 = vshll.u32 %v1949_v26, 23 }
 0x307   :  { %v1749_v29 = vsel %vm1666_vm10, %v1748_v7, %v1747_v61  ;;  %v1437_v13 = vsel %vm1354_vm4, %v1436_v42, %v1435_v58  ;;  %vm1458_vm1 = vcmp.lt.s32.totalorder %v4198_v14, 0  ;;  %v1861_v48 = vadd.s32 3, %v1857_v62 }
 0x308   :  { %v1750_v25 = vsub.s32 4, %v4559_v19  ;;  %v1645_v24 = vsel %vm1562_vm8, %v1644_v41, %v1643_v28  ;;  %v1951_v6 = vor.u32 4788187, %v1950_v23  ;;  %v2070_v15 = vand.u32 3, %v2069_v44 }
 0x309   :  { %v5283_v1 = vand.u32 2147483647, %v4412_v18  ;;  %v1333_v20 = vsel %vm1250_vm15, %v1332_v55, %v1331_v35  ;;  %v1541_v58 = vsel %vm1458_vm1, %v1540_v21, %v1539_v9  ;;  %vm1874_vm9 = vcmp.lt.s32.totalorder %v4501_v17, 0 }
 0x30a   :  { %v1952_v40 = vand.u32 2147483647, %v1951_v6  ;;  %v1954_v53 = vcvt.s32.f32 %v1947_v54  ;;  %vm2068_vm12 = vweird.f32 %v4468_v56  ;;  %v5286_v50 = vand.u32 2147483647, %v4501_v17  ;;  %v5301_v54 = vld [vmem:[#allocation7_spill] sm:$0xff] }
 0x30b   :  { %vm4750_vm2 = vcmp.le.f32.partialorder %v5283_v1, 0.7853982  ;;  %v5289_v43 = vand.u32 2147483647, %v4127_v34  ;;  %v1958_v61 = vsub.s32 4, %v4684_v31  ;;  %v4776_v3 = vand.u32 3, %v1861_v48 }
 0x30c   :  { %v1752_v27 = vsel %vm4750_vm2, %v4412_v18, %v1749_v29  ;;  %vm4765_vm5 = vcmp.le.f32.partialorder %v5286_v50, 0.7853982  ;;  %v1751_v36 = vsel %vm1666_vm10, %v1750_v25, %v4559_v19  ;;  %v1955_v49 = vmul.f32 %v1954_v53, %v1952_v40  ;;  %v5302_v48 = vld [vmem:[#allocation9_spill] sm:$0xff] }
 0x30d   :  { %vm4771_vm13 = vcmp.le.f32.partialorder %v5289_v43, 0.7853982  ;;  %vm2071_vm0 = vcmp.lt.s32.totalorder %v2070_v15, 2  ;;  %3021 = vcosq.f32 %v1752_v27  ;;  %v5292_v63 = vand.u32 2147483647, %v4198_v14  ;;  %v3014_v39 = vpop.eup %3013 }
 0x30e   :  { %v1648_v10 = vsel %vm4771_vm13, %v4127_v34, %v1645_v24  ;;  %vm2072_vm6 = vcmp.eq.s32.totalorder %v2070_v15, 0  ;;  %vm2075_vm7 = vcmp.eq.s32.totalorder %v2070_v15, 2  ;;  %3023 = vsinq.f32 %v1752_v27  ;;  %v3016_v59 = vpop.eup %3015 }
 0x30f   :  { %vm4786_vm3 = vcmp.le.f32.partialorder %v5292_v63, 0.7853982  ;;  %v1956_v35 = vxor.u32 2147483648, %v1955_v49  ;;  %v2076_v28 = vxor.u32 2147483648, %v3014_v39  ;;  %v1646_v46 = vsub.s32 4, %v4445_v30 }
 0x310   :  { %v1544_v19 = vsel %vm4786_vm3, %v4198_v14, %v1541_v58  ;;  %3025 = vcosq.f32 %v1648_v10  ;;  %v3018_v32 = vpop.eup %3017  ;;  %v2073_v9 = vxor.u32 2147483648, %v3016_v59  ;;  %v1959_v37 = vsel %vm1874_vm9, %v1958_v61, %v4684_v31 }
 0x311   :  { %v1753_v7 = vsel %vm4750_vm2, 0, %v1751_v36  ;;  %3027 = vsinq.f32 %v1648_v10  ;;  %v3020_v12 = vpop.eup %3019  ;;  %v1957_v51 = vsel %vm1874_vm9, %v1956_v35, %v1955_v49  ;;  %v2077_v16 = vsel %vm2075_vm7, %v2076_v28, %v3016_v59 }
 0x312   :  { %3029 = vcosq.f32 %v1544_v19  ;;  %v5295_v33 = vand.u32 2147483647, %v4121_v52  ;;  %v2074_v42 = vsel %vm2072_vm6, %v3014_v39, %v2073_v9  ;;  %v1960_v31 = vsel %vm4765_vm5, %v4501_v17, %v1957_v51 }
 0x313   :  { %3031 = vsinq.f32 %v1544_v19  ;;  %v2078_v62 = vsel %vm2071_vm0, %v2074_v42, %v2077_v16  ;;  %v1647_v22 = vsel %vm1562_vm8, %v1646_v46, %v4445_v30  ;;  %v5298_v8 = vand.u32 2147483647, %v4124_v4 }
 0x314   :  { %vm4803_vm14 = vcmp.le.f32.partialorder %v5295_v33, 0.7853982  ;;  %3033 = vcosq.f32 %v1960_v31  ;;  %v2079_v44 = vsel %vm2068_vm12, nan, %v2078_v62  ;;  %v1961_v55 = vsel %vm4765_vm5, 0, %v1959_v37 }
 0x315   :  { %v1440_v41 = vsel %vm4803_vm14, %v4121_v52, %v1437_v13  ;;  %vm4820_vm10 = vcmp.le.f32.partialorder %v5298_v8, 0.7853982  ;;  %3035 = vsinq.f32 %v1960_v31  ;;  %2869 = vmatprep.subr.msk.mxu0 %vm1139_vm11, %v2079_v44  ;;  %v1865_v30 = vxor.u32 2147483648, %v3020_v12 }
 0x316   :  { %v1336_v21 = vsel %vm4820_vm10, %v4124_v4, %v1333_v20  ;;  %v1868_v29 = vxor.u32 2147483648, %v3018_v32  ;;  %v1542_v23 = vsub.s32 4, %v5301_v54  ;;  %3037 = vcosq.f32 %v1440_v41  ;;  %2870 = vmatpush3.msk.msra.mxu0 %vm1139_vm11, %v2079_v44 }
 0x317   :  { %v1757_v13 = vadd.s32 3, %v1753_v7  ;;  %3039 = vsinq.f32 %v1440_v41  ;;  %v1649_v56 = vsel %vm4771_vm13, 0, %v1647_v22  ;;  %v1438_v25 = vsub.s32 4, %v5302_v48 }
 0x318   :  { %3041 = vcosq.f32 %v1336_v21  ;;  %v1965_v24 = vadd.s32 3, %v1961_v55  ;;  %vm1864_vm8 = vcmp.eq.s32.totalorder %v4776_v3, 0  ;;  %vm1867_vm2 = vcmp.eq.s32.totalorder %v4776_v3, 2 }
 0x319   :  { %3043 = vsinq.f32 %v1336_v21  ;;  %v1866_v6 = vsel %vm1864_vm8, %v3018_v32, %v1865_v30  ;;  %v1869_v15 = vsel %vm1867_vm2, %v1868_v29, %v3020_v12  ;;  %v1543_v1 = vsel %vm1458_vm1, %v1542_v23, %v5301_v54 }
 0x31a   :  { %v1334_v20 = vsub.s32 4, %v5303_v47  ;;  %v3022_v58 = vpop.eup %3021  ;;  %v1758_v27 = vand.u32 3, %v1757_v13  ;;  %v1653_v40 = vadd.s32 3, %v1649_v56  ;;  %vm1863_vm11 = vcmp.lt.s32.totalorder %v4776_v3, 2 }
 0x31b   :  { %v3024_v53 = vpop.eup %3023  ;;  %v1439_v50 = vsel %vm1354_vm4, %v1438_v25, %v5302_v48  ;;  %v1966_v43 = vand.u32 3, %v1965_v24  ;;  %v1870_v45 = vsel %vm1863_vm11, %v1866_v6, %v1869_v15  ;;  %v1545_v61 = vsel %vm4786_vm3, 0, %v1543_v1 }
 0x31c   :  { %vm1964_vm1 = vweird.f32 %v4501_v17  ;;  %vm1860_vm9 = vweird.f32 %v4295_v11  ;;  %v1335_v10 = vsel %vm1250_vm15, %v1334_v20, %v5303_v47  ;;  %vm1759_vm12 = vcmp.lt.s32.totalorder %v1758_v27, 2 }
 0x31d   :  { %v3026_v0 = vpop.eup %3025  ;;  %vm1760_vm5 = vcmp.eq.s32.totalorder %v1758_v27, 0  ;;  %v1654_v49 = vand.u32 3, %v1653_v40  ;;  %v1441_v63 = vsel %vm4803_vm14, 0, %v1439_v50  ;;  %v1871_v19 = vsel %vm1860_vm9, nan, %v1870_v45  ;;  %v2081_v45 = vld [vmem:[%s5146_s5 + $0x8] sm:$0xff] }
 0x31e   :  { %v3028_v36 = vpop.eup %3027  ;;  %vm1763_vm4 = vcmp.eq.s32.totalorder %v1758_v27, 2  ;;  %v1764_v60 = vxor.u32 2147483648, %v3022_v58  ;;  %v1549_v59 = vadd.s32 3, %v1545_v61  ;;  %vm1967_vm13 = vcmp.lt.s32.totalorder %v1966_v43, 2 }
 0x31f   :  { %v3030_v3 = vpop.eup %3029  ;;  %vm1968_vm0 = vcmp.eq.s32.totalorder %v1966_v43, 0  ;;  %v1761_v11 = vxor.u32 2147483648, %v3024_v53  ;;  %v1337_v28 = vsel %vm4820_vm10, 0, %v1335_v10  ;;  %vm1971_vm15 = vcmp.eq.s32.totalorder %v1966_v43, 2 }
 0x320   :  { %v3032_v39 = vpop.eup %3031  ;;  %v1660_v9 = vxor.u32 2147483648, %v3026_v0  ;;  %v1445_v37 = vadd.s32 3, %v1441_v63  ;;  %vm1655_vm3 = vcmp.lt.s32.totalorder %v1654_v49, 2  ;;  %v1657_v51 = vxor.u32 2147483648, %v3028_v36 }
 0x321   :  { %v3034_v35 = vpop.eup %3033  ;;  %vm1659_vm6 = vcmp.eq.s32.totalorder %v1654_v49, 2  ;;  %v1765_v38 = vsel %vm1763_vm4, %v1764_v60, %v3024_v53  ;;  %v1550_v42 = vand.u32 3, %v1549_v59  ;;  %v1341_v31 = vadd.s32 3, %v1337_v28 }
 0x322   :  { %v3036_v46 = vpop.eup %3035  ;;  %v1972_v32 = vxor.u32 2147483648, %v3034_v35  ;;  %v1762_v22 = vsel %vm1760_vm5, %v3022_v58, %v1761_v11  ;;  %v1553_v8 = vxor.u32 2147483648, %v3032_v39  ;;  %v1556_v26 = vxor.u32 2147483648, %v3030_v3 }
 0x323   :  { %v3038_v7 = vpop.eup %3037  ;;  %v1969_v12 = vxor.u32 2147483648, %v3036_v46  ;;  %vm1656_vm7 = vcmp.eq.s32.totalorder %v1654_v49, 0  ;;  %v1661_v21 = vsel %vm1659_vm6, %v1660_v9, %v3028_v36  ;;  %v1446_v30 = vand.u32 3, %v1445_v37 }
 0x324   :  { %v3040_v16 = vpop.eup %3039  ;;  %v1973_v33 = vsel %vm1971_vm15, %v1972_v32, %v3036_v46  ;;  %v1658_v54 = vsel %vm1656_vm7, %v3026_v0, %v1657_v51  ;;  %v1452_v13 = vxor.u32 2147483648, %v3038_v7  ;;  %v1766_v56 = vsel %vm1759_vm12, %v1762_v22, %v1765_v38 }
 0x325   :  { %v3042_v41 = vpop.eup %3041  ;;  %v1970_v62 = vsel %vm1968_vm0, %v3034_v35, %v1969_v12  ;;  %v1449_v23 = vxor.u32 2147483648, %v3040_v16  ;;  %vm1552_vm14 = vcmp.eq.s32.totalorder %v1550_v42, 0  ;;  %vm1555_vm10 = vcmp.eq.s32.totalorder %v1550_v42, 2 }
 0x326   :  { %v3044_v44 = vpop.eup %3043  ;;  %v1974_v55 = vsel %vm1967_vm13, %v1970_v62, %v1973_v33  ;;  %v1342_v48 = vand.u32 3, %v1341_v31  ;;  %v1554_v25 = vsel %vm1552_vm14, %v3030_v3, %v1553_v8  ;;  %v1557_v24 = vsel %vm1555_vm10, %v1556_v26, %v3032_v39  ;;  %v2091_v3 = vpop.permute.xlu0 %2090 }
 0x327   :  { %v1975_v29 = vsel %vm1964_vm1, nan, %v1974_v55  ;;  %v1345_v6 = vxor.u32 2147483648, %v3044_v44  ;;  %v1348_v15 = vxor.u32 2147483648, %v3042_v41  ;;  %vm1756_vm8 = vweird.f32 %v4412_v18 }
 0x328   :  { %2871 = vmatprep.subr.mxu0 %v1975_v29  ;;  %v1662_v17 = vsel %vm1655_vm3, %v1658_v54, %v1661_v21  ;;  %vm1448_vm2 = vcmp.eq.s32.totalorder %v1446_v30, 0  ;;  %vm1451_vm11 = vcmp.eq.s32.totalorder %v1446_v30, 2  ;;  %v1767_v1 = vsel %vm1756_vm8, nan, %v1766_v56 }
 0x329   :  { %2872 = vmatpush3.msra.mxu0 %v1975_v29  ;;  %vm1551_vm1 = vcmp.lt.s32.totalorder %v1550_v42, 2  ;;  %v1450_v47 = vsel %vm1448_vm2, %v3038_v7, %v1449_v23  ;;  %v1453_v20 = vsel %vm1451_vm11, %v1452_v13, %v3040_v16  ;;  %vm1652_vm9 = vweird.f32 %v4127_v34 }
 0x32a   :  { %2873 = vmatprep.subr.mxu0 %v1871_v19  ;;  %v1558_v58 = vsel %vm1551_vm1, %v1554_v25, %v1557_v24  ;;  %vm1344_vm12 = vcmp.eq.s32.totalorder %v1342_v48, 0  ;;  %vm1347_vm5 = vcmp.eq.s32.totalorder %v1342_v48, 2  ;;  %v1663_v27 = vsel %vm1652_vm9, nan, %v1662_v17 }
 0x32b   :  { %2874 = vmatpush3.msra.mxu0 %v1871_v19  ;;  %vm1447_vm4 = vcmp.lt.s32.totalorder %v1446_v30, 2  ;;  %v1346_v40 = vsel %vm1344_vm12, %v3042_v41, %v1345_v6  ;;  %v1349_v18 = vsel %vm1347_vm5, %v1348_v15, %v3044_v44  ;;  %vm1548_vm13 = vweird.f32 %v4198_v14  ;;  %v2082_v14 = vld [vmem:[%s5146_s5 + $0x10] sm:$0xff] }
 0x32c   :  { %2875 = vmatprep.subr.mxu0 %v1767_v1  ;;  %v1454_v53 = vsel %vm1447_vm4, %v1450_v47, %v1453_v20  ;;  %v1559_v50 = vsel %vm1548_vm13, nan, %v1558_v58  ;;  %vm1343_vm0 = vcmp.lt.s32.totalorder %v1342_v48, 2  ;;  %vm1444_vm15 = vweird.f32 %v4121_v52  ;;  %v2083_v52 = vld [vmem:[%s5146_s5 + $0x18] sm:$0xff]  ;;  %s3090_s5 = smov [#allocation3]  }
 0x32d   :  { %2876 = vmatpush3.msra.mxu0 %v1767_v1  ;;  %v1350_v0 = vsel %vm1343_vm0, %v1346_v40, %v1349_v18  ;;  %v1455_v34 = vsel %vm1444_vm15, nan, %v1454_v53  ;;  %vm1340_vm3 = vweird.f32 %v4124_v4  ;;  %vm5304_vm6 = vcmask 490496   ;;  %v2096_v4 = vpop.permute.xlu1 %2095  ;;  %s2679_s21 = sshll.u32 %s3090_s5, 4  ;;  %s2680_s21 = int_to_ptr.vmem [resolvable:$true] %s2679_s21 }
 0x32e   :  { %2877 = vmatprep.subr.mxu0 %v1663_v27  ;;  %v1351_v43 = vsel %vm1340_vm3, nan, %v1350_v0  ;;  %vm5305_vm7 = vmmov %vm5304_vm6  ;;  %v5307_v21 = vmov 2475754826   ;;  %v5308_v29 = vmov 2131351028   ;;  %s3061_s22 = scalar_lea.vmem %s2680_s21, 16  ;;  %p3066_p1 = scmp.lt.s32.totalorder %s2680_s21, %s2680_s21 }
 0x32f   :  { %2878 = vmatpush3.msra.mxu0 %v1663_v27  ;;  %vm5306_vm14 = vmmov %vm5304_vm6  ;;  %v5309_v23 = vmov 2102212464   ;;  %p3062_p0 = scmp.ne.s32.totalorder %s2680_s21, %s3061_s22  ;;  %s3065_s1 = scalar_lea.vmem %s2680_s21, 32 }
 0x330   :  { %2879 = vmatprep.subr.mxu0 %v1559_v50  ;;  %p3067_p2 = scmp.lt.s32.totalorder %s3065_s1, %s3061_s22 }
 0x331   :  { %2880 = vmatpush3.msra.mxu0 %v1559_v50  ;;  %v2106_v39 = vpop.permute.xlu1 %2105 }
 0x332   :  { %2881 = vmatprep.subr.mxu0 %v1455_v34  ;;  %p3068_p3 = por %p3067_p2, %p3066_p1 }
 0x333   :  { %2882 = vmatpush3.msra.mxu0 %v1455_v34 }
 0x334   :  { %2883 = vmatprep.subr.mxu0 %v1351_v43  ;;  %p3069_p4 = pnand %p3068_p3, %p3062_p0 }
 0x335   :  { %2884 = vmatpush3.msra.mxu0 %v1351_v43 }
 0x336   :  { %2886 = vmatmul.mubr.msk.f32.vlgmr.msra.gmra.mxu0 %vm5304_vm6, %v2081_v45 }
 0x337   :  { %2888 = vmatprep.mubr.msk.f32.mxu0 %vm5305_vm7, %v2082_v14 }
 0x33a   :  { %2889 = vmatmul.mubr.msk.f32.gmra.mxu0 %vm5306_vm14, %v2083_v52 }
 0x3f6   :  { %v2887_v61 = vpop.f32.mrf.mxu0 }
 0x3f7   :  { %v4883_v36 = vadd.f32 %v2887_v61, %v2096_v4 }
 0x3f8   :  { %v2189_v10 = vpop.f32.mrf.mxu0 }
 0x3f9   :  { %v2312_v49 = vand.u32 2147483647, %v4883_v36  ;;  %v2315_v63 = vand.u32 2139095040, %v4883_v36  ;;  %v4887_v19 = vadd.f32 %v2189_v10, %v2091_v3 }
 0x3fa   :  { %v2890_v60 = vpop.f32.mrf.mxu0 }
 0x3fb   :  { %v2316_v59 = vshrl.u32 %v2315_v63, 23  ;;  %v4889_v35 = vadd.f32 %v2890_v60, %v2106_v39  ;;  %v2319_v11 = vand.u32 8388607, %v2312_v49  ;;  %v2208_v28 = vand.u32 2147483647, %v4887_v19 }
 0x3fc   :  { %v2211_v46 = vand.u32 2139095040, %v4887_v19 }
 0x3fd   :  { %v2778_v32 = vadd.s32 4294967169, %v2316_v59  ;;  %v2215_v37 = vand.u32 8388607, %v2208_v28  ;;  %v2523_v7 = vand.u32 2139095040, %v4889_v35  ;;  %v2320_v51 = vor.u32 8388608, %v2319_v11 }
 0x3fe   :  { %v2212_v9 = vshrl.u32 %v2211_v46, 23 }
 0x3ff   :  { %v2322_v12 = vadd.s32 1, %v2778_v32  ;;  %v2216_v33 = vor.u32 8388608, %v2215_v37  ;;  %v2524_v38 = vshrl.u32 %v2523_v7, 23  ;;  %v4898_v22 = vshll.u32 %v2320_v51, 8 }
 0x400   :  { %v2774_v16 = vadd.s32 4294967169, %v2212_v9 }
 0x401   :  { %vm2323_vm10 = vcmp.gt.s32.totalorder %v2322_v12, 0  ;;  %v4900_v8 = vshll.u32 %v2216_v33, 8  ;;  %v2786_v55 = vadd.s32 4294967169, %v2524_v38 }
 0x402   :  { %v2324_v42 = vsel %vm2323_vm10, %v2322_v12, 0  ;;  %v2218_v31 = vadd.s32 1, %v2774_v16 }
 0x403   :  { %v2325_v41 = vshrl.u32 %v2324_v42, 5  ;;  %v2326_v62 = vand.u32 31, %v2324_v42  ;;  %v2530_v10 = vadd.s32 1, %v2786_v55 }
 0x404   :  { %vm2219_vm8 = vcmp.gt.s32.totalorder %v2218_v31, 0 }
 0x405   :  { %v2327_v26 = vsub.s32 32, %v2326_v62  ;;  %v2329_v44 = vshll.u32 %v5219_v2, %v2326_v62  ;;  %v2332_v30 = vshll.u32 %v5307_v21, %v2326_v62  ;;  %v2335_v54 = vshll.u32 %v5308_v29, %v2326_v62 }
 0x406   :  { %v2338_v13 = vshll.u32 %v5309_v23, %v2326_v62  ;;  %v2341_v56 = vshll.u32 %v5266_v57, %v2326_v62  ;;  %vm2344_vm2 = vcmp.lt.s32.totalorder %v2325_v41, 1  ;;  %vm2346_vm11 = vcmp.lt.s32.totalorder %v2325_v41, 3 }
 0x407   :  { %v2330_v48 = vshrl.u32 %v5307_v21, %v2327_v26  ;;  %v2333_v25 = vshrl.u32 %v5308_v29, %v2327_v26  ;;  %v2336_v24 = vshrl.u32 %v5309_v23, %v2327_v26  ;;  %v2328_v6 = vshrl.u32 %v5219_v2, %v2327_v26 }
 0x408   :  { %v2339_v15 = vshrl.u32 %v5266_v57, %v2327_v26  ;;  %v2342_v17 = vshrl.u32 %v5267_v5, %v2327_v26  ;;  %v2220_v58 = vsel %vm2219_vm8, %v2218_v31, 0  ;;  %vm2347_vm1 = vcmp.lt.s32.totalorder %v2325_v41, 4 }
 0x409   :  { %v2331_v1 = vor.u32 %v2330_v48, %v2329_v44  ;;  %v2334_v47 = vor.u32 %v2333_v25, %v2332_v30  ;;  %v2337_v20 = vor.u32 %v2336_v24, %v2335_v54  ;;  %v2222_v18 = vand.u32 31, %v2220_v58 }
 0x40a   :  { %v2340_v27 = vor.u32 %v2339_v15, %v2338_v13  ;;  %v2343_v40 = vor.u32 %v2342_v17, %v2341_v56  ;;  %vm2345_vm9 = vcmp.lt.s32.totalorder %v2325_v41, 2  ;;  %v2221_v60 = vshrl.u32 %v2220_v58, 5 }
 0x40b   :  { %v2348_v53 = vsel %vm2344_vm2, %v2328_v6, %v2331_v1  ;;  %v2349_v50 = vsel %vm2347_vm1, %v2337_v20, 2102212464  ;;  %v2352_v0 = vsel %vm2344_vm2, %v2331_v1, %v2334_v47  ;;  %v2356_v34 = vsel %vm2344_vm2, %v2334_v47, %v2337_v20 }
 0x40c   :  { %v2350_v43 = vsel %vm2346_vm11, %v2334_v47, %v2349_v50  ;;  %v2353_v45 = vsel %vm2347_vm1, %v2340_v27, 920167782  ;;  %v2357_v14 = vsel %vm2347_vm1, %v2343_v40, 1326507024  ;;  %v2223_v52 = vsub.s32 32, %v2222_v18 }
 0x40d   :  { %v2354_v4 = vsel %vm2346_vm11, %v2337_v20, %v2353_v45  ;;  %v2358_v61 = vsel %vm2346_vm11, %v2340_v27, %v2357_v14  ;;  %v2351_v3 = vsel %vm2345_vm9, %v2348_v53, %v2350_v43  ;;  %v2225_v9 = vshll.u32 %v5219_v2, %v2222_v18 }
 0x40e   :  { %v2355_v63 = vsel %vm2345_vm9, %v2352_v0, %v2354_v4  ;;  %v2359_v39 = vsel %vm2345_vm9, %v2356_v34, %v2358_v61  ;;  %v2226_v37 = vshrl.u32 %v5307_v21, %v2223_v52  ;;  %v2228_v7 = vshll.u32 %v5307_v21, %v2222_v18 }
 0x40f   :  { %v4921_v59 = vmul.u32.u64.low %v4898_v22, %v2359_v39  ;;  %v4922_v11 = vmul.u32.u64.high %v4898_v22, %v2359_v39, %v4921_v59  ;;  %v4925_v46 = vmul.u32.u64.low %v4898_v22, %v2355_v63  ;;  %v4926_v32 = vmul.u32.u64.high %v4898_v22, %v2355_v63, %v4925_v46 }
 0x410   :  { %v2229_v12 = vshrl.u32 %v5308_v29, %v2223_v52  ;;  %v2231_v51 = vshll.u32 %v5308_v29, %v2222_v18  ;;  %v2232_v16 = vshrl.u32 %v5309_v23, %v2223_v52  ;;  %v2234_v33 = vshll.u32 %v5309_v23, %v2222_v18 }
 0x411   :  { %v2235_v38 = vshrl.u32 %v5266_v57, %v2223_v52  ;;  %v2227_v42 = vor.u32 %v2226_v37, %v2225_v9  ;;  %v2237_v41 = vshll.u32 %v5266_v57, %v2222_v18  ;;  %v2238_v62 = vshrl.u32 %v5267_v5, %v2223_v52 }
 0x412   :  { %v2230_v31 = vor.u32 %v2229_v12, %v2228_v7  ;;  %v2367_v26 = vmul.u32 %v4898_v22, %v2351_v3  ;;  %vm2369_vm12 = vc.u32 %v4922_v11, %v4925_v46  ;;  %v2370_v44 = vadd.s32 1, %v4926_v32  ;;  %v2199_v3 = vpop.f32.mrf.mxu0 }
 0x413   :  { %v2233_v55 = vor.u32 %v2232_v16, %v2231_v51  ;;  %v2224_v30 = vshrl.u32 %v5219_v2, %v2223_v52  ;;  %v2236_v54 = vor.u32 %v2235_v38, %v2234_v33  ;;  %v2239_v13 = vor.u32 %v2238_v62, %v2237_v41 }
 0x414   :  { %vm2240_vm5 = vcmp.lt.s32.totalorder %v2221_v60, 1  ;;  %v2371_v56 = vsel %vm2369_vm12, %v2370_v44, %v4926_v32  ;;  %vm2241_vm4 = vcmp.lt.s32.totalorder %v2221_v60, 2  ;;  %vm2243_vm13 = vcmp.lt.s32.totalorder %v2221_v60, 4 }
 0x415   :  { %v2248_v48 = vsel %vm2240_vm5, %v2227_v42, %v2230_v31  ;;  %vm2242_vm0 = vcmp.lt.s32.totalorder %v2221_v60, 3  ;;  %v2245_v25 = vsel %vm2243_vm13, %v2233_v55, 2102212464  ;;  %v2249_v24 = vsel %vm2243_vm13, %v2236_v54, 920167782  ;;  %v2101_v60 = vpop.permute.xlu0 %2100 }
 0x416   :  { %v2252_v22 = vsel %vm2240_vm5, %v2230_v31, %v2233_v55  ;;  %v2244_v6 = vsel %vm2240_vm5, %v2224_v30, %v2227_v42  ;;  %v2250_v15 = vsel %vm2242_vm0, %v2233_v55, %v2249_v24  ;;  %v2253_v17 = vsel %vm2243_vm13, %v2239_v13, 1326507024 }
 0x417   :  { %vm2531_vm15 = vcmp.gt.s32.totalorder %v2530_v10, 0  ;;  %v2372_v1 = vadd.s32 %v2371_v56, %v2367_v26  ;;  %v2246_v47 = vsel %vm2242_vm0, %v2230_v31, %v2245_v25  ;;  %v2251_v20 = vsel %vm2241_vm4, %v2248_v48, %v2250_v15 }
 0x418   :  { %v2254_v58 = vsel %vm2242_vm0, %v2236_v54, %v2253_v17  ;;  %v4948_v40 = vmul.u32.u64.low %v4900_v8, %v2251_v20  ;;  %v4949_v18 = vmul.u32.u64.high %v4900_v8, %v2251_v20, %v4948_v40  ;;  %v2532_v0 = vsel %vm2531_vm15, %v2530_v10, 0 }
 0x419   :  { %v2255_v27 = vsel %vm2241_vm4, %v2252_v22, %v2254_v58  ;;  %v2247_v34 = vsel %vm2241_vm4, %v2244_v6, %v2246_v47  ;;  %v2534_v43 = vand.u32 31, %v2532_v0  ;;  %v2373_v45 = vadd.s32 536870912, %v2372_v1 }
 0x41a   :  { %v4953_v53 = vmul.u32.u64.low %v4900_v8, %v2255_v27  ;;  %v4954_v50 = vmul.u32.u64.high %v4900_v8, %v2255_v27, %v4953_v53  ;;  %v2266_v14 = vadd.s32 1, %v4949_v18  ;;  %v2263_v52 = vmul.u32 %v4900_v8, %v2247_v34 }
 0x41b   :  { %v2535_v4 = vsub.s32 32, %v2534_v43  ;;  %v4962_v63 = vshrl.u32 %v2373_v45, 30  ;;  %v2520_v10 = vand.u32 2147483647, %v4889_v35  ;;  %v2533_v32 = vshrl.u32 %v2532_v0, 5 }
 0x41c   :  { %vm2265_vm3 = vc.u32 %v4954_v50, %v4948_v40  ;;  %v4966_v37 = vadd.f32 %v2199_v3, %v2101_v60  ;;  %v2546_v12 = vshll.u32 %v5309_v23, %v2534_v43  ;;  %v2537_v38 = vshll.u32 %v5219_v2, %v2534_v43 }
 0x41d   :  { %v2267_v61 = vsel %vm2265_vm3, %v2266_v14, %v4949_v18  ;;  %v2538_v9 = vshrl.u32 %v5307_v21, %v2535_v4  ;;  %v2541_v8 = vshrl.u32 %v5308_v29, %v2535_v4  ;;  %v2544_v7 = vshrl.u32 %v5309_v23, %v2535_v4 }
 0x41e   :  { %v2268_v39 = vadd.s32 %v2267_v61, %v2263_v52  ;;  %v2547_v51 = vshrl.u32 %v5266_v57, %v2535_v4  ;;  %v2375_v16 = vshll.u32 %v4962_v63, 30  ;;  %v2527_v33 = vand.u32 8388607, %v2520_v10 }
 0x41f   :  { %v2550_v42 = vshrl.u32 %v5267_v5, %v2535_v4  ;;  %v2540_v41 = vshll.u32 %v5307_v21, %v2534_v43  ;;  %v2543_v62 = vshll.u32 %v5308_v29, %v2534_v43  ;;  %v2539_v44 = vor.u32 %v2538_v9, %v2537_v38 }
 0x420   :  { %v2269_v59 = vadd.s32 536870912, %v2268_v39  ;;  %v2548_v26 = vor.u32 %v2547_v51, %v2546_v12  ;;  %v2549_v55 = vshll.u32 %v5266_v57, %v2534_v43  ;;  %v2419_v30 = vand.u32 2139095040, %v4966_v37 }
 0x421   :  { %v2542_v13 = vor.u32 %v2541_v8, %v2540_v41  ;;  %v2545_v56 = vor.u32 %v2544_v7, %v2543_v62  ;;  %vm2555_vm6 = vcmp.lt.s32.totalorder %v2533_v32, 4  ;;  %v4984_v48 = vsub.s32 %v2372_v1, %v2375_v16 }
 0x422   :  { %v4977_v31 = vshrl.u32 %v2269_v59, 30  ;;  %v2528_v25 = vor.u32 8388608, %v2527_v33  ;;  %v2551_v24 = vor.u32 %v2550_v42, %v2549_v55  ;;  %v2561_v22 = vsel %vm2555_vm6, %v2548_v26, 920167782 }
 0x423   :  { %vm2552_vm7 = vcmp.lt.s32.totalorder %v2533_v32, 1  ;;  %vm2554_vm14 = vcmp.lt.s32.totalorder %v2533_v32, 3  ;;  %v2420_v15 = vshrl.u32 %v2419_v30, 23  ;;  %v2378_v58 = vsub.s32 0, %v4984_v48 }
 0x424   :  { %v2271_v54 = vshll.u32 %v4977_v31, 30  ;;  %v2560_v17 = vsel %vm2552_vm7, %v2539_v44, %v2542_v13  ;;  %v2562_v47 = vsel %vm2554_vm14, %v2545_v56, %v2561_v22  ;;  %v2564_v20 = vsel %vm2552_vm7, %v2542_v13, %v2545_v56 }
 0x425   :  { %v2565_v1 = vsel %vm2555_vm6, %v2551_v24, 1326507024  ;;  %v2568_v27 = vshll.u32 %v2528_v25, 8  ;;  %vm2553_vm10 = vcmp.lt.s32.totalorder %v2533_v32, 2  ;;  %v2557_v53 = vsel %vm2555_vm6, %v2545_v56, 2102212464 }
 0x426   :  { %v4987_v6 = vsub.s32 %v2268_v39, %v2271_v54  ;;  %v2566_v0 = vsel %vm2554_vm14, %v2548_v26, %v2565_v1  ;;  %v2536_v34 = vshrl.u32 %v5219_v2, %v2535_v4  ;;  %v2563_v43 = vsel %vm2553_vm10, %v2560_v17, %v2562_v47 }
 0x427   :  { %v2567_v45 = vsel %vm2553_vm10, %v2564_v20, %v2566_v0  ;;  %v2782_v14 = vadd.s32 4294967169, %v2420_v15  ;;  %v2558_v61 = vsel %vm2554_vm14, %v2542_v13, %v2557_v53  ;;  %v2779_v60 = vmin.u32 %v2378_v58, %v4984_v48 }
 0x428   :  { %v2274_v18 = vsub.s32 0, %v4987_v6  ;;  %v2556_v52 = vsel %vm2552_vm7, %v2536_v34, %v2539_v44  ;;  %v5000_v3 = vmul.u32.u64.low %v2568_v27, %v2567_v45  ;;  %v5001_v39 = vmul.u32.u64.high %v2568_v27, %v2567_v45, %v5000_v3 }
 0x429   :  { %v5005_v9 = vmul.u32.u64.low %v2568_v27, %v2563_v43  ;;  %v5006_v8 = vmul.u32.u64.high %v2568_v27, %v2563_v43, %v5005_v9  ;;  %v2426_v7 = vadd.s32 1, %v2782_v14  ;;  %v2559_v4 = vsel %vm2553_vm10, %v2556_v52, %v2558_v61 }
 0x42a   :  { %v2775_v59 = vmin.u32 %v2274_v18, %v4987_v6  ;;  %v2380_v12 = vclz %v2779_v60  ;;  %v2575_v16 = vmul.u32 %v2568_v27, %v2559_v4  ;;  %v2416_v44 = vand.u32 2147483647, %v4966_v37 }
 0x42b   :  { %vm2577_vm8 = vc.u32 %v5001_v39, %v5005_v9  ;;  %v2578_v32 = vadd.s32 1, %v5006_v8  ;;  %vm2427_vm2 = vcmp.gt.s32.totalorder %v2426_v7, 0  ;;  %vm2210_vm15 = vcmp.lt.s32.totalorder %v4887_v19, 0 }
 0x42c   :  { %v2276_v51 = vclz %v2775_v59  ;;  %v2428_v38 = vsel %vm2427_vm2, %v2426_v7, 0  ;;  %v2780_v62 = vadd.s32 4294967294, %v2380_v12  ;;  %v2423_v25 = vand.u32 8388607, %v2416_v44 }
 0x42d   :  { %v2579_v33 = vsel %vm2577_vm8, %v2578_v32, %v5006_v8  ;;  %v2430_v41 = vand.u32 31, %v2428_v38  ;;  %v2429_v47 = vshrl.u32 %v2428_v38, 5  ;;  %vm2314_vm3 = vcmp.lt.s32.totalorder %v4883_v36, 0 }
 0x42e   :  { %v2580_v42 = vadd.s32 %v2579_v33, %v2575_v16  ;;  %v2776_v26 = vadd.s32 4294967294, %v2276_v51  ;;  %vm2781_vm11 = vcmp.lt.s32.totalorder %v2780_v62, 0  ;;  %vm5070_vm6 = vcmp.le.f32.partialorder %v2208_v28, 0.7853982 }
 0x42f   :  { %v2431_v30 = vsub.s32 32, %v2430_v41  ;;  %v2433_v22 = vshll.u32 %v5219_v2, %v2430_v41  ;;  %v2436_v15 = vshll.u32 %v5307_v21, %v2430_v41  ;;  %v2439_v20 = vshll.u32 %v5308_v29, %v2430_v41 }
 0x430   :  { %v2581_v55 = vadd.s32 536870912, %v2580_v42  ;;  %vm2777_vm1 = vcmp.lt.s32.totalorder %v2776_v26, 0  ;;  %v2442_v58 = vshll.u32 %v5309_v23, %v2430_v41  ;;  %v2445_v45 = vshll.u32 %v5266_v57, %v2430_v41 }
 0x431   :  { %v2434_v13 = vshrl.u32 %v5307_v21, %v2431_v30  ;;  %v2437_v56 = vshrl.u32 %v5308_v29, %v2431_v30  ;;  %v2440_v17 = vshrl.u32 %v5309_v23, %v2431_v30  ;;  %v2443_v1 = vshrl.u32 %v5266_v57, %v2431_v30 }
 0x432   :  { %v5014_v54 = vshrl.u32 %v2581_v55, 30  ;;  %v2446_v0 = vshrl.u32 %v5267_v5, %v2431_v30  ;;  %v2279_v34 = vsel %vm2777_vm1, 0, %v2776_v26  ;;  %v2383_v52 = vsel %vm2781_vm11, 0, %v2780_v62 }
 0x433   :  { %v2435_v18 = vor.u32 %v2434_v13, %v2433_v22  ;;  %v2438_v53 = vor.u32 %v2437_v56, %v2436_v15  ;;  %v2444_v43 = vor.u32 %v2443_v1, %v2442_v58  ;;  %v2441_v14 = vor.u32 %v2440_v17, %v2439_v20 }
 0x434   :  { %v2583_v24 = vshll.u32 %v5014_v54, 30  ;;  %v2424_v29 = vor.u32 8388608, %v2423_v25  ;;  %v2447_v61 = vor.u32 %v2446_v0, %v2445_v45  ;;  %vm2448_vm9 = vcmp.lt.s32.totalorder %v2429_v47, 1 }
 0x435   :  { %v2284_v23 = vsub.s32 4294967266, %v2279_v34  ;;  %vm2451_vm12 = vcmp.lt.s32.totalorder %v2429_v47, 4  ;;  %v2456_v60 = vsel %vm2448_vm9, %v2435_v18, %v2438_v53  ;;  %v2432_v5 = vshrl.u32 %v5219_v2, %v2431_v30 }
 0x436   :  { %v5027_v27 = vsub.s32 %v2580_v42, %v2583_v24  ;;  %vm2449_vm5 = vcmp.lt.s32.totalorder %v2429_v47, 2  ;;  %vm2450_vm4 = vcmp.lt.s32.totalorder %v2429_v47, 3  ;;  %v2457_v59 = vsel %vm2451_vm12, %v2444_v43, 920167782 }
 0x437   :  { %v2453_v8 = vsel %vm2451_vm12, %v2441_v14, 2102212464  ;;  %v2458_v7 = vsel %vm2450_vm4, %v2441_v14, %v2457_v59  ;;  %v2460_v4 = vsel %vm2448_vm9, %v2438_v53, %v2441_v14  ;;  %v2388_v12 = vsub.s32 4294967266, %v2383_v52 }
 0x438   :  { %v2586_v21 = vsub.s32 0, %v5027_v27  ;;  %v2459_v51 = vsel %vm2449_vm5, %v2456_v60, %v2458_v7  ;;  %v2461_v32 = vsel %vm2451_vm12, %v2447_v61, 1326507024  ;;  %v2464_v16 = vshll.u32 %v2424_v29, 8 }
 0x439   :  { %v2285_v33 = vadd.s32 127, %v2284_v23  ;;  %v2452_v42 = vsel %vm2448_vm9, %v2432_v5, %v2435_v18  ;;  %v2462_v41 = vsel %vm2450_vm4, %v2444_v43, %v2461_v32  ;;  %v2454_v62 = vsel %vm2450_vm4, %v2438_v53, %v2453_v8 }
 0x43a   :  { %v2787_v3 = vmin.u32 %v2586_v21, %v5027_v27  ;;  %v2463_v2 = vsel %vm2449_vm5, %v2460_v4, %v2462_v41  ;;  %v5040_v26 = vmul.u32.u64.low %v2464_v16, %v2459_v51  ;;  %v5041_v55 = vmul.u32.u64.high %v2464_v16, %v2459_v51, %v5040_v26 }
 0x43b   :  { %v2280_v30 = vsub.s32 32, %v2279_v34  ;;  %v5044_v13 = vmul.u32.u64.low %v2464_v16, %v2463_v2  ;;  %v5045_v56 = vmul.u32.u64.high %v2464_v16, %v2463_v2, %v5044_v13  ;;  %v2389_v25 = vadd.s32 127, %v2388_v12 }
 0x43c   :  { %v2588_v57 = vclz %v2787_v3  ;;  %v2264_v22 = vadd.s32 %v4948_v40, %v4954_v50  ;;  %v2286_v15 = vshll.u32 %v2285_v33, 23  ;;  %v2455_v20 = vsel %vm2449_vm5, %v2452_v42, %v2454_v62 }
 0x43d   :  { %v2384_v58 = vsub.s32 32, %v2383_v52  ;;  %v2474_v1 = vadd.s32 1, %v5041_v55  ;;  %v2368_v18 = vadd.s32 %v4925_v46, %v4922_v11  ;;  %v2390_v0 = vshll.u32 %v2389_v25, 23 }
 0x43e   :  { %v2788_v38 = vadd.s32 4294967294, %v2588_v57  ;;  %v2282_v53 = vshrl.u32 %v2264_v22, %v2280_v30  ;;  %v2471_v45 = vmul.u32 %v2464_v16, %v2455_v20  ;;  %vm2473_vm0 = vc.u32 %v5045_v56, %v5040_v26 }
 0x43f   :  { %v2281_v21 = vshll.u32 %v4987_v6, %v2279_v34  ;;  %v2287_v40 = vor.u32 4788187, %v2286_v15  ;;  %v2475_v50 = vsel %vm2473_vm0, %v2474_v1, %v5041_v55  ;;  %v2386_v47 = vshrl.u32 %v2368_v18, %v2384_v58  ;;  %v2631_v15 = vpop.permute.xlu0 %2630 }
 0x440   :  { %vm2789_vm13 = vcmp.lt.s32.totalorder %v2788_v38, 0  ;;  %v2476_v29 = vadd.s32 %v2475_v50, %v2471_v45  ;;  %v2385_v61 = vshll.u32 %v4984_v48, %v2383_v52  ;;  %v2391_v3 = vor.u32 4788187, %v2390_v0 }
 0x441   :  { %v2591_v24 = vsel %vm2789_vm13, 0, %v2788_v38  ;;  %v2283_v23 = vor.u32 %v2282_v53, %v2281_v21  ;;  %v2576_v11 = vadd.s32 %v5005_v9, %v5001_v39  ;;  %v2288_v5 = vand.u32 2147483647, %v2287_v40 }
 0x442   :  { %v2596_v17 = vsub.s32 4294967266, %v2591_v24  ;;  %v2592_v14 = vsub.s32 32, %v2591_v24  ;;  %v2477_v60 = vadd.s32 536870912, %v2476_v29  ;;  %v2387_v59 = vor.u32 %v2386_v47, %v2385_v61 }
 0x443   :  { %v2290_v6 = vcvt.s32.f32 %v2283_v23  ;;  %v2392_v34 = vand.u32 2147483647, %v2391_v3  ;;  %v2593_v7 = vshll.u32 %v5027_v27, %v2591_v24  ;;  %vm5081_vm14 = vcmp.le.f32.partialorder %v2312_v49, 0.7853982 }
 0x444   :  { %v2597_v43 = vadd.s32 127, %v2596_v17  ;;  %v2594_v57 = vshrl.u32 %v2576_v11, %v2592_v14  ;;  %v5060_v8 = vshrl.u32 %v2477_v60, 30  ;;  %v2394_v52 = vcvt.s32.f32 %v2387_v59 }
 0x445   :  { %v2291_v48 = vmul.f32 %v2290_v6, %v2288_v5  ;;  %v2472_v28 = vadd.s32 %v5040_v26, %v5045_v56  ;;  %vm2522_vm10 = vcmp.lt.s32.totalorder %v4889_v35, 0  ;;  %vm5095_vm8 = vcmp.le.f32.partialorder %v2520_v10, 0.7853982 }
 0x446   :  { %v2598_v46 = vshll.u32 %v2597_v43, 23  ;;  %v2479_v12 = vshll.u32 %v5060_v8, 30  ;;  %v2595_v51 = vor.u32 %v2594_v57, %v2593_v7  ;;  %v2395_v16 = vmul.f32 %v2394_v52, %v2392_v34 }
 0x447   :  { %v2292_v33 = vxor.u32 2147483648, %v2291_v48  ;;  %v2294_v56 = vsub.s32 4, %v4977_v31  ;;  %v2398_v21 = vsub.s32 4, %v4962_v63  ;;  %vm2418_vm2 = vcmp.lt.s32.totalorder %v4966_v37, 0 }
 0x448   :  { %v2599_v4 = vor.u32 4788187, %v2598_v46  ;;  %v2480_v32 = vsub.s32 %v2476_v29, %v2479_v12  ;;  %v2602_v38 = vcvt.s32.f32 %v2595_v51  ;;  %v2396_v41 = vxor.u32 2147483648, %v2395_v16 }
 0x449   :  { %v2293_v27 = vsel %vm2210_vm15, %v2292_v33, %v2291_v48  ;;  %v2295_v10 = vsel %vm2210_vm15, %v2294_v56, %v4977_v31  ;;  %v2399_v14 = vsel %vm2314_vm3, %v2398_v21, %v4962_v63  ;;  %v2606_v29 = vsub.s32 4, %v5014_v54  ;;  %v2641_v21 = vpop.permute.xlu0 %2640 }
 0x44a   :  { %v2600_v39 = vand.u32 2147483647, %v2599_v4  ;;  %v2482_v9 = vsub.s32 0, %v2480_v32  ;;  %v2397_v13 = vsel %vm2314_vm3, %v2396_v41, %v2395_v16  ;;  %v2296_v25 = vsel %vm5070_vm6, %v4887_v19, %v2293_v27 }
 0x44b   :  { %v2400_v58 = vsel %vm5081_vm14, %v4883_v36, %v2397_v13  ;;  %3045 = vcosq.f32 %v2296_v25  ;;  %v2297_v23 = vsel %vm5070_vm6, 0, %v2295_v10  ;;  %v2401_v11 = vsel %vm5081_vm14, 0, %v2399_v14 }
 0x44c   :  { %v2783_v42 = vmin.u32 %v2482_v9, %v2480_v32  ;;  %v2603_v62 = vmul.f32 %v2602_v38, %v2600_v39  ;;  %3047 = vsinq.f32 %v2296_v25  ;;  %v2502_v31 = vsub.s32 4, %v5060_v8 }
 0x44d   :  { %3049 = vcosq.f32 %v2400_v58  ;;  %v2301_v60 = vadd.s32 3, %v2297_v23  ;;  %v2607_v63 = vsel %vm2522_vm10, %v2606_v29, %v5014_v54  ;;  %vm5122_vm11 = vcmp.le.f32.partialorder %v2416_v44, 0.7853982 }
 0x44e   :  { %v2484_v2 = vclz %v2783_v42  ;;  %v2604_v24 = vxor.u32 2147483648, %v2603_v62  ;;  %3051 = vsinq.f32 %v2400_v58  ;;  %v2405_v34 = vadd.s32 3, %v2401_v11 }
 0x44f   :  { %v2609_v4 = vsel %vm5095_vm8, 0, %v2607_v63  ;;  %v2503_v54 = vsel %vm2418_vm2, %v2502_v31, %v5060_v8  ;;  %v2302_v44 = vand.u32 3, %v2301_v60  ;;  %vm2300_vm0 = vweird.f32 %v4887_v19 }
 0x450   :  { %v2784_v55 = vadd.s32 4294967294, %v2484_v2  ;;  %v2605_v1 = vsel %vm2522_vm10, %v2604_v24, %v2603_v62  ;;  %v2406_v51 = vand.u32 3, %v2405_v34  ;;  %v2505_v16 = vsel %vm5122_vm11, 0, %v2503_v54 }
 0x451   :  { %v2608_v45 = vsel %vm5095_vm8, %v4889_v35, %v2605_v1  ;;  %vm2304_vm1 = vcmp.eq.s32.totalorder %v2302_v44, 0  ;;  %vm2307_vm9 = vcmp.eq.s32.totalorder %v2302_v44, 2  ;;  %v2509_v62 = vadd.s32 3, %v2505_v16 }
 0x452   :  { %vm2785_vm7 = vcmp.lt.s32.totalorder %v2784_v55, 0  ;;  %3053 = vcosq.f32 %v2608_v45  ;;  %vm2408_vm12 = vcmp.eq.s32.totalorder %v2406_v51, 0  ;;  %vm2411_vm5 = vcmp.eq.s32.totalorder %v2406_v51, 2 }
 0x453   :  { %v2487_v22 = vsel %vm2785_vm7, 0, %v2784_v55  ;;  %3055 = vsinq.f32 %v2608_v45  ;;  %vm2303_vm4 = vcmp.lt.s32.totalorder %v2302_v44, 2  ;;  %vm2407_vm13 = vcmp.lt.s32.totalorder %v2406_v51, 2 }
 0x454   :  { %v2488_v17 = vsub.s32 32, %v2487_v22  ;;  %v2492_v20 = vsub.s32 4294967266, %v2487_v22  ;;  %v2489_v18 = vshll.u32 %v2480_v32, %v2487_v22  ;;  %v2613_v32 = vadd.s32 3, %v2609_v4 }
 0x455   :  { %v2510_v25 = vand.u32 3, %v2509_v62  ;;  %vm2404_vm6 = vweird.f32 %v4883_v36 }
 0x456   :  { %v2490_v49 = vshrl.u32 %v2472_v28, %v2488_v17  ;;  %v2493_v53 = vadd.s32 127, %v2492_v20  ;;  %v2614_v8 = vand.u32 3, %v2613_v32 }
 0x457   :  { %vm2515_vm7 = vcmp.eq.s32.totalorder %v2510_v25, 2  ;;  %vm2512_vm10 = vcmp.eq.s32.totalorder %v2510_v25, 0  ;;  %vm2511_vm8 = vcmp.lt.s32.totalorder %v2510_v25, 2 }
 0x458   :  { %v2491_v0 = vor.u32 %v2490_v49, %v2489_v18  ;;  %v2494_v43 = vshll.u32 %v2493_v53, 23  ;;  %v3046_v46 = vpop.eup %3045  ;;  %vm2616_vm15 = vcmp.eq.s32.totalorder %v2614_v8, 0  ;;  %vm2619_vm3 = vcmp.eq.s32.totalorder %v2614_v8, 2  ;;  %v2636_v18 = vpop.permute.xlu1 %2635 }
 0x459   :  { %v3048_v6 = vpop.eup %3047  ;;  %v2308_v52 = vxor.u32 2147483648, %v3046_v46  ;;  %vm2615_vm14 = vcmp.lt.s32.totalorder %v2614_v8, 2 }
 0x45a   :  { %v2495_v40 = vor.u32 4788187, %v2494_v43  ;;  %v2498_v47 = vcvt.s32.f32 %v2491_v0  ;;  %v3050_v7 = vpop.eup %3049  ;;  %v2305_v48 = vxor.u32 2147483648, %v3048_v6 }
 0x45b   :  { %v3052_v12 = vpop.eup %3051  ;;  %v2412_v33 = vxor.u32 2147483648, %v3050_v7  ;;  %v2309_v41 = vsel %vm2307_vm9, %v2308_v52, %v3048_v6 }
 0x45c   :  { %v2496_v50 = vand.u32 2147483647, %v2495_v40  ;;  %v2409_v9 = vxor.u32 2147483648, %v3052_v12  ;;  %v2306_v42 = vsel %vm2304_vm1, %v3046_v46, %v2305_v48 }
 0x45d   :  { %v2413_v27 = vsel %vm2411_vm5, %v2412_v33, %v3052_v12  ;;  %v2310_v13 = vsel %vm2303_vm4, %v2306_v42, %v2309_v41 }
 0x45e   :  { %v2499_v61 = vmul.f32 %v2498_v47, %v2496_v50  ;;  %v2410_v2 = vsel %vm2408_vm12, %v3050_v7, %v2409_v9  ;;  %v2311_v28 = vsel %vm2300_vm0, nan, %v2310_v13  ;;  %v2646_v47 = vpop.permute.xlu1 %2645 }
 0x45f   :  { %v3054_v39 = vpop.eup %3053  ;;  %v2414_v24 = vsel %vm2407_vm13, %v2410_v2, %v2413_v27  ;;  %v2648_v26 = vmul.f32 %v2631_v15, %v2311_v28 }
 0x460   :  { %v2500_v3 = vxor.u32 2147483648, %v2499_v61  ;;  %v3056_v38 = vpop.eup %3055  ;;  %v2620_v30 = vxor.u32 2147483648, %v3054_v39  ;;  %v2415_v49 = vsel %vm2404_vm6, nan, %v2414_v24 }
 0x461   :  { %v2617_v55 = vxor.u32 2147483648, %v3056_v38  ;;  %v2649_v43 = vmul.f32 %v2636_v18, %v2415_v49 }
 0x462   :  { %v2501_v59 = vsel %vm2418_vm2, %v2500_v3, %v2499_v61  ;;  %v2621_v20 = vsel %vm2619_vm3, %v2620_v30, %v3056_v38  ;;  %vm2612_vm2 = vweird.f32 %v4889_v35  ;;  %v2667_v61 = vlaneseq  ;;  %v2665_v35 = vpop.permute.xlu0 %2664 }
 0x463   :  { %v2504_v57 = vsel %vm5122_vm11, %v4966_v37, %v2501_v59  ;;  %v2618_v17 = vsel %vm2616_vm15, %v3054_v39, %v2617_v55  ;;  %vm2508_vm11 = vweird.f32 %v4966_v37  ;;  %v2652_v50 = vadd.f32 %v2649_v43, %v2648_v26 }
 0x464   :  { %3057 = vcosq.f32 %v2504_v57  ;;  %v2622_v19 = vsel %vm2615_vm14, %v2618_v17, %v2621_v20  ;;  %v2668_v11 = vshrl.u32 %v2667_v61, 7 }
 0x465   :  { %3059 = vsinq.f32 %v2504_v57  ;;  %v2623_v40 = vsel %vm2612_vm2, nan, %v2622_v19 }
 0x466   :  { %v2651_v14 = vmul.f32 %v2646_v47, %v2623_v40  ;;  %v2669_v60 = vsub.s32 0, %v2668_v11 }
 0x468   :  { %v2670_v37 = vrot.slane %v2665_v35, %v2669_v60 }
 0x471   :  { %v3058_v22 = vpop.eup %3057 }
 0x472   :  { %v3060_v58 = vpop.eup %3059  ;;  %v2516_v1 = vxor.u32 2147483648, %v3058_v22 }
 0x473   :  { %v2513_v53 = vxor.u32 2147483648, %v3060_v58 }
 0x474   :  { %v2517_v56 = vsel %vm2515_vm7, %v2516_v1, %v3060_v58 }
 0x475   :  { %v2514_v0 = vsel %vm2512_vm10, %v3058_v22, %v2513_v53 }
 0x476   :  { %v2518_v45 = vsel %vm2511_vm8, %v2514_v0, %v2517_v56 }
 0x477   :  { %v2519_v36 = vsel %vm2508_vm11, nan, %v2518_v45 }
 0x478   :  { %v2650_v10 = vmul.f32 %v2641_v21, %v2519_v36 }
 0x47a   :  { %v2653_v29 = vadd.f32 %v2652_v50, %v2650_v10 }
 0x47c   :  { %v2654_v23 = vadd.f32 %v2653_v29, %v2651_v14 }
 0x47e   :  { %v2655_v3 = vrot.slane %v2654_v23, 4 }
 0x480   :  { %v2656_v31 = vadd.f32 %v2655_v3, %v2654_v23 }
 0x482   :  { %v2657_v46 = vrot.slane %v2656_v31, 2 }
 0x484   :  { %v2658_v63 = vadd.f32 %v2657_v46, %v2656_v31 }
 0x486   :  { %v2659_v5 = vrot.slane %v2658_v63, 1 }
 0x488   :  { %v2660_v59 = vadd.f32 %v2659_v5, %v2658_v63 }
 0x48a   :  { %v2671_v57 = vadd.f32 %v2670_v37, %v2660_v59 }
 0x48c   :  { %2672 = vst [vmem:[#allocation3] sm:$0x1] %v2671_v57 }
 0x48d   :  { %3072 = shalt.err (!%p3069_p4)
}
 0x48e   :  { %2682 = dma.vmem_to_hbm [thread:$0]  %s2680_s21, 16, %s5150_s9, [#allocation4]  }
 0x48f   :  { %3081 = dma.done.wait [#allocation4], 16  }
 0x490   :  { %3082 = vsyncadd [#allocation4], 4294967280 }
 0x491   :  { %2686 = vsyncpa [#allocation4], 1 }

</bundles_post_ra>
